<compile_context>
chip_gen: v7x
topology: tpu7x:2x2x1
jax: 0.10.0
libtpu: 0.0.40
codegen_flags: <defaults>
</compile_context>

<pallas_src>
import functools

import jax
import jax.numpy as jnp
from jax.experimental import pallas as pl
from jax.experimental.pallas import tpu as pltpu


# ----------------------------- Pallas kernel ------------------------------- #
def _salpointnet_kernel(p_ref,
                        wpos_ref, bpos_ref,
                        w0_ref, b0_ref,
                        w1a_ref, w1b_ref, b1_ref,
                        w2a_ref, w2b_ref, b2_ref,
                        w3a_ref, w3b_ref, b3_ref,
                        whead_ref, bhead_ref,
                        out_ref):
    f32 = jnp.float32
    cdt = wpos_ref.dtype                      # matmul operand dtype (bf16 or f32)
    Bt, N, Din = p_ref.shape
    relu = lambda x: jnp.maximum(x, 0.0)

    # Flatten the batch tile into the row (sublane) axis for batch-shared layers.
    p = p_ref[...].reshape(Bt * N, Din).astype(cdt)

    # net = fc_pos(p); net = fc_0(relu(net))          (weights pre-transposed)
    net = jnp.dot(p, wpos_ref[...], preferred_element_type=f32) + bpos_ref[...]
    net = jnp.dot(relu(net).astype(cdt), w0_ref[...],
                  preferred_element_type=f32) + b0_ref[...]

    def cat_block(net_flat, wa_ref, wb_ref, b_ref):
        # fc(relu(cat([net, maxpool_points(net)], -1)))
        #   = relu(net) @ Wa^T + max_points(relu(net)) @ Wb^T + b
        h = net_flat.shape[-1]
        r = relu(net_flat)                                       # (Bt*N, h) f32
        pooled = jnp.max(r.reshape(Bt, N, h), axis=1)            # (Bt, h)
        out_a = jnp.dot(r.astype(cdt), wa_ref[...],
                        preferred_element_type=f32)              # (Bt*N, h)
        out_b = jnp.dot(pooled.astype(cdt), wb_ref[...],
                        preferred_element_type=f32) + b_ref[...]  # (Bt, h)
        out = out_a.reshape(Bt, N, h) + out_b[:, None, :]
        return out.reshape(Bt * N, h)

    net = cat_block(net, w1a_ref, w1b_ref, b1_ref)   # fc_1
    net = cat_block(net, w2a_ref, w2b_ref, b2_ref)   # fc_2
    net = cat_block(net, w3a_ref, w3b_ref, b3_ref)   # fc_3

    # Final pool over points, relu, fused [mean | std] head -> lane-dense output.
    h = net.shape[-1]
    pooled = jnp.max(relu(net).reshape(Bt, N, h), axis=1)        # (Bt, h)
    out_ref[...] = (jnp.dot(pooled.astype(cdt), whead_ref[...],
                            preferred_element_type=f32) + bhead_ref[...])


# ------------------------------- wrapper ------------------------------------ #
def _auto_block_b(B, N, din_pad, h, out_lanes, op_itemsize, weight_bytes,
                  vmem_budget=48 * 2**20):
    """Largest batch tile whose live activations + buffers fit the VMEM budget."""
    # ~4 simultaneously-live (N, 2h) f32-sized temporaries per batch element,
    # plus the double-buffered input block and the output block.
    act_per_elem = 4 * N * (2 * h) * 4
    in_per_elem = 2 * N * din_pad * op_itemsize
    out_per_elem = 2 * out_lanes * 4
    per_elem = act_per_elem + in_per_elem + out_per_elem
    budget = max(per_elem, vmem_budget - 2 * weight_bytes)
    bt = max(1, budget // per_elem)
    # keep >= 2 grid steps when B >= 2 so the "parallel" axis can use both TCs
    bt = min(bt, pl.cdiv(B, 2) if B >= 2 else 1, 64)
    return int(max(1, bt))


def sal_pointnet_forward(p, params, *, block_b=None, compute_dtype=jnp.bfloat16):
    """p: (B, N, in_dim) float32.  Returns (c_mean, c_std), each (B, c_dim)."""
    f32 = jnp.float32
    cdt = compute_dtype
    B, N, in_dim = p.shape
    h = params["fc_0_w"].shape[0]                 # hidden_dim
    c_dim = params["fc_mean_w"].shape[0]
    itemsize = jnp.dtype(cdt).itemsize

    # ---- input feature dim: pad tiny contracting dim to 8 (one MXU K-pass) ---
    din_pad = max(8, ((in_dim + 7) // 8) * 8)

    # ---- fused, lane-dense [mean | std] head --------------------------------
    out_lanes = max(128, ((2 * c_dim + 127) // 128) * 128)

    # ---- weights: pre-transpose / pre-split / fuse heads in the wrapper ------
    def as_row(b):
        return b.reshape(1, -1).astype(f32)

    def split_t(w):                                # (h, 2h) -> Wa^T, Wb^T  (h, h)
        return w[:, :h].T.astype(cdt), w[:, h:].T.astype(cdt)

    wpos_t = jnp.pad(params["fc_pos_w"],
                     ((0, 0), (0, din_pad - in_dim))).T.astype(cdt)   # (din_pad, 2h)
    w0_t = params["fc_0_w"].T.astype(cdt)                             # (2h, h)
    w1a_t, w1b_t = split_t(params["fc_1_w"])
    w2a_t, w2b_t = split_t(params["fc_2_w"])
    w3a_t, w3b_t = split_t(params["fc_3_w"])

    whead = jnp.concatenate([params["fc_mean_w"], params["fc_std_w"]], axis=0)    # (2c, h)
    whead_t = jnp.pad(whead.T, ((0, 0), (0, out_lanes - 2 * c_dim))).astype(cdt)  # (h, lanes)
    bhead = jnp.pad(jnp.concatenate([params["fc_mean_b"], params["fc_std_b"]]),
                    (0, out_lanes - 2 * c_dim)).reshape(1, -1).astype(f32)

    weights = [
        wpos_t, as_row(params["fc_pos_b"]),
        w0_t, as_row(params["fc_0_b"]),
        w1a_t, w1b_t, as_row(params["fc_1_b"]),
        w2a_t, w2b_t, as_row(params["fc_2_b"]),
        w3a_t, w3b_t, as_row(params["fc_3_b"]),
        whead_t, bhead,
    ]
    w_bytes = sum(int(w.size) * w.dtype.itemsize for w in weights)

    # ---- batch tiling (auto Bt from a VMEM budget unless overridden) ---------
    if block_b is None:
        Bt = _auto_block_b(B, N, din_pad, h, out_lanes, itemsize, w_bytes)
    else:
        Bt = max(1, min(block_b, B))
    B_pad = ((B + Bt - 1) // Bt) * Bt

    p_pad = jnp.pad(p, ((0, B_pad - B), (0, 0), (0, din_pad - in_dim))).astype(cdt)

    def full_spec(a):
        nd = a.ndim
        return pl.BlockSpec(a.shape, lambda i, _nd=nd: (0,) * _nd)

    in_specs = [pl.BlockSpec((Bt, N, din_pad), lambda i: (i, 0, 0))]
    in_specs += [full_spec(w) for w in weights]
    out_specs = pl.BlockSpec((Bt, out_lanes), lambda i: (i, 0))
    out_shape = jax.ShapeDtypeStruct((B_pad, out_lanes), f32)
    grid = (B_pad // Bt,)

    # advisory cost estimate so XLA schedules the custom call sensibly
    flops = (B_pad * N * (2 * din_pad * 2 * h + 2 * (2 * h) * h + 3 * 2 * h * h)
             + B_pad * (3 * 2 * h * h + 2 * h * out_lanes))
    io_bytes = int(p_pad.size) * itemsize + w_bytes + B_pad * out_lanes * 4
    cost = pl.CostEstimate(flops=int(flops), transcendentals=0,
                           bytes_accessed=int(io_bytes))

    # VMEM budget: double-buffered input block + resident weights + output
    # block + a few (Bt*N, 2h) f32 activation temporaries; 2x margin, floored
    # at the default scoped limit and capped below v7x physical VMEM (64 MiB).
    p_blk = Bt * N * din_pad * itemsize
    out_blk = Bt * out_lanes * 4
    act_bytes = 4 * Bt * N * (2 * h) * 4
    vmem_limit = int(min(60 * 2**20,
                         max(32 * 2**20,
                             2 * (2 * p_blk + 2 * w_bytes + 2 * out_blk + act_bytes))))

    fn = pl.pallas_call(
        _salpointnet_kernel,
        out_shape=out_shape,
        grid_spec=pltpu.PrefetchScalarGridSpec(
            num_scalar_prefetch=0,
            grid=grid,
            in_specs=in_specs,
            out_specs=out_specs,
        ),
        compiler_params=pltpu.CompilerParams(
            dimension_semantics=("parallel",),      # shards over v7x's 2 TCs
            vmem_limit_bytes=vmem_limit,
        ),
        cost_estimate=cost,
    )
    out = fn(p_pad, *weights)                       # (B_pad, out_lanes) f32
    c_mean = out[:B, :c_dim]
    c_std = out[:B, c_dim:2 * c_dim]
    return c_mean, c_std


# ----------------------- deterministic parameter init ----------------------- #
def init_params(key, c_dim=16, in_dim=3, hidden_dim=32):
    def linear(key, out_f, in_f):
        k1, k2 = jax.random.split(key)
        bound = 1.0 / jnp.sqrt(in_f)
        w = jax.random.uniform(k1, (out_f, in_f), jnp.float32, -bound, bound)
        b = jax.random.uniform(k2, (out_f,), jnp.float32, -bound, bound)
        return w, b

    keys = jax.random.split(key, 5)
    params = {}
    params["fc_pos_w"], params["fc_pos_b"] = linear(keys[0], 2 * hidden_dim, in_dim)
    params["fc_0_w"], params["fc_0_b"] = linear(keys[1], hidden_dim, 2 * hidden_dim)
    params["fc_1_w"], params["fc_1_b"] = linear(keys[2], hidden_dim, 2 * hidden_dim)
    params["fc_2_w"], params["fc_2_b"] = linear(keys[3], hidden_dim, 2 * hidden_dim)
    params["fc_3_w"], params["fc_3_b"] = linear(keys[4], hidden_dim, 2 * hidden_dim)
    # PyTorch init: fc_mean weight/bias = 0, fc_std weight = 0, bias = -10
    params["fc_mean_w"] = jnp.zeros((c_dim, hidden_dim), jnp.float32)
    params["fc_mean_b"] = jnp.zeros((c_dim,), jnp.float32)
    params["fc_std_w"] = jnp.zeros((c_dim, hidden_dim), jnp.float32)
    params["fc_std_b"] = jnp.full((c_dim,), -10.0, jnp.float32)
    return params


# --------------------------- plain-JAX reference ----------------------------- #
def reference_forward(p, params):
    relu = lambda x: jnp.maximum(x, 0.0)
    lin = lambda x, w, b: x @ w.T + b
    net = lin(p, params["fc_pos_w"], params["fc_pos_b"])
    net = lin(relu(net), params["fc_0_w"], params["fc_0_b"])
    for name in ("fc_1", "fc_2", "fc_3"):
        pooled = jnp.broadcast_to(jnp.max(net, axis=1, keepdims=True), net.shape)
        cat = jnp.concatenate([net, pooled], axis=2)
        net = lin(relu(cat), params[f"{name}_w"], params[f"{name}_b"])
    net = jnp.max(net, axis=1)
    c_mean = lin(relu(net), params["fc_mean_w"], params["fc_mean_b"])
    c_std = lin(relu(net), params["fc_std_w"], params["fc_std_b"])
    return c_mean, c_std


if __name__ == "__main__":
    B, N, in_dim = 16, 64, 3
    hidden_dim, c_dim = 32, 16

    key = jax.random.PRNGKey(0)
    kp, kw, kh, kq = jax.random.split(key, 4)
    p = jax.random.normal(kp, (B, N, in_dim), jnp.float32)
    params = init_params(kw, c_dim=c_dim, in_dim=in_dim, hidden_dim=hidden_dim)

    # 1) faithful PyTorch init, f32 matmuls, auto batch tile: tight check
    c_mean, c_std = sal_pointnet_forward(p, params, compute_dtype=jnp.float32)
    c_mean, c_std = jax.block_until_ready((c_mean, c_std))
    ref_mean, ref_std = reference_forward(p, params)
    assert jnp.allclose(c_mean, ref_mean, atol=1e-4, rtol=1e-4)
    assert jnp.allclose(c_std, ref_std, atol=1e-4, rtol=1e-4)

    # 2) non-zero head weights so the whole compute path is actually exercised
    kh1, kh2 = jax.random.split(kh)
    bound = 1.0 / jnp.sqrt(hidden_dim)
    params_nz = dict(params)
    params_nz["fc_mean_w"] = jax.random.uniform(kh1, (c_dim, hidden_dim),
                                                jnp.float32, -bound, bound)
    params_nz["fc_std_w"] = jax.random.uniform(kh2, (c_dim, hidden_dim),
                                               jnp.float32, -bound, bound)
    ref_mean_nz, ref_std_nz = reference_forward(p, params_nz)

    m_f32, s_f32 = sal_pointnet_forward(p, params_nz, compute_dtype=jnp.float32)
    m_f32, s_f32 = jax.block_until_ready((m_f32, s_f32))
    assert jnp.allclose(m_f32, ref_mean_nz, atol=1e-4, rtol=1e-4)
    assert jnp.allclose(s_f32, ref_std_nz, atol=1e-4, rtol=1e-4)

    # 3) bf16 MXU fast path (f32 accumulation) -- looser tolerance
    m_bf, s_bf = sal_pointnet_forward(p, params_nz, compute_dtype=jnp.bfloat16)
    m_bf, s_bf = jax.block_until_ready((m_bf, s_bf))
    assert jnp.allclose(m_bf, ref_mean_nz, atol=5e-2, rtol=5e-2)
    assert jnp.allclose(s_bf, ref_std_nz, atol=5e-2, rtol=5e-2)

    # 4) non-divisible batch with an explicit tile (exercises batch padding)
    p_small = jax.random.normal(kq, (5, N, in_dim), jnp.float32)
    ref_m5, ref_s5 = reference_forward(p_small, params_nz)
    m5, s5 = sal_pointnet_forward(p_small, params_nz, block_b=4,
                                  compute_dtype=jnp.float32)
    m5, s5 = jax.block_until_ready((m5, s5))
    assert m5.shape == (5, c_dim) and s5.shape == (5, c_dim)
    assert jnp.allclose(m5, ref_m5, atol=1e-4, rtol=1e-4)
    assert jnp.allclose(s5, ref_s5, atol=1e-4, rtol=1e-4)

    print("KERNEL_OK")
</pallas_src>

<mosaic_0001>
module attributes {stable_mosaic.version = 11 : i64} {
  func.func @_salpointnet_kernel(%arg0: i32, %arg1: memref<8x64x8xf32, #tpu.memory_space<vmem>>, %arg2: memref<8x64xf32, #tpu.memory_space<vmem>>, %arg3: memref<1x64xf32, #tpu.memory_space<vmem>>, %arg4: memref<64x32xf32, #tpu.memory_space<vmem>>, %arg5: memref<1x32xf32, #tpu.memory_space<vmem>>, %arg6: memref<32x32xf32, #tpu.memory_space<vmem>>, %arg7: memref<32x32xf32, #tpu.memory_space<vmem>>, %arg8: memref<1x32xf32, #tpu.memory_space<vmem>>, %arg9: memref<32x32xf32, #tpu.memory_space<vmem>>, %arg10: memref<32x32xf32, #tpu.memory_space<vmem>>, %arg11: memref<1x32xf32, #tpu.memory_space<vmem>>, %arg12: memref<32x32xf32, #tpu.memory_space<vmem>>, %arg13: memref<32x32xf32, #tpu.memory_space<vmem>>, %arg14: memref<1x32xf32, #tpu.memory_space<vmem>>, %arg15: memref<32x128xf32, #tpu.memory_space<vmem>>, %arg16: memref<1x128xf32, #tpu.memory_space<vmem>>, %arg17: memref<8x128xf32, #tpu.memory_space<vmem>>) attributes {dimension_semantics = [#tpu.dimension_semantics<parallel>], iteration_bounds = array<i64: 2>, scalar_prefetch = 0 : i64, scratch_operands = 0 : i64, tpu.core_type = #tpu.core_type<tc>, window_params = [{transform_indices = @transform_0, window_bounds = array<i64: 8, 64, 8>}, {pipeline_mode = #tpu.pipeline_mode<synchronous>, transform_indices = @transform_1, window_bounds = array<i64: 8, 64>}, {pipeline_mode = #tpu.pipeline_mode<synchronous>, transform_indices = @transform_2, window_bounds = array<i64: 1, 64>}, {pipeline_mode = #tpu.pipeline_mode<synchronous>, transform_indices = @transform_3, window_bounds = array<i64: 64, 32>}, {pipeline_mode = #tpu.pipeline_mode<synchronous>, transform_indices = @transform_4, window_bounds = array<i64: 1, 32>}, {pipeline_mode = #tpu.pipeline_mode<synchronous>, transform_indices = @transform_5, window_bounds = array<i64: 32, 32>}, {pipeline_mode = #tpu.pipeline_mode<synchronous>, transform_indices = @transform_6, window_bounds = array<i64: 32, 32>}, {pipeline_mode = #tpu.pipeline_mode<synchronous>, transform_indices = @transform_7, window_bounds = array<i64: 1, 32>}, {pipeline_mode = #tpu.pipeline_mode<synchronous>, transform_indices = @transform_8, window_bounds = array<i64: 32, 32>}, {pipeline_mode = #tpu.pipeline_mode<synchronous>, transform_indices = @transform_9, window_bounds = array<i64: 32, 32>}, {pipeline_mode = #tpu.pipeline_mode<synchronous>, transform_indices = @transform_10, window_bounds = array<i64: 1, 32>}, {pipeline_mode = #tpu.pipeline_mode<synchronous>, transform_indices = @transform_11, window_bounds = array<i64: 32, 32>}, {pipeline_mode = #tpu.pipeline_mode<synchronous>, transform_indices = @transform_12, window_bounds = array<i64: 32, 32>}, {pipeline_mode = #tpu.pipeline_mode<synchronous>, transform_indices = @transform_13, window_bounds = array<i64: 1, 32>}, {pipeline_mode = #tpu.pipeline_mode<synchronous>, transform_indices = @transform_14, window_bounds = array<i64: 32, 128>}, {pipeline_mode = #tpu.pipeline_mode<synchronous>, transform_indices = @transform_15, window_bounds = array<i64: 1, 128>}, {transform_indices = @transform_16, window_bounds = array<i64: 8, 128>}]} {
    %c0 = arith.constant 0 : index
    %c0_0 = arith.constant 0 : index
    %c0_1 = arith.constant 0 : index
    %0 = vector.load %arg1[%c0, %c0_0, %c0_1] : memref<8x64x8xf32, #tpu.memory_space<vmem>>, vector<8x64x8xf32>
    %1 = vector.shape_cast %0 : vector<8x64x8xf32> to vector<512x8xf32>
    %c0_2 = arith.constant 0 : index
    %c0_3 = arith.constant 0 : index
    %2 = vector.load %arg2[%c0_2, %c0_3] : memref<8x64xf32, #tpu.memory_space<vmem>>, vector<8x64xf32>
    %cst = arith.constant dense<0.000000e+00> : vector<512x64xf32>
    %3 = tpu.matmul %1, %2, %cst {dimension_numbers = #tpu.dot_dimension_numbers<[1], [0], [0], [1], [0, 0, 1, 1], [], []>} : vector<512x8xf32>, vector<8x64xf32>, vector<512x64xf32> -> vector<512x64xf32>
    %c0_4 = arith.constant 0 : index
    %c0_5 = arith.constant 0 : index
    %4 = vector.load %arg3[%c0_4, %c0_5] : memref<1x64xf32, #tpu.memory_space<vmem>>, vector<1x64xf32>
    %5 = vector.broadcast %4 : vector<1x64xf32> to vector<512x64xf32>
    %6 = arith.addf %3, %5 : vector<512x64xf32>
    %cst_6 = arith.constant 0.000000e+00 : f32
    %7 = vector.broadcast %cst_6 : f32 to vector<512x64xf32>
    %8 = arith.maximumf %6, %7 : vector<512x64xf32>
    %c0_7 = arith.constant 0 : index
    %c0_8 = arith.constant 0 : index
    %9 = vector.load %arg4[%c0_7, %c0_8] : memref<64x32xf32, #tpu.memory_space<vmem>>, vector<64x32xf32>
    %cst_9 = arith.constant dense<0.000000e+00> : vector<512x32xf32>
    %10 = tpu.matmul %8, %9, %cst_9 {dimension_numbers = #tpu.dot_dimension_numbers<[1], [0], [0], [1], [0, 0, 1, 1], [], []>} : vector<512x64xf32>, vector<64x32xf32>, vector<512x32xf32> -> vector<512x32xf32>
    %c0_10 = arith.constant 0 : index
    %c0_11 = arith.constant 0 : index
    %11 = vector.load %arg5[%c0_10, %c0_11] : memref<1x32xf32, #tpu.memory_space<vmem>>, vector<1x32xf32>
    %12 = vector.broadcast %11 : vector<1x32xf32> to vector<512x32xf32>
    %13 = arith.addf %10, %12 : vector<512x32xf32>
    %cst_12 = arith.constant 0.000000e+00 : f32
    %14 = vector.broadcast %cst_12 : f32 to vector<512x32xf32>
    %15 = arith.maximumf %13, %14 : vector<512x32xf32>
    %16 = vector.shape_cast %15 : vector<512x32xf32> to vector<8x64x32xf32>
    %cst_13 = arith.constant dense<0xFF800000> : vector<8x32xf32>
    %17 = vector.multi_reduction <maximumf>, %16, %cst_13 [1] : vector<8x64x32xf32> to vector<8x32xf32>
    %c0_14 = arith.constant 0 : index
    %c0_15 = arith.constant 0 : index
    %18 = vector.load %arg6[%c0_14, %c0_15] : memref<32x32xf32, #tpu.memory_space<vmem>>, vector<32x32xf32>
    %cst_16 = arith.constant dense<0.000000e+00> : vector<512x32xf32>
    %19 = tpu.matmul %15, %18, %cst_16 {dimension_numbers = #tpu.dot_dimension_numbers<[1], [0], [0], [1], [0, 0, 1, 1], [], []>} : vector<512x32xf32>, vector<32x32xf32>, vector<512x32xf32> -> vector<512x32xf32>
    %c0_17 = arith.constant 0 : index
    %c0_18 = arith.constant 0 : index
    %20 = vector.load %arg7[%c0_17, %c0_18] : memref<32x32xf32, #tpu.memory_space<vmem>>, vector<32x32xf32>
    %cst_19 = arith.constant dense<0.000000e+00> : vector<8x32xf32>
    %21 = tpu.matmul %17, %20, %cst_19 {dimension_numbers = #tpu.dot_dimension_numbers<[1], [0], [0], [1], [0, 0, 1, 1], [], []>} : vector<8x32xf32>, vector<32x32xf32>, vector<8x32xf32> -> vector<8x32xf32>
    %c0_20 = arith.constant 0 : index
    %c0_21 = arith.constant 0 : index
    %22 = vector.load %arg8[%c0_20, %c0_21] : memref<1x32xf32, #tpu.memory_space<vmem>>, vector<1x32xf32>
    %23 = vector.broadcast %22 : vector<1x32xf32> to vector<8x32xf32>
    %24 = arith.addf %21, %23 : vector<8x32xf32>
    %25 = vector.shape_cast %19 : vector<512x32xf32> to vector<8x64x32xf32>
    %26 = vector.shape_cast %24 : vector<8x32xf32> to vector<8x1x32xf32>
    %27 = vector.broadcast %26 : vector<8x1x32xf32> to vector<8x64x32xf32>
    %28 = arith.addf %25, %27 : vector<8x64x32xf32>
    %29 = vector.shape_cast %28 : vector<8x64x32xf32> to vector<512x32xf32>
    %cst_22 = arith.constant 0.000000e+00 : f32
    %30 = vector.broadcast %cst_22 : f32 to vector<512x32xf32>
    %31 = arith.maximumf %29, %30 : vector<512x32xf32>
    %32 = vector.shape_cast %31 : vector<512x32xf32> to vector<8x64x32xf32>
    %cst_23 = arith.constant dense<0xFF800000> : vector<8x32xf32>
    %33 = vector.multi_reduction <maximumf>, %32, %cst_23 [1] : vector<8x64x32xf32> to vector<8x32xf32>
    %c0_24 = arith.constant 0 : index
    %c0_25 = arith.constant 0 : index
    %34 = vector.load %arg9[%c0_24, %c0_25] : memref<32x32xf32, #tpu.memory_space<vmem>>, vector<32x32xf32>
    %cst_26 = arith.constant dense<0.000000e+00> : vector<512x32xf32>
    %35 = tpu.matmul %31, %34, %cst_26 {dimension_numbers = #tpu.dot_dimension_numbers<[1], [0], [0], [1], [0, 0, 1, 1], [], []>} : vector<512x32xf32>, vector<32x32xf32>, vector<512x32xf32> -> vector<512x32xf32>
    %c0_27 = arith.constant 0 : index
    %c0_28 = arith.constant 0 : index
    %36 = vector.load %arg10[%c0_27, %c0_28] : memref<32x32xf32, #tpu.memory_space<vmem>>, vector<32x32xf32>
    %cst_29 = arith.constant dense<0.000000e+00> : vector<8x32xf32>
    %37 = tpu.matmul %33, %36, %cst_29 {dimension_numbers = #tpu.dot_dimension_numbers<[1], [0], [0], [1], [0, 0, 1, 1], [], []>} : vector<8x32xf32>, vector<32x32xf32>, vector<8x32xf32> -> vector<8x32xf32>
    %c0_30 = arith.constant 0 : index
    %c0_31 = arith.constant 0 : index
    %38 = vector.load %arg11[%c0_30, %c0_31] : memref<1x32xf32, #tpu.memory_space<vmem>>, vector<1x32xf32>
    %39 = vector.broadcast %38 : vector<1x32xf32> to vector<8x32xf32>
    %40 = arith.addf %37, %39 : vector<8x32xf32>
    %41 = vector.shape_cast %35 : vector<512x32xf32> to vector<8x64x32xf32>
    %42 = vector.shape_cast %40 : vector<8x32xf32> to vector<8x1x32xf32>
    %43 = vector.broadcast %42 : vector<8x1x32xf32> to vector<8x64x32xf32>
    %44 = arith.addf %41, %43 : vector<8x64x32xf32>
    %45 = vector.shape_cast %44 : vector<8x64x32xf32> to vector<512x32xf32>
    %cst_32 = arith.constant 0.000000e+00 : f32
    %46 = vector.broadcast %cst_32 : f32 to vector<512x32xf32>
    %47 = arith.maximumf %45, %46 : vector<512x32xf32>
    %48 = vector.shape_cast %47 : vector<512x32xf32> to vector<8x64x32xf32>
    %cst_33 = arith.constant dense<0xFF800000> : vector<8x32xf32>
    %49 = vector.multi_reduction <maximumf>, %48, %cst_33 [1] : vector<8x64x32xf32> to vector<8x32xf32>
    %c0_34 = arith.constant 0 : index
    %c0_35 = arith.constant 0 : index
    %50 = vector.load %arg12[%c0_34, %c0_35] : memref<32x32xf32, #tpu.memory_space<vmem>>, vector<32x32xf32>
    %cst_36 = arith.constant dense<0.000000e+00> : vector<512x32xf32>
    %51 = tpu.matmul %47, %50, %cst_36 {dimension_numbers = #tpu.dot_dimension_numbers<[1], [0], [0], [1], [0, 0, 1, 1], [], []>} : vector<512x32xf32>, vector<32x32xf32>, vector<512x32xf32> -> vector<512x32xf32>
    %c0_37 = arith.constant 0 : index
    %c0_38 = arith.constant 0 : index
    %52 = vector.load %arg13[%c0_37, %c0_38] : memref<32x32xf32, #tpu.memory_space<vmem>>, vector<32x32xf32>
    %cst_39 = arith.constant dense<0.000000e+00> : vector<8x32xf32>
    %53 = tpu.matmul %49, %52, %cst_39 {dimension_numbers = #tpu.dot_dimension_numbers<[1], [0], [0], [1], [0, 0, 1, 1], [], []>} : vector<8x32xf32>, vector<32x32xf32>, vector<8x32xf32> -> vector<8x32xf32>
    %c0_40 = arith.constant 0 : index
    %c0_41 = arith.constant 0 : index
    %54 = vector.load %arg14[%c0_40, %c0_41] : memref<1x32xf32, #tpu.memory_space<vmem>>, vector<1x32xf32>
    %55 = vector.broadcast %54 : vector<1x32xf32> to vector<8x32xf32>
    %56 = arith.addf %53, %55 : vector<8x32xf32>
    %57 = vector.shape_cast %51 : vector<512x32xf32> to vector<8x64x32xf32>
    %58 = vector.shape_cast %56 : vector<8x32xf32> to vector<8x1x32xf32>
    %59 = vector.broadcast %58 : vector<8x1x32xf32> to vector<8x64x32xf32>
    %60 = arith.addf %57, %59 : vector<8x64x32xf32>
    %61 = vector.shape_cast %60 : vector<8x64x32xf32> to vector<512x32xf32>
    %cst_42 = arith.constant 0.000000e+00 : f32
    %62 = vector.broadcast %cst_42 : f32 to vector<512x32xf32>
    %63 = arith.maximumf %61, %62 : vector<512x32xf32>
    %64 = vector.shape_cast %63 : vector<512x32xf32> to vector<8x64x32xf32>
    %cst_43 = arith.constant dense<0xFF800000> : vector<8x32xf32>
    %65 = vector.multi_reduction <maximumf>, %64, %cst_43 [1] : vector<8x64x32xf32> to vector<8x32xf32>
    %c0_44 = arith.constant 0 : index
    %c0_45 = arith.constant 0 : index
    %66 = vector.load %arg15[%c0_44, %c0_45] : memref<32x128xf32, #tpu.memory_space<vmem>>, vector<32x128xf32>
    %cst_46 = arith.constant dense<0.000000e+00> : vector<8x128xf32>
    %67 = tpu.matmul %65, %66, %cst_46 {dimension_numbers = #tpu.dot_dimension_numbers<[1], [0], [0], [1], [0, 0, 1, 1], [], []>} : vector<8x32xf32>, vector<32x128xf32>, vector<8x128xf32> -> vector<8x128xf32>
    %c0_47 = arith.constant 0 : index
    %c0_48 = arith.constant 0 : index
    %68 = vector.load %arg16[%c0_47, %c0_48] : memref<1x128xf32, #tpu.memory_space<vmem>>, vector<1x128xf32>
    %69 = vector.broadcast %68 : vector<1x128xf32> to vector<8x128xf32>
    %70 = arith.addf %67, %69 : vector<8x128xf32>
    %c0_49 = arith.constant 0 : index
    %c0_50 = arith.constant 0 : index
    %71 = vector.load %arg17[%c0_49, %c0_50] : memref<8x128xf32, #tpu.memory_space<vmem>>, vector<8x128xf32>
    tpu.vector_store %arg17[%c0_49, %c0_50], %70 {strides = array<i32>} : memref<8x128xf32, #tpu.memory_space<vmem>>, vector<8x128xf32>,
    return
  }
  func.func @transform_0(%arg0: i32) -> (i32, i32, i32) {
    %c0_i32 = arith.constant 0 : i32
    %c0_i32_0 = arith.constant 0 : i32
    %c0_i32_1 = arith.constant 0 : i32
    return %arg0, %c0_i32, %c0_i32_0 : i32, i32, i32
  }
  func.func @transform_1(%arg0: i32) -> (i32, i32) {
    %c0_i32 = arith.constant 0 : i32
    %c0_i32_0 = arith.constant 0 : i32
    %c0_i32_1 = arith.constant 0 : i32
    return %c0_i32, %c0_i32_0 : i32, i32
  }
  func.func @transform_2(%arg0: i32) -> (i32, i32) {
    %c0_i32 = arith.constant 0 : i32
    %c0_i32_0 = arith.constant 0 : i32
    %c0_i32_1 = arith.constant 0 : i32
    return %c0_i32, %c0_i32_0 : i32, i32
  }
  func.func @transform_3(%arg0: i32) -> (i32, i32) {
    %c0_i32 = arith.constant 0 : i32
    %c0_i32_0 = arith.constant 0 : i32
    %c0_i32_1 = arith.constant 0 : i32
    return %c0_i32, %c0_i32_0 : i32, i32
  }
  func.func @transform_4(%arg0: i32) -> (i32, i32) {
    %c0_i32 = arith.constant 0 : i32
    %c0_i32_0 = arith.constant 0 : i32
    %c0_i32_1 = arith.constant 0 : i32
    return %c0_i32, %c0_i32_0 : i32, i32
  }
  func.func @transform_5(%arg0: i32) -> (i32, i32) {
    %c0_i32 = arith.constant 0 : i32
    %c0_i32_0 = arith.constant 0 : i32
    %c0_i32_1 = arith.constant 0 : i32
    return %c0_i32, %c0_i32_0 : i32, i32
  }
  func.func @transform_6(%arg0: i32) -> (i32, i32) {
    %c0_i32 = arith.constant 0 : i32
    %c0_i32_0 = arith.constant 0 : i32
    %c0_i32_1 = arith.constant 0 : i32
    return %c0_i32, %c0_i32_0 : i32, i32
  }
  func.func @transform_7(%arg0: i32) -> (i32, i32) {
    %c0_i32 = arith.constant 0 : i32
    %c0_i32_0 = arith.constant 0 : i32
    %c0_i32_1 = arith.constant 0 : i32
    return %c0_i32, %c0_i32_0 : i32, i32
  }
  func.func @transform_8(%arg0: i32) -> (i32, i32) {
    %c0_i32 = arith.constant 0 : i32
    %c0_i32_0 = arith.constant 0 : i32
    %c0_i32_1 = arith.constant 0 : i32
    return %c0_i32, %c0_i32_0 : i32, i32
  }
  func.func @transform_9(%arg0: i32) -> (i32, i32) {
    %c0_i32 = arith.constant 0 : i32
    %c0_i32_0 = arith.constant 0 : i32
    %c0_i32_1 = arith.constant 0 : i32
    return %c0_i32, %c0_i32_0 : i32, i32
  }
  func.func @transform_10(%arg0: i32) -> (i32, i32) {
    %c0_i32 = arith.constant 0 : i32
    %c0_i32_0 = arith.constant 0 : i32
    %c0_i32_1 = arith.constant 0 : i32
    return %c0_i32, %c0_i32_0 : i32, i32
  }
  func.func @transform_11(%arg0: i32) -> (i32, i32) {
    %c0_i32 = arith.constant 0 : i32
    %c0_i32_0 = arith.constant 0 : i32
    %c0_i32_1 = arith.constant 0 : i32
    return %c0_i32, %c0_i32_0 : i32, i32
  }
  func.func @transform_12(%arg0: i32) -> (i32, i32) {
    %c0_i32 = arith.constant 0 : i32
    %c0_i32_0 = arith.constant 0 : i32
    %c0_i32_1 = arith.constant 0 : i32
    return %c0_i32, %c0_i32_0 : i32, i32
  }
  func.func @transform_13(%arg0: i32) -> (i32, i32) {
    %c0_i32 = arith.constant 0 : i32
    %c0_i32_0 = arith.constant 0 : i32
    %c0_i32_1 = arith.constant 0 : i32
    return %c0_i32, %c0_i32_0 : i32, i32
  }
  func.func @transform_14(%arg0: i32) -> (i32, i32) {
    %c0_i32 = arith.constant 0 : i32
    %c0_i32_0 = arith.constant 0 : i32
    %c0_i32_1 = arith.constant 0 : i32
    return %c0_i32, %c0_i32_0 : i32, i32
  }
  func.func @transform_15(%arg0: i32) -> (i32, i32) {
    %c0_i32 = arith.constant 0 : i32
    %c0_i32_0 = arith.constant 0 : i32
    %c0_i32_1 = arith.constant 0 : i32
    return %c0_i32, %c0_i32_0 : i32, i32
  }
  func.func @transform_16(%arg0: i32) -> (i32, i32) {
    %c0_i32 = arith.constant 0 : i32
    %c0_i32_0 = arith.constant 0 : i32
    return %arg0, %c0_i32 : i32, i32
  }
}

</mosaic_0001>

<bundles_post_ra>
// kernel: tpu_custom_call.1
= control target key start
LH: loop header
LB: loop body
LE: loop exit
PB: predicated region body
PF: predicated region fallthrough
CT: control target
= control target key end

     0   :  { %s9766_s0 = inlined_call_operand.vmem [shape: f32[16,64,8], index: 0, kind: input, shape index: {}]   ;;  %s9767_s1 = inlined_call_operand.vmem [shape: f32[8,64], index: 1, kind: input, shape index: {}]   ;;  %s9768_s2 = inlined_call_operand.vmem [shape: f32[1,64], index: 2, kind: input, shape index: {}]   ;;  %s9769_s3 = inlined_call_operand.vmem [shape: f32[64,32], index: 3, kind: input, shape index: {}]   ;;  %s9770_s4 = inlined_call_operand.vmem [shape: f32[1,32], index: 4, kind: input, shape index: {}]   ;;  %s9771_s5 = inlined_call_operand.vmem [shape: f32[32,32], index: 5, kind: input, shape index: {}]   ;;  %s9772_s6 = inlined_call_operand.vmem [shape: f32[32,32], index: 6, kind: input, shape index: {}]   ;;  %s9773_s7 = inlined_call_operand.vmem [shape: f32[1,32], index: 7, kind: input, shape index: {}]   ;;  %s9774_s8 = inlined_call_operand.vmem [shape: f32[32,32], index: 8, kind: input, shape index: {}]   ;;  %s9775_s9 = inlined_call_operand.vmem [shape: f32[32,32], index: 9, kind: input, shape index: {}]   ;;  %s9776_s10 = inlined_call_operand.vmem [shape: f32[1,32], index: 10, kind: input, shape index: {}]   ;;  %s9777_s11 = inlined_call_operand.vmem [shape: f32[32,32], index: 11, kind: input, shape index: {}]   ;;  %s9778_s12 = inlined_call_operand.vmem [shape: f32[32,32], index: 12, kind: input, shape index: {}]   ;;  %s9779_s13 = inlined_call_operand.vmem [shape: f32[1,32], index: 13, kind: input, shape index: {}]   ;;  %s9780_s14 = inlined_call_operand.vmem [shape: f32[32,128], index: 14, kind: input, shape index: {}]   ;;  %s9781_s15 = inlined_call_operand.vmem [shape: f32[1,128], index: 15, kind: input, shape index: {}]   ;;  %s9782_s16 = inlined_call_operand.hbm [shape: f32[16,128], index: 16, kind: output, shape index: {}]  }
   0x1   :  { %9848 = sst [smem:[#allocation30_spill]] %s9766_s0 }
   0x2   :  { %9849 = sst [smem:[#allocation31_spill]] %s9767_s1 }
   0x3   :  { %9850 = sst [smem:[#allocation32_spill]] %s9768_s2 }
   0x4   :  { %21 = vsyncpa [#allocation3], 0 }
   0x5   :  { %23 = vsyncpa [#allocation3 + $0x1], 0  ;;  %s6972_s21 = smov 0   ;;  %s6974_s22 = smov 0  }
   0x6   :  { %s6976_s23 = smov 0   ;;  %s6978_s24 = smov 0  }
   0x7 LB: > { %9851 = sst [smem:[#allocation5_spill]] %s6876_s23  ;;  %s6993_s25 = sadd.s32 4294967295, %s6880_s24   ;;  %s6880_s24 = sphi %s6978_s24, %s10090_s24   ;;  %s6876_s23 = sphi %s6976_s23, %s10092_s23   ;;  %s6872_s22 = sphi %s6974_s22, %s10094_s22   ;;  %s6868_s21 = sphi %s6972_s21, %s10093_s21  }
   0x8   : > { %s5439_s26 = sadd.s32 4294967294, %s6880_s24   ;;  %s6997_s27 = sadd.s32 1, %s6880_s24  }
   0x9   : > { %9852 = sst [smem:[#allocation6_spill]] %s6997_s27  ;;  %s377_s28 = sadd.s32 1, %s6876_s23 }
   0xa   : > { %s374_s29 = ssub.s32 %s6880_s24, %s6997_s27  ;;  %p387_p0 = scmp.ne.s32.totalorder %s6876_s23, %s6872_s22 }
   0xb   : > { %p375_p1 = scmp.eq.s32.totalorder %s374_s29, 0  ;;  %p388_p2 = scmp.eq.s32.totalorder %s6993_s25, 1 }
   0xc   : > { %p393_p3 = scmp.ne.s32.totalorder %s6872_s22, %s6868_s21  ;;  %p394_p4 = scmp.eq.s32.totalorder %s5439_s26, 1 }
   0xd   : > { %s7008_s30 = scalar_select %p375_p1, %s6876_s23, %s377_s28  }
   0xe   : > { %p7010_p5 = por %p388_p2, %p387_p0  ;;  %p7014_p6 = por %p394_p4, %p393_p3 }
   0xf   : > { %9853 = sst [smem:[#allocation7_spill]] %s7008_s30  ;;  %p5442_p7 = scmp.ge.s32.totalorder %s6880_s24, 1 }
  0x10   : > { %p467_p8 = scmp.lt.s32.totalorder %s6880_s24, 3 }
  0x12   : > { %p468_p9 = pnand %p5442_p7, %p467_p8 }
  0x14   : > { %471 = sbr.rel (%p468_p9) target bundleno = 1798 (0x706), region = 84 }
  0x1b   : > { %s9856_s1 = sld [smem:[#allocation31_spill]]  ;;  %s5444_s20 = sshll.u32 %s6993_s25, 3  ;;  %v1239_v1 = vld [vmem:[%s9769_s3] sm:$0xff]  ;;  %v1240_v2 = vld [vmem:[%s9769_s3 + $0x8] sm:$0xff]  ;;  %vm597_vm0 = vcmask 64512   ;;  %v1241_v11 = vld [vmem:[%s9769_s3 + $0x10] sm:$0xff] }
  0x1c   : > { %p519_p10 = scmp.lt.s32.totalorder %s5444_s20, 15  ;;  %v6709_v3 = vpack.c.bf16 %v1240_v2, %v1239_v1  ;;  %s9857_s23 = sld [smem:[#allocation30_spill]]  ;;  %v1242_v12 = vld [vmem:[%s9769_s3 + $0x18] sm:$0xff]  ;;  %v1243_v19 = vld [vmem:[%s9769_s3 + $0x20] sm:$0xff]  ;;  %v1244_v20 = vld [vmem:[%s9769_s3 + $0x28] sm:$0xff]  ;;  %vm1254_vm1 = vcmask 523264  }
  0x1d   : > { %v6713_v18 = vpack.c.bf16 %v1242_v12, %v1241_v11  ;;  %v6717_v25 = vpack.c.bf16 %v1244_v20, %v1243_v19  ;;  %v1245_v26 = vld [vmem:[%s9769_s3 + $0x30] sm:$0xff]  ;;  %v1246_v27 = vld [vmem:[%s9769_s3 + $0x38] sm:$0xff]  ;;  %s9858_s2 = sld [smem:[#allocation32_spill]]  ;;  %v2066_v19 = vld [vmem:[%s9771_s5 + $0x8] sm:$0xff]  ;;  %vm1896_vm2 = vcmask 261120   ;;  %vm6883_vm3 = vmmov 0  }
  0x1e   : > { %s10096_s20 = smov (!%p519_p10, %s5444_s20), 15  ;;  %v6721_v32 = vpack.c.bf16 %v1246_v27, %v1245_v26  ;;  %vm2665_vm4 = vcmask 1041409   ;;  %vm2667_vm5 = vcmask 1042434   ;;  %vm2669_vm6 = vcmask 1043459   ;;  %s515_s19 = sand.u32 1, %s6872_s22  }
  0x1f   : > { %s5781_s18 = sshll.u32 %s10096_s20, 6  ;;  %vm2671_vm7 = vcmask 1044484   ;;  %vm2673_vm8 = vcmask 1045509   ;;  %vm2675_vm9 = vcmask 1046534   ;;  %vm2677_vm10 = vcmask 1047559   ;;  %s5778_s20 = sshll.u32 %s6993_s25, 7 }
  0x20   : > { %s6886_s25 = smov [#allocation2]  }
  0x21   : > { %v589_v0 = vld [vmem:[%s9856_s1] sm:$0xff]  ;;  %s5443_s1 = sshll.u32 %s515_s19, 3 }
  0x22   : > { %6143 = vmatprep.subr.mxu0 %v589_v0  ;;  %6773 = vmatprep.subr.mxu1 %v589_v0  ;;  %s7033_s27 = scalar_lea.vmem %s9857_s23, %s5781_s18  ;;  %s517_s26 = scalar_lea.vmem [#allocation2], %s5443_s1 }
  0x23   : > { %6144 = vmatpush3.msra.mxu0 %v589_v0  ;;  %6774 = vmatpush3.msra.mxu1 %v589_v0  ;;  %v525_v4 = vld [vmem:[%s7033_s27] sm:$0xff]  ;;  %v526_v5 = vld [vmem:[%s7033_s27 + $0x8] sm:$0xff]  ;;  %v527_v6 = vld [vmem:[%s7033_s27 + $0x10] sm:$0xff]  ;;  %s5380_s28 = sshll.u32 %s517_s26, 4  ;;  %s6822_s1 = sshll.u32 %s6886_s25, 4  ;;  %s9726_s28 = int_to_ptr.vmem [resolvable:$true] %s5380_s28  ;;  %s6823_s1 = int_to_ptr.vmem [resolvable:$false] %s6822_s1 }
  0x24   : > { %6710 = vmatprep.subr.bf16.mxu1 %v6709_v3  ;;  %6145 = vmatprep.mubr.msk.f32.mxu0 %vm597_vm0, %v525_v4  ;;  %v528_v7 = vld [vmem:[%s7033_s27 + $0x18] sm:$0xff]  ;;  %v529_v8 = vld [vmem:[%s7033_s27 + $0x20] sm:$0xff]  ;;  %v530_v9 = vld [vmem:[%s7033_s27 + $0x28] sm:$0xff]  ;;  %s6818_s23 = scalar_lea.vmem %s9726_s28, 128  ;;  %s6824_s30 = scalar_lea.vmem %s6823_s1, 256 }
  0x25   : > { %6146 = vmatmul.mubr.msk.f32.vlgmr.msra.gmra.mrb[0].mxu0 %vm597_vm0, %v526_v5  ;;  %v531_v10 = vld [vmem:[%s7033_s27 + $0x30] sm:$0xff]  ;;  %v532_v13 = vld [vmem:[%s7033_s27 + $0x38] sm:$0xff]  ;;  %v533_v14 = vld [vmem:[%s7033_s27 + $0x40] sm:$0xff]  ;;  %p6819_p11 = scmp.ne.s32.totalorder %s9726_s28, %s6818_s23  ;;  %p6825_p0 = scmp.lt.s32.totalorder %s9726_s28, %s6823_s1 }
  0x26   : > { %6148 = vmatprep.mubr.msk.f32.mxu0 %vm597_vm0, %v527_v6  ;;  %v561_v15 = vld [vmem:[%s7033_s27 + $0x120] sm:$0xff]  ;;  %v562_v16 = vld [vmem:[%s7033_s27 + $0x128] sm:$0xff]  ;;  %v563_v17 = vld [vmem:[%s7033_s27 + $0x130] sm:$0xff]  ;;  %p6826_p1 = scmp.lt.s32.totalorder %s6824_s30, %s6818_s23 }
  0x27   : > { %6199 = vmatprep.mubr.msk.f32.mxu1 %vm597_vm0, %v561_v15  ;;  %v534_v21 = vld [vmem:[%s7033_s27 + $0x48] sm:$0xff]  ;;  %v564_v22 = vld [vmem:[%s7033_s27 + $0x138] sm:$0xff]  ;;  %v535_v23 = vld [vmem:[%s7033_s27 + $0x50] sm:$0xff]  ;;  %p6820_p12 = pnand %p6819_p11, %p7010_p5 }
  0x28   : > { %6200 = vmatmul.mubr.msk.f32.vlgmr.msra.gmra.mrb[0].mxu1 %vm597_vm0, %v562_v16  ;;  %v565_v24 = vld [vmem:[%s7033_s27 + $0x140] sm:$0xff]  ;;  %v536_v28 = vld [vmem:[%s7033_s27 + $0x58] sm:$0xff]  ;;  %v566_v29 = vld [vmem:[%s7033_s27 + $0x148] sm:$0xff]  ;;  %p6827_p2 = por %p6826_p1, %p6825_p0 }
  0x29   : > { %6149 = vmatmul.mubr.msk.f32.gmra.mrb[2].mxu0 %vm597_vm0, %v528_v7  ;;  %6202 = vmatprep.mubr.msk.f32.mxu1 %vm597_vm0, %v563_v17  ;;  %v537_v30 = vld [vmem:[%s7033_s27 + $0x60] sm:$0xff]  ;;  %v567_v31 = vld [vmem:[%s7033_s27 + $0x150] sm:$0xff]  ;;  %v538_v33 = vld [vmem:[%s7033_s27 + $0x68] sm:$0xff]  ;;  %p6821_p13 = pneg %p6820_p12 }
  0x2a   : > { %6151 = vmatprep.mubr.msk.f32.mxu0 %vm597_vm0, %v529_v8  ;;  %6712 = vmatpush3.bf16.msra.mxu1 %v6709_v3  ;;  %v568_v34 = vld [vmem:[%s7033_s27 + $0x158] sm:$0xff]  ;;  %v539_v35 = vld [vmem:[%s7033_s27 + $0x70] sm:$0xff]  ;;  %v569_v36 = vld [vmem:[%s7033_s27 + $0x160] sm:$0xff] }
  0x2b   : > { %6714 = vmatprep.subr.bf16.mxu1 %v6713_v18  ;;  %v540_v37 = vld [vmem:[%s7033_s27 + $0x78] sm:$0xff]  ;;  %v570_v38 = vld [vmem:[%s7033_s27 + $0x168] sm:$0xff]  ;;  %v541_v39 = vld [vmem:[%s7033_s27 + $0x80] sm:$0xff]  ;;  %p6828_p3 = pnand %p6827_p2, %p6821_p13 }
  0x2c   : > { %6203 = vmatmul.mubr.msk.f32.gmra.mrb[2].mxu1 %vm597_vm0, %v564_v22  ;;  %v571_v40 = vld [vmem:[%s7033_s27 + $0x170] sm:$0xff]  ;;  %v542_v41 = vld [vmem:[%s7033_s27 + $0x88] sm:$0xff]  ;;  %v572_v42 = vld [vmem:[%s7033_s27 + $0x178] sm:$0xff] }
  0x2d   : > { %6152 = vmatmul.mubr.msk.f32.gmra.mrb[4].mxu0 %vm597_vm0, %v530_v9  ;;  %6205 = vmatprep.mubr.msk.f32.mxu1 %vm597_vm0, %v565_v24  ;;  %v543_v43 = vld [vmem:[%s7033_s27 + $0x90] sm:$0xff]  ;;  %v573_v44 = vld [vmem:[%s7033_s27 + $0x180] sm:$0xff]  ;;  %v544_v45 = vld [vmem:[%s7033_s27 + $0x98] sm:$0xff] }
  0x2e   : > { %6154 = vmatprep.mubr.msk.f32.mxu0 %vm597_vm0, %v531_v10  ;;  %6716 = vmatpush3.bf16.msra.mxu1 %v6713_v18  ;;  %v574_v46 = vld [vmem:[%s7033_s27 + $0x188] sm:$0xff]  ;;  %v545_v47 = vld [vmem:[%s7033_s27 + $0xa0] sm:$0xff]  ;;  %v575_v48 = vld [vmem:[%s7033_s27 + $0x190] sm:$0xff] }
  0x2f   : > { %6718 = vmatprep.subr.bf16.mxu1 %v6717_v25  ;;  %v546_v49 = vld [vmem:[%s7033_s27 + $0xa8] sm:$0xff]  ;;  %v576_v50 = vld [vmem:[%s7033_s27 + $0x198] sm:$0xff]  ;;  %v547_v51 = vld [vmem:[%s7033_s27 + $0xb0] sm:$0xff] }
  0x30   : > { %6206 = vmatmul.mubr.msk.f32.gmra.mrb[4].mxu1 %vm597_vm0, %v566_v29  ;;  %v577_v52 = vld [vmem:[%s7033_s27 + $0x1a0] sm:$0xff]  ;;  %v548_v53 = vld [vmem:[%s7033_s27 + $0xb8] sm:$0xff]  ;;  %v578_v54 = vld [vmem:[%s7033_s27 + $0x1a8] sm:$0xff] }
  0x31   : > { %6155 = vmatmul.mubr.msk.f32.gmra.mrb[6].mxu0 %vm597_vm0, %v532_v13  ;;  %6208 = vmatprep.mubr.msk.f32.mxu1 %vm597_vm0, %v567_v31  ;;  %v549_v55 = vld [vmem:[%s7033_s27 + $0xc0] sm:$0xff]  ;;  %v579_v56 = vld [vmem:[%s7033_s27 + $0x1b0] sm:$0xff]  ;;  %v550_v57 = vld [vmem:[%s7033_s27 + $0xc8] sm:$0xff] }
  0x32   : > { %6157 = vmatprep.mubr.msk.f32.mxu0 %vm597_vm0, %v533_v14  ;;  %6720 = vmatpush3.bf16.msra.mxu1 %v6717_v25  ;;  %v580_v58 = vld [vmem:[%s7033_s27 + $0x1b8] sm:$0xff]  ;;  %v551_v59 = vld [vmem:[%s7033_s27 + $0xd0] sm:$0xff]  ;;  %v581_v60 = vld [vmem:[%s7033_s27 + $0x1c0] sm:$0xff] }
  0x33   : > { %6722 = vmatprep.subr.bf16.mxu1 %v6721_v32  ;;  %v552_v61 = vld [vmem:[%s7033_s27 + $0xd8] sm:$0xff]  ;;  %v582_v62 = vld [vmem:[%s7033_s27 + $0x1c8] sm:$0xff]  ;;  %v553_v63 = vld [vmem:[%s7033_s27 + $0xe0] sm:$0xff] }
  0x34   : > { %6209 = vmatmul.mubr.msk.f32.gmra.mrb[6].mxu1 %vm597_vm0, %v568_v34  ;;  %v583_v0 = vld [vmem:[%s7033_s27 + $0x1d0] sm:$0xff]  ;;  %v554_v1 = vld [vmem:[%s7033_s27 + $0xe8] sm:$0xff]  ;;  %v584_v2 = vld [vmem:[%s7033_s27 + $0x1d8] sm:$0xff] }
  0x35   : > { %6158 = vmatmul.mubr.msk.f32.gmra.mrb[8].mxu0 %vm597_vm0, %v534_v21  ;;  %6211 = vmatprep.mubr.msk.f32.mxu1 %vm597_vm0, %v569_v36  ;;  %v555_v3 = vld [vmem:[%s7033_s27 + $0xf0] sm:$0xff]  ;;  %v585_v4 = vld [vmem:[%s7033_s27 + $0x1e0] sm:$0xff]  ;;  %v556_v5 = vld [vmem:[%s7033_s27 + $0xf8] sm:$0xff] }
  0x36   : > { %6160 = vmatprep.mubr.msk.f32.mxu0 %vm597_vm0, %v535_v23  ;;  %6724 = vmatpush3.bf16.msra.mxu1 %v6721_v32  ;;  %v586_v6 = vld [vmem:[%s7033_s27 + $0x1e8] sm:$0xff]  ;;  %v557_v7 = vld [vmem:[%s7033_s27 + $0x100] sm:$0xff]  ;;  %v587_v8 = vld [vmem:[%s7033_s27 + $0x1f0] sm:$0xff] }
  0x37   : > { %v558_v9 = vld [vmem:[%s7033_s27 + $0x108] sm:$0xff]  ;;  %v588_v10 = vld [vmem:[%s7033_s27 + $0x1f8] sm:$0xff]  ;;  %v559_v11 = vld [vmem:[%s7033_s27 + $0x110] sm:$0xff] }
  0x38   : > { %6212 = vmatmul.mubr.msk.f32.gmra.mrb[8].mxu1 %vm597_vm0, %v570_v38  ;;  %v560_v12 = vld [vmem:[%s7033_s27 + $0x118] sm:$0xff]  ;;  %v7184_v13 = vld [vmem:[%s9858_s2] ss:$0 sm:$0xff]  ;;  %s9724_s27 = scalar_lea.hbm %s9782_s16, %s5778_s20  ;;  %s5367_s2 = scalar_lea.sflag [#allocation3], %s515_s19 }
  0x39   : > { %6161 = vmatmul.mubr.msk.f32.gmra.mrb[10].mxu0 %vm597_vm0, %v536_v28  ;;  %6214 = vmatprep.mubr.msk.f32.mxu1 %vm597_vm0, %v571_v40  ;;  %v2065_v18 = vld [vmem:[%s9771_s5] sm:$0xff] }
  0x3a   : > { %6163 = vmatprep.mubr.msk.f32.mxu0 %vm597_vm0, %v537_v30  ;;  %v6725_v22 = vpack.c.bf16 %v2066_v19, %v2065_v18 }
  0x3c   : > { %6215 = vmatmul.mubr.msk.f32.gmra.mrb[10].mxu1 %vm597_vm0, %v572_v42  ;;  %6726 = vmatprep.subr.bf16.mxu0 %v6725_v22 }
  0x3d   : > { %6164 = vmatmul.mubr.msk.f32.gmra.mrb[12].mxu0 %vm597_vm0, %v538_v33  ;;  %6217 = vmatprep.mubr.msk.f32.mxu1 %vm597_vm0, %v573_v44 }
  0x3e   : > { %6166 = vmatprep.mubr.msk.f32.mxu0 %vm597_vm0, %v539_v35  ;;  %6728 = vmatpush3.bf16.msra.mxu0 %v6725_v22 }
  0x40   : > { %6218 = vmatmul.mubr.msk.f32.gmra.mrb[12].mxu1 %vm597_vm0, %v574_v46 }
  0x41   : > { %6167 = vmatmul.mubr.msk.f32.gmra.mrb[14].mxu0 %vm597_vm0, %v540_v37  ;;  %6220 = vmatprep.mubr.msk.f32.mxu1 %vm597_vm0, %v575_v48 }
  0x42   : > { %6169 = vmatprep.mubr.msk.f32.mxu0 %vm597_vm0, %v541_v39 }
  0x44   : > { %6221 = vmatmul.mubr.msk.f32.gmra.mrb[14].mxu1 %vm597_vm0, %v576_v50 }
  0x45   : > { %6170 = vmatmul.mubr.msk.f32.gmra.mrb[16].mxu0 %vm597_vm0, %v542_v41  ;;  %6223 = vmatprep.mubr.msk.f32.mxu1 %vm597_vm0, %v577_v52 }
  0x46   : > { %6172 = vmatprep.mubr.msk.f32.mxu0 %vm597_vm0, %v543_v43 }
  0x48   : > { %6224 = vmatmul.mubr.msk.f32.gmra.mrb[16].mxu1 %vm597_vm0, %v578_v54 }
  0x49   : > { %6173 = vmatmul.mubr.msk.f32.gmra.mrb[18].mxu0 %vm597_vm0, %v544_v45  ;;  %6226 = vmatprep.mubr.msk.f32.mxu1 %vm597_vm0, %v579_v56 }
  0x4a   : > { %6175 = vmatprep.mubr.msk.f32.mxu0 %vm597_vm0, %v545_v47 }
  0x4c   : > { %6227 = vmatmul.mubr.msk.f32.gmra.mrb[18].mxu1 %vm597_vm0, %v580_v58 }
  0x4d   : > { %6176 = vmatmul.mubr.msk.f32.gmra.mrb[20].mxu0 %vm597_vm0, %v546_v49  ;;  %6229 = vmatprep.mubr.msk.f32.mxu1 %vm597_vm0, %v581_v60 }
  0x4e   : > { %6178 = vmatprep.mubr.msk.f32.mxu0 %vm597_vm0, %v547_v51 }
  0x50   : > { %6230 = vmatmul.mubr.msk.f32.gmra.mrb[20].mxu1 %vm597_vm0, %v582_v62 }
  0x51   : > { %6179 = vmatmul.mubr.msk.f32.gmra.mrb[22].mxu0 %vm597_vm0, %v548_v53  ;;  %6232 = vmatprep.mubr.msk.f32.mxu1 %vm597_vm0, %v583_v0 }
  0x52   : > { %6181 = vmatprep.mubr.msk.f32.mxu0 %vm597_vm0, %v549_v55 }
  0x54   : > { %6233 = vmatmul.mubr.msk.f32.gmra.mrb[22].mxu1 %vm597_vm0, %v584_v2 }
  0x55   : > { %6182 = vmatmul.mubr.msk.f32.gmra.mrb[24].mxu0 %vm597_vm0, %v550_v57  ;;  %6235 = vmatprep.mubr.msk.f32.mxu1 %vm597_vm0, %v585_v4 }
  0x56   : > { %6184 = vmatprep.mubr.msk.f32.mxu0 %vm597_vm0, %v551_v59 }
  0x58   : > { %6236 = vmatmul.mubr.msk.f32.gmra.mrb[24].mxu1 %vm597_vm0, %v586_v6 }
  0x59   : > { %6185 = vmatmul.mubr.msk.f32.gmra.mrb[26].mxu0 %vm597_vm0, %v552_v61  ;;  %6238 = vmatprep.mubr.msk.f32.mxu1 %vm597_vm0, %v587_v8 }
  0x5a   : > { %6187 = vmatprep.mubr.msk.f32.mxu0 %vm597_vm0, %v553_v63 }
  0x5c   : > { %6239 = vmatmul.mubr.msk.f32.gmra.mrb[26].mxu1 %vm597_vm0, %v588_v10 }
  0x5d   : > { %6188 = vmatmul.mubr.msk.f32.gmra.mrb[28].mxu0 %vm597_vm0, %v554_v1 }
  0x5e   : > { %6190 = vmatprep.mubr.msk.f32.mxu0 %vm597_vm0, %v555_v3 }
  0x61   : > { %6191 = vmatmul.mubr.msk.f32.gmra.mrb[30].mxu0 %vm597_vm0, %v556_v5 }
  0x62   : > { %6193 = vmatprep.mubr.msk.f32.mxu0 %vm597_vm0, %v557_v7 }
  0x65   : > { %6194 = vmatmul.mubr.msk.f32.gmra.mrb[32].mxu0 %vm597_vm0, %v558_v9 }
  0x66   : > { %6196 = vmatprep.mubr.msk.f32.mxu0 %vm597_vm0, %v559_v11 }
  0x69   : > { %6197 = vmatmul.mubr.msk.f32.gmra.mrb[34].mxu0 %vm597_vm0, %v560_v12 }
  0xf8   : > { %v6147_v14 = vpop.f32.mrb[0].mxu0 }
  0xf9   : > { %v862_v15 = vadd.f32 %v6147_v14, %v7184_v13  ;;  %v856_v16 = vpop.f32.mrb[1].mxu0 }
  0xfa   : > { %v857_v17 = vadd.f32 %v7184_v13, %v856_v16 }
  0xfb   : > { %v1176_v23 = vmax.f32 %v862_v15, 0.0  ;;  %v7202_v35 = vpop.f32.mrb[0].mxu1 }
  0xfc   : > { %v1175_v20 = vmax.f32 %v857_v17, 0.0  ;;  %v6150_v21 = vpop.f32.mrb[2].mxu0  ;;  %v7205_v39 = vpop.f32.mrb[1].mxu1 }
  0xfd   : > { %v872_v24 = vadd.f32 %v6150_v21, %v7184_v13  ;;  %v866_v25 = vpop.f32.mrb[3].mxu0 }
  0xfe   : > { %v867_v26 = vadd.f32 %v7184_v13, %v866_v25  ;;  %6257 = vmatprep.mubr.msk.f32.mxu1 %vm1254_vm1, %v1175_v20 }
  0xff   : > { %6258 = vmatmul.mubr.msk.f32.vlgmr.msra.gmra.mrb[28].mxu1 %vm1254_vm1, %v1176_v23  ;;  %v1178_v29 = vmax.f32 %v872_v24, 0.0  ;;  %v7210_v43 = vpop.f32.mrb[2].mxu1 }
 0x100   : > { %v1177_v27 = vmax.f32 %v867_v26, 0.0  ;;  %v6153_v28 = vpop.f32.mrb[4].mxu0  ;;  %v7213_v47 = vpop.f32.mrb[3].mxu1 }
 0x101   : > { %v882_v30 = vadd.f32 %v6153_v28, %v7184_v13  ;;  %v876_v31 = vpop.f32.mrb[5].mxu0 }
 0x102   : > { %v877_v32 = vadd.f32 %v7184_v13, %v876_v31  ;;  %6260 = vmatprep.mubr.msk.f32.mxu1 %vm1254_vm1, %v1177_v27 }
 0x103   : > { %6261 = vmatmul.mubr.msk.f32.gmra.mrb[30].mxu1 %vm1254_vm1, %v1178_v29  ;;  %v1180_v36 = vmax.f32 %v882_v30, 0.0  ;;  %v7218_v51 = vpop.f32.mrb[4].mxu1 }
 0x104   : > { %v1179_v33 = vmax.f32 %v877_v32, 0.0  ;;  %v6156_v34 = vpop.f32.mrb[6].mxu0  ;;  %v7221_v55 = vpop.f32.mrb[5].mxu1 }
 0x105   : > { %v892_v37 = vadd.f32 %v6156_v34, %v7184_v13  ;;  %v886_v38 = vpop.f32.mrb[7].mxu0 }
 0x106   : > { %v887_v40 = vadd.f32 %v7184_v13, %v886_v38  ;;  %6263 = vmatprep.mubr.msk.f32.mxu1 %vm1254_vm1, %v1179_v33 }
 0x107   : > { %6264 = vmatmul.mubr.msk.f32.gmra.mrb[32].mxu1 %vm1254_vm1, %v1180_v36  ;;  %v1182_v44 = vmax.f32 %v892_v37, 0.0  ;;  %v7226_v59 = vpop.f32.mrb[6].mxu1 }
 0x108   : > { %v1181_v41 = vmax.f32 %v887_v40, 0.0  ;;  %v6159_v42 = vpop.f32.mrb[8].mxu0  ;;  %v7229_v63 = vpop.f32.mrb[7].mxu1 }
 0x109   : > { %v902_v45 = vadd.f32 %v6159_v42, %v7184_v13  ;;  %v896_v46 = vpop.f32.mrb[9].mxu0 }
 0x10a   : > { %v897_v48 = vadd.f32 %v7184_v13, %v896_v46  ;;  %6266 = vmatprep.mubr.msk.f32.mxu1 %vm1254_vm1, %v1181_v41 }
 0x10b   : > { %6267 = vmatmul.mubr.msk.f32.gmra.mrb[34].mxu1 %vm1254_vm1, %v1182_v44  ;;  %v1184_v52 = vmax.f32 %v902_v45, 0.0  ;;  %v7234_v3 = vpop.f32.mrb[8].mxu1 }
 0x10c   : > { %v1183_v49 = vmax.f32 %v897_v48, 0.0  ;;  %v6162_v50 = vpop.f32.mrb[10].mxu0  ;;  %v7237_v7 = vpop.f32.mrb[9].mxu1 }
 0x10d   : > { %v912_v53 = vadd.f32 %v6162_v50, %v7184_v13  ;;  %v906_v54 = vpop.f32.mrb[11].mxu0 }
 0x10e   : > { %v907_v56 = vadd.f32 %v7184_v13, %v906_v54  ;;  %6269 = vmatprep.mubr.msk.f32.mxu1 %vm1254_vm1, %v1183_v49 }
 0x10f   : > { %6270 = vmatmul.mubr.msk.f32.gmra.mrb[36].mxu1 %vm1254_vm1, %v1184_v52  ;;  %v1186_v60 = vmax.f32 %v912_v53, 0.0  ;;  %v7242_v11 = vpop.f32.mrb[10].mxu1 }
 0x110   : > { %v1185_v57 = vmax.f32 %v907_v56, 0.0  ;;  %v6165_v58 = vpop.f32.mrb[12].mxu0  ;;  %v7245_v16 = vpop.f32.mrb[11].mxu1 }
 0x111   : > { %v922_v61 = vadd.f32 %v6165_v58, %v7184_v13  ;;  %v916_v62 = vpop.f32.mrb[13].mxu0 }
 0x112   : > { %v917_v0 = vadd.f32 %v7184_v13, %v916_v62  ;;  %6272 = vmatprep.mubr.msk.f32.mxu1 %vm1254_vm1, %v1185_v57 }
 0x113   : > { %6273 = vmatmul.mubr.msk.f32.gmra.mrb[38].mxu1 %vm1254_vm1, %v1186_v60  ;;  %v1188_v4 = vmax.f32 %v922_v61, 0.0  ;;  %v7250_v20 = vpop.f32.mrb[12].mxu1 }
 0x114   : > { %v1187_v1 = vmax.f32 %v917_v0, 0.0  ;;  %v6168_v2 = vpop.f32.mrb[14].mxu0  ;;  %v7253_v24 = vpop.f32.mrb[13].mxu1 }
 0x115   : > { %v932_v5 = vadd.f32 %v6168_v2, %v7184_v13  ;;  %v926_v6 = vpop.f32.mrb[15].mxu0 }
 0x116   : > { %v927_v8 = vadd.f32 %v7184_v13, %v926_v6  ;;  %6275 = vmatprep.mubr.msk.f32.mxu1 %vm1254_vm1, %v1187_v1 }
 0x117   : > { %6276 = vmatmul.mubr.msk.f32.gmra.mrb[40].mxu1 %vm1254_vm1, %v1188_v4  ;;  %v1190_v12 = vmax.f32 %v932_v5, 0.0  ;;  %v7258_v28 = vpop.f32.mrb[14].mxu1 }
 0x118   : > { %v1189_v9 = vmax.f32 %v927_v8, 0.0  ;;  %v6171_v10 = vpop.f32.mrb[16].mxu0  ;;  %v7261_v32 = vpop.f32.mrb[15].mxu1 }
 0x119   : > { %v942_v14 = vadd.f32 %v6171_v10, %v7184_v13  ;;  %v936_v15 = vpop.f32.mrb[17].mxu0 }
 0x11a   : > { %v937_v17 = vadd.f32 %v7184_v13, %v936_v15  ;;  %6278 = vmatprep.mubr.msk.f32.mxu1 %vm1254_vm1, %v1189_v9 }
 0x11b   : > { %6279 = vmatmul.mubr.msk.f32.gmra.mrb[42].mxu1 %vm1254_vm1, %v1190_v12  ;;  %v1192_v21 = vmax.f32 %v942_v14, 0.0  ;;  %v7266_v37 = vpop.f32.mrb[16].mxu1 }
 0x11c   : > { %v1191_v18 = vmax.f32 %v937_v17, 0.0  ;;  %v6174_v19 = vpop.f32.mrb[18].mxu0  ;;  %v7269_v42 = vpop.f32.mrb[17].mxu1 }
 0x11d   : > { %v952_v22 = vadd.f32 %v6174_v19, %v7184_v13  ;;  %v946_v23 = vpop.f32.mrb[19].mxu0 }
 0x11e   : > { %v947_v25 = vadd.f32 %v7184_v13, %v946_v23  ;;  %6281 = vmatprep.mubr.msk.f32.mxu1 %vm1254_vm1, %v1191_v18 }
 0x11f   : > { %6282 = vmatmul.mubr.msk.f32.gmra.mrb[44].mxu1 %vm1254_vm1, %v1192_v21  ;;  %v1194_v29 = vmax.f32 %v952_v22, 0.0  ;;  %v7274_v48 = vpop.f32.mrb[18].mxu1 }
 0x120   : > { %v1193_v26 = vmax.f32 %v947_v25, 0.0  ;;  %v6177_v27 = vpop.f32.mrb[20].mxu0  ;;  %v7277_v53 = vpop.f32.mrb[19].mxu1 }
 0x121   : > { %v962_v30 = vadd.f32 %v6177_v27, %v7184_v13  ;;  %v956_v31 = vpop.f32.mrb[21].mxu0 }
 0x122   : > { %v957_v33 = vadd.f32 %v7184_v13, %v956_v31  ;;  %6284 = vmatprep.mubr.msk.f32.mxu1 %vm1254_vm1, %v1193_v26 }
 0x123   : > { %6285 = vmatmul.mubr.msk.f32.gmra.mrb[46].mxu1 %vm1254_vm1, %v1194_v29  ;;  %v1196_v38 = vmax.f32 %v962_v30, 0.0  ;;  %v7282_v58 = vpop.f32.mrb[20].mxu1 }
 0x124   : > { %v1195_v34 = vmax.f32 %v957_v33, 0.0  ;;  %v6180_v36 = vpop.f32.mrb[22].mxu0  ;;  %v7285_v0 = vpop.f32.mrb[21].mxu1 }
 0x125   : > { %v972_v40 = vadd.f32 %v6180_v36, %v7184_v13  ;;  %v966_v41 = vpop.f32.mrb[23].mxu0 }
 0x126   : > { %v967_v44 = vadd.f32 %v7184_v13, %v966_v41  ;;  %6287 = vmatprep.mubr.msk.f32.mxu1 %vm1254_vm1, %v1195_v34 }
 0x127   : > { %6288 = vmatmul.mubr.msk.f32.gmra.mrb[48].mxu1 %vm1254_vm1, %v1196_v38  ;;  %v1198_v49 = vmax.f32 %v972_v40, 0.0  ;;  %v7290_v5 = vpop.f32.mrb[22].mxu1  ;;  %v1037_v40 = vadd.f32 %v7184_v13, %v7205_v39 }
 0x128   : > { %v1197_v45 = vmax.f32 %v967_v44, 0.0  ;;  %v6183_v46 = vpop.f32.mrb[24].mxu0  ;;  %v7293_v10 = vpop.f32.mrb[23].mxu1 }
 0x129   : > { %v982_v50 = vadd.f32 %v6183_v46, %v7184_v13  ;;  %v976_v52 = vpop.f32.mrb[25].mxu0 }
 0x12a   : > { %v977_v54 = vadd.f32 %v7184_v13, %v976_v52  ;;  %6290 = vmatprep.mubr.msk.f32.mxu1 %vm1254_vm1, %v1197_v45  ;;  %v1047_v52 = vadd.f32 %v7184_v13, %v7213_v47 }
 0x12b   : > { %6291 = vmatmul.mubr.msk.f32.gmra.mrb[50].mxu1 %vm1254_vm1, %v1198_v49  ;;  %v1200_v60 = vmax.f32 %v982_v50, 0.0  ;;  %v7298_v17 = vpop.f32.mrb[24].mxu1  ;;  %v1211_v50 = vmax.f32 %v1037_v40, 0.0  ;;  %v1152_v40 = vadd.f32 %v7290_v5, %v7184_v13  ;;  %v2647_v5 = vld [vmem:[%s9772_s6 + $0x8] sm:$0xff] }
 0x12c   : > { %v1199_v56 = vmax.f32 %v977_v54, 0.0  ;;  %v6186_v57 = vpop.f32.mrb[26].mxu0  ;;  %v7301_v22 = vpop.f32.mrb[25].mxu1  ;;  %v1213_v39 = vmax.f32 %v1047_v52, 0.0  ;;  %v2648_v52 = vld [vmem:[%s9772_s6 + $0x10] sm:$0xff] }
 0x12d   : > { %v992_v61 = vadd.f32 %v6186_v57, %v7184_v13  ;;  %v986_v62 = vpop.f32.mrb[27].mxu0  ;;  %v1057_v57 = vadd.f32 %v7184_v13, %v7221_v55 }
 0x12e   : > { %v987_v1 = vadd.f32 %v7184_v13, %v986_v62  ;;  %6293 = vmatprep.mubr.msk.f32.mxu1 %vm1254_vm1, %v1199_v56  ;;  %v1042_v56 = vadd.f32 %v7202_v35, %v7184_v13  ;;  %v1067_v35 = vadd.f32 %v7184_v13, %v7229_v63 }
 0x12f   : > { %6294 = vmatmul.mubr.msk.f32.gmra.mrb[52].mxu1 %vm1254_vm1, %v1200_v60  ;;  %v1202_v6 = vmax.f32 %v992_v61, 0.0  ;;  %v7306_v27 = vpop.f32.mrb[26].mxu1  ;;  %v1052_v61 = vadd.f32 %v7210_v43, %v7184_v13  ;;  %v1215_v47 = vmax.f32 %v1057_v57, 0.0  ;;  %v1077_v43 = vadd.f32 %v7184_v13, %v7237_v7  ;;  %v2067_v7 = vld [vmem:[%s9771_s5 + $0x10] sm:$0xff] }
 0x130   : > { %v1201_v2 = vmax.f32 %v987_v1, 0.0  ;;  %v6189_v4 = vpop.f32.mrb[28].mxu0  ;;  %v7309_v33 = vpop.f32.mrb[27].mxu1  ;;  %v1212_v60 = vmax.f32 %v1042_v56, 0.0  ;;  %v1062_v1 = vadd.f32 %v7218_v51, %v7184_v13  ;;  %v1087_v51 = vadd.f32 %v7184_v13, %v7245_v16 }
 0x131   : > { %v1002_v8 = vadd.f32 %v6189_v4, %v7184_v13  ;;  %v996_v9 = vpop.f32.mrb[29].mxu0  ;;  %v1214_v62 = vmax.f32 %v1052_v61, 0.0  ;;  %v1072_v4 = vadd.f32 %v7226_v59, %v7184_v13  ;;  %v2068_v59 = vld [vmem:[%s9771_s5 + $0x18] sm:$0xff]  ;;  %v1097_v16 = vadd.f32 %v7184_v13, %v7253_v24 }
 0x132   : > { %v997_v12 = vadd.f32 %v7184_v13, %v996_v9  ;;  %6296 = vmatprep.mubr.msk.f32.mxu1 %vm1254_vm1, %v1201_v2  ;;  %v1217_v2 = vmax.f32 %v1067_v35, 0.0  ;;  %v1216_v55 = vmax.f32 %v1062_v1, 0.0  ;;  %v6729_v9 = vpack.c.bf16 %v2068_v59, %v2067_v7 }
 0x133   : > { %6297 = vmatmul.mubr.msk.f32.gmra.mrb[54].mxu1 %vm1254_vm1, %v1202_v6  ;;  %v1204_v18 = vmax.f32 %v1002_v8, 0.0  ;;  %v1219_v6 = vmax.f32 %v1077_v43, 0.0  ;;  %v1218_v63 = vmax.f32 %v1072_v4, 0.0  ;;  %v1082_v8 = vadd.f32 %v7234_v3, %v7184_v13 }
 0x134   : > { %v1203_v14 = vmax.f32 %v997_v12, 0.0  ;;  %v6192_v15 = vpop.f32.mrb[30].mxu0  ;;  %v1221_v12 = vmax.f32 %v1087_v51, 0.0  ;;  %v1092_v3 = vadd.f32 %v7242_v11, %v7184_v13  ;;  %6730 = vmatprep.subr.bf16.mxu0 %v6729_v9  ;;  %v1117_v11 = vadd.f32 %v7184_v13, %v7269_v42 }
 0x135   : > { %v1012_v19 = vadd.f32 %v6192_v15, %v7184_v13  ;;  %v1006_v21 = vpop.f32.mrb[31].mxu0  ;;  %6732 = vmatpush3.bf16.msra.mxu0 %v6729_v9  ;;  %v1223_v15 = vmax.f32 %v1097_v16, 0.0 }
 0x136   : > { %v1007_v23 = vadd.f32 %v7184_v13, %v1006_v21  ;;  %6299 = vmatprep.mubr.msk.f32.mxu1 %vm1254_vm1, %v1203_v14  ;;  %v1220_v14 = vmax.f32 %v1082_v8, 0.0  ;;  %v1102_v21 = vadd.f32 %v7250_v20, %v7184_v13  ;;  %v1127_v20 = vadd.f32 %v7184_v13, %v7277_v53 }
 0x137   : > { %6300 = vmatmul.mubr.msk.f32.gmra.mrb[56].mxu1 %vm1254_vm1, %v1204_v18  ;;  %v1206_v29 = vmax.f32 %v1012_v19, 0.0  ;;  %v1107_v18 = vadd.f32 %v7184_v13, %v7261_v32  ;;  %v1222_v19 = vmax.f32 %v1092_v3, 0.0 }
 0x138   : > { %v1205_v25 = vmax.f32 %v1007_v23, 0.0  ;;  %v6195_v26 = vpop.f32.mrb[32].mxu0  ;;  %v1224_v23 = vmax.f32 %v1102_v21, 0.0 }
 0x139   : > { %v1022_v30 = vadd.f32 %v6195_v26, %v7184_v13  ;;  %v1016_v31 = vpop.f32.mrb[33].mxu0  ;;  %v1225_v24 = vmax.f32 %v1107_v18, 0.0  ;;  %v1227_v26 = vmax.f32 %v1117_v11, 0.0 }
 0x13a   : > { %v1017_v34 = vadd.f32 %v7184_v13, %v1016_v31  ;;  %6302 = vmatprep.mubr.msk.f32.mxu1 %vm1254_vm1, %v1205_v25  ;;  %v1112_v25 = vadd.f32 %v7258_v28, %v7184_v13  ;;  %v1137_v28 = vadd.f32 %v7184_v13, %v7285_v0  ;;  %v1132_v31 = vadd.f32 %v7274_v48, %v7184_v13 }
 0x13b   : > { %6303 = vmatmul.mubr.msk.f32.gmra.mrb[58].mxu1 %vm1254_vm1, %v1206_v29  ;;  %v1208_v41 = vmax.f32 %v1022_v30, 0.0  ;;  %v1122_v29 = vadd.f32 %v7266_v37, %v7184_v13  ;;  %v1229_v30 = vmax.f32 %v1127_v20, 0.0  ;;  %v1147_v37 = vadd.f32 %v7184_v13, %v7293_v10 }
 0x13c   : > { %v1207_v36 = vmax.f32 %v1017_v34, 0.0  ;;  %v6198_v38 = vpop.f32.mrb[34].mxu0  ;;  %v1226_v32 = vmax.f32 %v1112_v25, 0.0  ;;  %v1231_v34 = vmax.f32 %v1137_v28, 0.0  ;;  %v1230_v53 = vmax.f32 %v1132_v31, 0.0 }
 0x13d   : > { %v1032_v44 = vadd.f32 %v6198_v38, %v7184_v13  ;;  %v1026_v45 = vpop.f32.mrb[35].mxu0  ;;  %v1228_v42 = vmax.f32 %v1122_v29, 0.0  ;;  %v1233_v38 = vmax.f32 %v1147_v37, 0.0  ;;  %v1157_v48 = vadd.f32 %v7184_v13, %v7301_v22  ;;  %v2646_v22 = vld [vmem:[%s9772_s6] sm:$0xff] }
 0x13e   : > { %v1027_v46 = vadd.f32 %v7184_v13, %v1026_v45  ;;  %6305 = vmatprep.mubr.msk.f32.mxu1 %vm1254_vm1, %v1207_v36  ;;  %v1142_v36 = vadd.f32 %v7282_v58, %v7184_v13  ;;  %v1167_v58 = vadd.f32 %v7184_v13, %v7309_v33  ;;  %v1234_v10 = vmax.f32 %v1152_v40, 0.0 }
 0x13f   : > { %6306 = vmatmul.mubr.msk.f32.gmra.mrb[60].mxu1 %vm1254_vm1, %v1208_v41  ;;  %v1210_v54 = vmax.f32 %v1032_v44, 0.0  ;;  %v1235_v41 = vmax.f32 %v1157_v48, 0.0  ;;  %v1162_v44 = vadd.f32 %v7298_v17, %v7184_v13  ;;  %v6734_v33 = vpack.c.bf16 %v2647_v5, %v2646_v22 }
 0x140   : > { %v1209_v49 = vmax.f32 %v1027_v46, 0.0  ;;  %v1232_v0 = vmax.f32 %v1142_v36, 0.0  ;;  %v1237_v45 = vmax.f32 %v1167_v58, 0.0  ;;  %v9788_v46 = vmov 0.0|0.0  }
 0x141   : > { %6733 = vmatprep.subr.bf16.mxu1 %v9788_v46  ;;  %v1172_v17 = vadd.f32 %v7306_v27, %v7184_v13  ;;  %6747 = vmatprep.subr.bf16.mxu0 %v9788_v46  ;;  %v2649_v13 = vld [vmem:[%s9772_s6 + $0x18] sm:$0xff] }
 0x142   : > { %6308 = vmatprep.mubr.msk.f32.mxu1 %vm1254_vm1, %v1209_v49  ;;  %v1236_v49 = vmax.f32 %v1162_v44, 0.0  ;;  %6735 = vmatpush3.bf16.msra.mxu1 %v6734_v33  ;;  %v6737_v27 = vpack.c.bf16 %v2649_v13, %v2648_v52 }
 0x143   : > { %6309 = vmatmul.mubr.msk.f32.gmra.mrb[62].mxu1 %vm1254_vm1, %v1210_v54  ;;  %6736 = vmatprep.subr.bf16.mxu1 %v9788_v46  ;;  %v7428_v54 = vld [vmem:[%s9770_s4] ss:$0 sm:$0xff] }
 0x144   : > { %6311 = vmatprep.mubr.msk.f32.mxu1 %vm1254_vm1, %v1211_v50  ;;  %v1238_v50 = vmax.f32 %v1172_v17, 0.0 }
 0x146   : > { %6738 = vmatpush3.bf16.msra.mxu1 %v6737_v27 }
 0x147   : > { %6312 = vmatmul.mubr.msk.f32.gmra.mrb[64].mxu1 %vm1254_vm1, %v1212_v60 }
 0x148   : > { %6314 = vmatprep.mubr.msk.f32.mxu1 %vm1254_vm1, %v1213_v39 }
 0x14b   : > { %6315 = vmatmul.mubr.msk.f32.gmra.mrb[66].mxu1 %vm1254_vm1, %v1214_v62 }
 0x14c   : > { %6317 = vmatprep.mubr.msk.f32.mxu1 %vm1254_vm1, %v1215_v47 }
 0x14f   : > { %6318 = vmatmul.mubr.msk.f32.gmra.mrb[68].mxu1 %vm1254_vm1, %v1216_v55 }
 0x150   : > { %6320 = vmatprep.mubr.msk.f32.mxu1 %vm1254_vm1, %v1217_v2 }
 0x153   : > { %6321 = vmatmul.mubr.msk.f32.gmra.mrb[70].mxu1 %vm1254_vm1, %v1218_v63 }
 0x154   : > { %6323 = vmatprep.mubr.msk.f32.mxu1 %vm1254_vm1, %v1219_v6 }
 0x157   : > { %6324 = vmatmul.mubr.msk.f32.gmra.mrb[72].mxu1 %vm1254_vm1, %v1220_v14 }
 0x158   : > { %6326 = vmatprep.mubr.msk.f32.mxu1 %vm1254_vm1, %v1221_v12 }
 0x15b   : > { %6327 = vmatmul.mubr.msk.f32.gmra.mrb[74].mxu1 %vm1254_vm1, %v1222_v19 }
 0x15c   : > { %6329 = vmatprep.mubr.msk.f32.mxu1 %vm1254_vm1, %v1223_v15 }
 0x15f   : > { %6330 = vmatmul.mubr.msk.f32.gmra.mrb[76].mxu1 %vm1254_vm1, %v1224_v23 }
 0x160   : > { %6332 = vmatprep.mubr.msk.f32.mxu1 %vm1254_vm1, %v1225_v24 }
 0x163   : > { %6333 = vmatmul.mubr.msk.f32.gmra.mrb[78].mxu1 %vm1254_vm1, %v1226_v32 }
 0x164   : > { %6335 = vmatprep.mubr.msk.f32.mxu1 %vm1254_vm1, %v1227_v26 }
 0x167   : > { %6336 = vmatmul.mubr.msk.f32.gmra.mrb[80].mxu1 %vm1254_vm1, %v1228_v42 }
 0x168   : > { %6338 = vmatprep.mubr.msk.f32.mxu1 %vm1254_vm1, %v1229_v30 }
 0x16b   : > { %6339 = vmatmul.mubr.msk.f32.gmra.mrb[82].mxu1 %vm1254_vm1, %v1230_v53  ;;  %v9786_v53 = vmov 0.0  }
 0x16c   : > { %6341 = vmatprep.mubr.msk.f32.mxu1 %vm1254_vm1, %v1231_v34 }
 0x16f   : > { %6342 = vmatmul.mubr.msk.f32.gmra.mrb[84].mxu1 %vm1254_vm1, %v1232_v0 }
 0x170   : > { %6344 = vmatprep.mubr.msk.f32.mxu1 %vm1254_vm1, %v1233_v38 }
 0x173   : > { %6345 = vmatmul.mubr.msk.f32.gmra.mrb[86].mxu1 %vm1254_vm1, %v1234_v10 }
 0x174   : > { %6347 = vmatprep.mubr.msk.f32.mxu1 %vm1254_vm1, %v1235_v41 }
 0x177   : > { %6348 = vmatmul.mubr.msk.f32.gmra.mrb[88].mxu1 %vm1254_vm1, %v1236_v49 }
 0x178   : > { %6350 = vmatprep.mubr.msk.f32.mxu1 %vm1254_vm1, %v1237_v45 }
 0x17b   : > { %6351 = vmatmul.mubr.msk.f32.gmra.mrb[90].mxu1 %vm1254_vm1, %v1238_v50 }
 0x17c   : > { %6465 = vmatprep.mubr.msk.f32.mxu1 %vm6883_vm3, %v9786_v53 }
 0x1d2   : > { %v6259_v56 = vpop.f32.mrb[28].mxu1 }
 0x1d3   : > { %v1519_v39 = vadd.f32 %v6259_v56, %v7428_v54  ;;  %v1513_v57 = vpop.f32.mrb[29].mxu1 }
 0x1d4   : > { %v1514_v60 = vadd.f32 %v7428_v54, %v1513_v57 }
 0x1d5   : > { %v1833_v61 = vmax.f32 %v1519_v39, 0.0 }
 0x1d6   : > { %v1832_v47 = vmax.f32 %v1514_v60, 0.0  ;;  %v6262_v35 = vpop.f32.mrb[30].mxu1 }
 0x1d7   : > { %v1898_v62 = vsel %vm1896_vm2, %v1833_v61, -inf  ;;  %v1529_v1 = vadd.f32 %v6262_v35, %v7428_v54  ;;  %v1523_v2 = vpop.f32.mrb[31].mxu1 }
 0x1d8   : > { %v1897_v43 = vsel %vm1896_vm2, %v1832_v47, -inf  ;;  %v1524_v55 = vadd.f32 %v7428_v54, %v1523_v2  ;;  %6361 = vmatprep.mubr.msk.f32.mxu0 %vm1896_vm2, %v1832_v47 }
 0x1d9   : > { %v1899_v4 = vmax.f32 %v1897_v43, %v1898_v62  ;;  %6362 = vmatmul.mubr.msk.f32.vlgmr.msra.gmra.mrb[36].mxu0 %vm1896_vm2, %v1833_v61  ;;  %v1835_v6 = vmax.f32 %v1529_v1, 0.0 }
 0x1da   : > { %v1834_v51 = vmax.f32 %v1524_v55, 0.0  ;;  %v6265_v63 = vpop.f32.mrb[32].mxu1 }
 0x1db   : > { %v1539_v8 = vadd.f32 %v6265_v63, %v7428_v54  ;;  %v1533_v7 = vpop.f32.mrb[33].mxu1  ;;  %v1902_v16 = vsel %vm1896_vm2, %v1835_v6, -inf }
 0x1dc   : > { %v1900_v59 = vsel %vm1896_vm2, %v1834_v51, -inf  ;;  %v1534_v9 = vadd.f32 %v7428_v54, %v1533_v7  ;;  %6364 = vmatprep.mubr.msk.f32.mxu0 %vm1896_vm2, %v1834_v51 }
 0x1dd   : > { %v1901_v12 = vmax.f32 %v1899_v4, %v1900_v59  ;;  %6365 = vmatmul.mubr.msk.f32.gmra.mrb[38].mxu0 %vm1896_vm2, %v1835_v6  ;;  %v1837_v14 = vmax.f32 %v1539_v8, 0.0 }
 0x1de   : > { %v1836_v3 = vmax.f32 %v1534_v9, 0.0  ;;  %v6268_v15 = vpop.f32.mrb[34].mxu1 }
 0x1df   : > { %v1903_v18 = vmax.f32 %v1901_v12, %v1902_v16  ;;  %v1549_v19 = vadd.f32 %v6268_v15, %v7428_v54  ;;  %v1543_v21 = vpop.f32.mrb[35].mxu1  ;;  %v1906_v25 = vsel %vm1896_vm2, %v1837_v14, -inf }
 0x1e0   : > { %v1904_v24 = vsel %vm1896_vm2, %v1836_v3, -inf  ;;  %v1544_v11 = vadd.f32 %v7428_v54, %v1543_v21  ;;  %6367 = vmatprep.mubr.msk.f32.mxu0 %vm1896_vm2, %v1836_v3 }
 0x1e1   : > { %v1905_v23 = vmax.f32 %v1903_v18, %v1904_v24  ;;  %6368 = vmatmul.mubr.msk.f32.gmra.mrb[40].mxu0 %vm1896_vm2, %v1837_v14  ;;  %v1839_v26 = vmax.f32 %v1549_v19, 0.0 }
 0x1e2   : > { %v1838_v20 = vmax.f32 %v1544_v11, 0.0  ;;  %v6271_v32 = vpop.f32.mrb[36].mxu1 }
 0x1e3   : > { %v1907_v29 = vmax.f32 %v1905_v23, %v1906_v25  ;;  %v1559_v30 = vadd.f32 %v6271_v32, %v7428_v54  ;;  %v1553_v28 = vpop.f32.mrb[37].mxu1  ;;  %v1910_v36 = vsel %vm1896_vm2, %v1839_v26, -inf }
 0x1e4   : > { %v1908_v42 = vsel %vm1896_vm2, %v1838_v20, -inf  ;;  %v1554_v31 = vadd.f32 %v7428_v54, %v1553_v28  ;;  %6370 = vmatprep.mubr.msk.f32.mxu0 %vm1896_vm2, %v1838_v20 }
 0x1e5   : > { %v1909_v34 = vmax.f32 %v1907_v29, %v1908_v42  ;;  %v1841_v37 = vmax.f32 %v1559_v30, 0.0  ;;  %6371 = vmatmul.mubr.msk.f32.gmra.mrb[42].mxu0 %vm1896_vm2, %v1839_v26 }
 0x1e6   : > { %v1840_v38 = vmax.f32 %v1554_v31, 0.0  ;;  %v6274_v48 = vpop.f32.mrb[38].mxu1 }
 0x1e7   : > { %v1911_v0 = vmax.f32 %v1909_v34, %v1910_v36  ;;  %v1919_v40 = vsel %vm1896_vm2, %v1841_v37, -inf  ;;  %v1569_v41 = vadd.f32 %v6274_v48, %v7428_v54  ;;  %v1563_v58 = vpop.f32.mrb[39].mxu1 }
 0x1e8   : > { %v1918_v10 = vsel %vm1896_vm2, %v1840_v38, -inf  ;;  %v1564_v44 = vadd.f32 %v7428_v54, %v1563_v58  ;;  %6373 = vmatprep.mubr.msk.f32.mxu0 %vm1896_vm2, %v1840_v38 }
 0x1e9   : > { %v1920_v22 = vmax.f32 %v1918_v10, %v1919_v40  ;;  %6374 = vmatmul.mubr.msk.f32.gmra.mrb[44].mxu0 %vm1896_vm2, %v1841_v37  ;;  %v1843_v5 = vmax.f32 %v1569_v41, 0.0  ;;  %v1912_v60 = vrot.slane %v1911_v0, 4 }
 0x1ea   : > { %v1842_v45 = vmax.f32 %v1564_v44, 0.0  ;;  %v6277_v33 = vpop.f32.mrb[40].mxu1 }
 0x1eb   : > { %v1579_v49 = vadd.f32 %v6277_v33, %v7428_v54  ;;  %v1573_v17 = vpop.f32.mrb[41].mxu1  ;;  %v1923_v27 = vsel %vm1896_vm2, %v1843_v5, -inf  ;;  %v1913_v51 = vmax.f32 %v1911_v0, %v1912_v60 }
 0x1ec   : > { %v1921_v50 = vsel %vm1896_vm2, %v1842_v45, -inf  ;;  %v1574_v52 = vadd.f32 %v7428_v54, %v1573_v17  ;;  %6376 = vmatprep.mubr.msk.f32.mxu0 %vm1896_vm2, %v1842_v45 }
 0x1ed   : > { %v1922_v13 = vmax.f32 %v1920_v22, %v1921_v50  ;;  %6377 = vmatmul.mubr.msk.f32.gmra.mrb[46].mxu0 %vm1896_vm2, %v1843_v5  ;;  %v1845_v56 = vmax.f32 %v1579_v49, 0.0  ;;  %v1914_v18 = vrot.slane %v1913_v51, 2 }
 0x1ee   : > { %v1844_v39 = vmax.f32 %v1574_v52, 0.0  ;;  %v6280_v57 = vpop.f32.mrb[42].mxu1 }
 0x1ef   : > { %v1924_v61 = vmax.f32 %v1922_v13, %v1923_v27  ;;  %v1589_v47 = vadd.f32 %v6280_v57, %v7428_v54  ;;  %v1583_v35 = vpop.f32.mrb[43].mxu1  ;;  %v1927_v43 = vsel %vm1896_vm2, %v1845_v56, -inf  ;;  %v1915_v28 = vmax.f32 %v1913_v51, %v1914_v18 }
 0x1f0   : > { %v1925_v62 = vsel %vm1896_vm2, %v1844_v39, -inf  ;;  %v1584_v1 = vadd.f32 %v7428_v54, %v1583_v35  ;;  %6379 = vmatprep.mubr.msk.f32.mxu0 %vm1896_vm2, %v1844_v39 }
 0x1f1   : > { %v1926_v2 = vmax.f32 %v1924_v61, %v1925_v62  ;;  %6380 = vmatmul.mubr.msk.f32.gmra.mrb[48].mxu0 %vm1896_vm2, %v1845_v56  ;;  %v1847_v55 = vmax.f32 %v1589_v47, 0.0  ;;  %v1916_v10 = vrot.slane %v1915_v28, 1 }
 0x1f2   : > { %v1846_v4 = vmax.f32 %v1584_v1, 0.0  ;;  %v6283_v6 = vpop.f32.mrb[44].mxu1 }
 0x1f3   : > { %v1928_v63 = vmax.f32 %v1926_v2, %v1927_v43  ;;  %v1599_v8 = vadd.f32 %v6283_v6, %v7428_v54  ;;  %v1593_v7 = vpop.f32.mrb[45].mxu1  ;;  %v1931_v14 = vsel %vm1896_vm2, %v1847_v55, -inf  ;;  %v1917_v39 = vmax.f32 %v1915_v28, %v1916_v10 }
 0x1f4   : > { %v1929_v59 = vsel %vm1896_vm2, %v1846_v4, -inf  ;;  %v1594_v9 = vadd.f32 %v7428_v54, %v1593_v7  ;;  %6382 = vmatprep.mubr.msk.f32.mxu0 %vm1896_vm2, %v1846_v4 }
 0x1f5   : > { %v1930_v12 = vmax.f32 %v1928_v63, %v1929_v59  ;;  %v1849_v16 = vmax.f32 %v1599_v8, 0.0  ;;  %6383 = vmatmul.mubr.msk.f32.gmra.mrb[50].mxu0 %vm1896_vm2, %v1847_v55 }
 0x1f6   : > { %v1848_v3 = vmax.f32 %v1594_v9, 0.0  ;;  %v6286_v15 = vpop.f32.mrb[46].mxu1 }
 0x1f7   : > { %v1932_v19 = vmax.f32 %v1930_v12, %v1931_v14  ;;  %v1940_v21 = vsel %vm1896_vm2, %v1849_v16, -inf  ;;  %v1609_v24 = vadd.f32 %v6286_v15, %v7428_v54  ;;  %v1603_v11 = vpop.f32.mrb[47].mxu1 }
 0x1f8   : > { %v1939_v23 = vsel %vm1896_vm2, %v1848_v3, -inf  ;;  %v1604_v25 = vadd.f32 %v7428_v54, %v1603_v11  ;;  %6385 = vmatprep.mubr.msk.f32.mxu0 %vm1896_vm2, %v1848_v3 }
 0x1f9   : > { %v1933_v26 = vrot.slane %v1932_v19, 4  ;;  %v1941_v20 = vmax.f32 %v1939_v23, %v1940_v21  ;;  %6386 = vmatmul.mubr.msk.f32.gmra.mrb[52].mxu0 %vm1896_vm2, %v1849_v16  ;;  %v1851_v32 = vmax.f32 %v1609_v24, 0.0 }
 0x1fa   : > { %v1850_v29 = vmax.f32 %v1604_v25, 0.0  ;;  %v6289_v30 = vpop.f32.mrb[48].mxu1 }
 0x1fb   : > { %v1934_v42 = vmax.f32 %v1932_v19, %v1933_v26  ;;  %v1619_v31 = vadd.f32 %v6289_v30, %v7428_v54  ;;  %v1613_v34 = vpop.f32.mrb[49].mxu1  ;;  %v1944_v0 = vsel %vm1896_vm2, %v1851_v32, -inf }
 0x1fc   : > { %v1942_v37 = vsel %vm1896_vm2, %v1850_v29, -inf  ;;  %v1614_v36 = vadd.f32 %v7428_v54, %v1613_v34  ;;  %6388 = vmatprep.mubr.msk.f32.mxu0 %vm1896_vm2, %v1850_v29 }
 0x1fd   : > { %v1935_v38 = vrot.slane %v1934_v42, 2  ;;  %v1943_v48 = vmax.f32 %v1941_v20, %v1942_v37  ;;  %6389 = vmatmul.mubr.msk.f32.gmra.mrb[54].mxu0 %vm1896_vm2, %v1851_v32  ;;  %v1853_v40 = vmax.f32 %v1619_v31, 0.0 }
 0x1fe   : > { %v1852_v41 = vmax.f32 %v1614_v36, 0.0  ;;  %v6292_v58 = vpop.f32.mrb[50].mxu1 }
 0x1ff   : > { %v1936_v44 = vmax.f32 %v1934_v42, %v1935_v38  ;;  %v1945_v22 = vmax.f32 %v1943_v48, %v1944_v0  ;;  %v1629_v5 = vadd.f32 %v6292_v58, %v7428_v54  ;;  %v1623_v45 = vpop.f32.mrb[51].mxu1  ;;  %v1948_v52 = vsel %vm1896_vm2, %v1853_v40, -inf }
 0x200   : > { %v1946_v33 = vsel %vm1896_vm2, %v1852_v41, -inf  ;;  %v1624_v49 = vadd.f32 %v7428_v54, %v1623_v45  ;;  %6391 = vmatprep.mubr.msk.f32.mxu0 %vm1896_vm2, %v1852_v41 }
 0x201   : > { %v1937_v17 = vrot.slane %v1936_v44, 1  ;;  %v1947_v50 = vmax.f32 %v1945_v22, %v1946_v33  ;;  %6392 = vmatmul.mubr.msk.f32.gmra.mrb[56].mxu0 %vm1896_vm2, %v1853_v40  ;;  %v1855_v13 = vmax.f32 %v1629_v5, 0.0 }
 0x202   : > { %v1854_v27 = vmax.f32 %v1624_v49, 0.0  ;;  %v6295_v56 = vpop.f32.mrb[52].mxu1 }
 0x203   : > { %v1938_v57 = vmax.f32 %v1936_v44, %v1937_v17  ;;  %v1949_v60 = vmax.f32 %v1947_v50, %v1948_v52  ;;  %v1639_v61 = vadd.f32 %v6295_v56, %v7428_v54  ;;  %v1633_v47 = vpop.f32.mrb[53].mxu1  ;;  %v1952_v55 = vsel %vm1896_vm2, %v1855_v13, -inf }
 0x204   : > { %v1950_v35 = vsel %vm1896_vm2, %v1854_v27, -inf  ;;  %v1634_v62 = vadd.f32 %v7428_v54, %v1633_v47  ;;  %6394 = vmatprep.mubr.msk.f32.mxu0 %vm1896_vm2, %v1854_v27 }
 0x205   : > { %v2666_v1 = vsel %vm2665_vm4, %v1938_v57, %v1917_v39  ;;  %v1951_v2 = vmax.f32 %v1949_v60, %v1950_v35  ;;  %v1857_v43 = vmax.f32 %v1639_v61, 0.0  ;;  %6395 = vmatmul.mubr.msk.f32.gmra.mrb[58].mxu0 %vm1896_vm2, %v1855_v13 }
 0x206   : > { %v1856_v4 = vmax.f32 %v1634_v62, 0.0  ;;  %v6298_v6 = vpop.f32.mrb[54].mxu1 }
 0x207   : > { %v1953_v51 = vmax.f32 %v1951_v2, %v1952_v55  ;;  %v1961_v63 = vsel %vm1896_vm2, %v1857_v43, -inf  ;;  %v1649_v8 = vadd.f32 %v6298_v6, %v7428_v54  ;;  %v1643_v7 = vpop.f32.mrb[55].mxu1 }
 0x208   : > { %v1960_v59 = vsel %vm1896_vm2, %v1856_v4, -inf  ;;  %v1644_v9 = vadd.f32 %v7428_v54, %v1643_v7  ;;  %6397 = vmatprep.mubr.msk.f32.mxu0 %vm1896_vm2, %v1856_v4 }
 0x209   : > { %v1954_v12 = vrot.slane %v1953_v51, 4  ;;  %v1962_v16 = vmax.f32 %v1960_v59, %v1961_v63  ;;  %6398 = vmatmul.mubr.msk.f32.gmra.mrb[60].mxu0 %vm1896_vm2, %v1857_v43  ;;  %v1859_v14 = vmax.f32 %v1649_v8, 0.0 }
 0x20a   : > { %v1858_v3 = vmax.f32 %v1644_v9, 0.0  ;;  %v6301_v15 = vpop.f32.mrb[56].mxu1 }
 0x20b   : > { %v1955_v18 = vmax.f32 %v1953_v51, %v1954_v12  ;;  %v1659_v19 = vadd.f32 %v6301_v15, %v7428_v54  ;;  %v1653_v21 = vpop.f32.mrb[57].mxu1  ;;  %v1965_v26 = vsel %vm1896_vm2, %v1859_v14, -inf }
 0x20c   : > { %v1963_v24 = vsel %vm1896_vm2, %v1858_v3, -inf  ;;  %v1654_v11 = vadd.f32 %v7428_v54, %v1653_v21  ;;  %6400 = vmatprep.mubr.msk.f32.mxu0 %vm1896_vm2, %v1858_v3 }
 0x20d   : > { %v1956_v23 = vrot.slane %v1955_v18, 2  ;;  %v1964_v25 = vmax.f32 %v1962_v16, %v1963_v24  ;;  %6401 = vmatmul.mubr.msk.f32.gmra.mrb[62].mxu0 %vm1896_vm2, %v1859_v14  ;;  %v1861_v20 = vmax.f32 %v1659_v19, 0.0 }
 0x20e   : > { %v1860_v32 = vmax.f32 %v1654_v11, 0.0  ;;  %v6304_v29 = vpop.f32.mrb[58].mxu1 }
 0x20f   : > { %v1957_v30 = vmax.f32 %v1955_v18, %v1956_v23  ;;  %v1966_v28 = vmax.f32 %v1964_v25, %v1965_v26  ;;  %v1669_v42 = vadd.f32 %v6304_v29, %v7428_v54  ;;  %v1663_v31 = vpop.f32.mrb[59].mxu1  ;;  %v1969_v48 = vsel %vm1896_vm2, %v1861_v20, -inf }
 0x210   : > { %v1967_v34 = vsel %vm1896_vm2, %v1860_v32, -inf  ;;  %v1664_v37 = vadd.f32 %v7428_v54, %v1663_v31  ;;  %6403 = vmatprep.mubr.msk.f32.mxu0 %vm1896_vm2, %v1860_v32 }
 0x211   : > { %v1958_v36 = vrot.slane %v1957_v30, 1  ;;  %v1968_v38 = vmax.f32 %v1966_v28, %v1967_v34  ;;  %6404 = vmatmul.mubr.msk.f32.gmra.mrb[64].mxu0 %vm1896_vm2, %v1861_v20  ;;  %v1863_v0 = vmax.f32 %v1669_v42, 0.0 }
 0x212   : > { %v1862_v40 = vmax.f32 %v1664_v37, 0.0  ;;  %v6307_v41 = vpop.f32.mrb[60].mxu1 }
 0x213   : > { %v1959_v58 = vmax.f32 %v1957_v30, %v1958_v36  ;;  %v1970_v10 = vmax.f32 %v1968_v38, %v1969_v48  ;;  %v1679_v44 = vadd.f32 %v6307_v41, %v7428_v54  ;;  %v1673_v22 = vpop.f32.mrb[61].mxu1  ;;  %v1973_v50 = vsel %vm1896_vm2, %v1863_v0, -inf }
 0x214   : > { %v1971_v5 = vsel %vm1896_vm2, %v1862_v40, -inf  ;;  %v1674_v45 = vadd.f32 %v7428_v54, %v1673_v22  ;;  %6406 = vmatprep.mubr.msk.f32.mxu0 %vm1896_vm2, %v1862_v40 }
 0x215   : > { %v2668_v33 = vsel %vm2667_vm5, %v1959_v58, %v2666_v1  ;;  %v1972_v49 = vmax.f32 %v1970_v10, %v1971_v5  ;;  %v1865_v17 = vmax.f32 %v1679_v44, 0.0  ;;  %6407 = vmatmul.mubr.msk.f32.gmra.mrb[66].mxu0 %vm1896_vm2, %v1863_v0 }
 0x216   : > { %v1864_v52 = vmax.f32 %v1674_v45, 0.0  ;;  %v6310_v13 = vpop.f32.mrb[62].mxu1 }
 0x217   : > { %v1974_v27 = vmax.f32 %v1972_v49, %v1973_v50  ;;  %v1982_v56 = vsel %vm1896_vm2, %v1865_v17, -inf  ;;  %v1689_v39 = vadd.f32 %v6310_v13, %v7428_v54  ;;  %v1683_v57 = vpop.f32.mrb[63].mxu1 }
 0x218   : > { %v1981_v60 = vsel %vm1896_vm2, %v1864_v52, -inf  ;;  %v1684_v61 = vadd.f32 %v7428_v54, %v1683_v57  ;;  %6409 = vmatprep.mubr.msk.f32.mxu0 %vm1896_vm2, %v1864_v52 }
 0x219   : > { %v1975_v47 = vrot.slane %v1974_v27, 4  ;;  %v1983_v35 = vmax.f32 %v1981_v60, %v1982_v56  ;;  %6410 = vmatmul.mubr.msk.f32.gmra.mrb[68].mxu0 %vm1896_vm2, %v1865_v17  ;;  %v1867_v62 = vmax.f32 %v1689_v39, 0.0 }
 0x21a   : > { %v1866_v1 = vmax.f32 %v1684_v61, 0.0  ;;  %v6313_v2 = vpop.f32.mrb[64].mxu1 }
 0x21b   : > { %v1976_v43 = vmax.f32 %v1974_v27, %v1975_v47  ;;  %v1699_v55 = vadd.f32 %v6313_v2, %v7428_v54  ;;  %v1693_v4 = vpop.f32.mrb[65].mxu1  ;;  %v1986_v7 = vsel %vm1896_vm2, %v1867_v62, -inf }
 0x21c   : > { %v1984_v6 = vsel %vm1896_vm2, %v1866_v1, -inf  ;;  %v1694_v51 = vadd.f32 %v7428_v54, %v1693_v4  ;;  %6412 = vmatprep.mubr.msk.f32.mxu0 %vm1896_vm2, %v1866_v1 }
 0x21d   : > { %v1977_v63 = vrot.slane %v1976_v43, 2  ;;  %v1985_v8 = vmax.f32 %v1983_v35, %v1984_v6  ;;  %6413 = vmatmul.mubr.msk.f32.gmra.mrb[70].mxu0 %vm1896_vm2, %v1867_v62  ;;  %v1869_v59 = vmax.f32 %v1699_v55, 0.0 }
 0x21e   : > { %v1868_v9 = vmax.f32 %v1694_v51, 0.0  ;;  %v6316_v12 = vpop.f32.mrb[66].mxu1 }
 0x21f   : > { %v1978_v16 = vmax.f32 %v1976_v43, %v1977_v63  ;;  %v1987_v14 = vmax.f32 %v1985_v8, %v1986_v7  ;;  %v1709_v3 = vadd.f32 %v6316_v12, %v7428_v54  ;;  %v1703_v15 = vpop.f32.mrb[67].mxu1  ;;  %v1990_v11 = vsel %vm1896_vm2, %v1869_v59, -inf }
 0x220   : > { %v1988_v18 = vsel %vm1896_vm2, %v1868_v9, -inf  ;;  %v1704_v19 = vadd.f32 %v7428_v54, %v1703_v15  ;;  %6415 = vmatprep.mubr.msk.f32.mxu0 %vm1896_vm2, %v1868_v9 }
 0x221   : > { %v1979_v21 = vrot.slane %v1978_v16, 1  ;;  %v1989_v24 = vmax.f32 %v1987_v14, %v1988_v18  ;;  %6416 = vmatmul.mubr.msk.f32.gmra.mrb[72].mxu0 %vm1896_vm2, %v1869_v59  ;;  %v1871_v23 = vmax.f32 %v1709_v3, 0.0 }
 0x222   : > { %v1870_v25 = vmax.f32 %v1704_v19, 0.0  ;;  %v6319_v26 = vpop.f32.mrb[68].mxu1 }
 0x223   : > { %v1980_v20 = vmax.f32 %v1978_v16, %v1979_v21  ;;  %v1991_v32 = vmax.f32 %v1989_v24, %v1990_v11  ;;  %v1719_v29 = vadd.f32 %v6319_v26, %v7428_v54  ;;  %v1713_v30 = vpop.f32.mrb[69].mxu1  ;;  %v1994_v36 = vsel %vm1896_vm2, %v1871_v23, -inf }
 0x224   : > { %v1992_v28 = vsel %vm1896_vm2, %v1870_v25, -inf  ;;  %v1714_v42 = vadd.f32 %v7428_v54, %v1713_v30  ;;  %6418 = vmatprep.mubr.msk.f32.mxu0 %vm1896_vm2, %v1870_v25 }
 0x225   : > { %v2670_v31 = vsel %vm2669_vm6, %v1980_v20, %v2668_v33  ;;  %v1993_v34 = vmax.f32 %v1991_v32, %v1992_v28  ;;  %v1873_v37 = vmax.f32 %v1719_v29, 0.0  ;;  %6419 = vmatmul.mubr.msk.f32.gmra.mrb[74].mxu0 %vm1896_vm2, %v1871_v23 }
 0x226   : > { %v1872_v38 = vmax.f32 %v1714_v42, 0.0  ;;  %v6322_v48 = vpop.f32.mrb[70].mxu1 }
 0x227   : > { %v1995_v0 = vmax.f32 %v1993_v34, %v1994_v36  ;;  %v2003_v40 = vsel %vm1896_vm2, %v1873_v37, -inf  ;;  %v1729_v41 = vadd.f32 %v6322_v48, %v7428_v54  ;;  %v1723_v58 = vpop.f32.mrb[71].mxu1 }
 0x228   : > { %v2002_v10 = vsel %vm1896_vm2, %v1872_v38, -inf  ;;  %v1724_v44 = vadd.f32 %v7428_v54, %v1723_v58  ;;  %6421 = vmatprep.mubr.msk.f32.mxu0 %vm1896_vm2, %v1872_v38 }
 0x229   : > { %v1996_v22 = vrot.slane %v1995_v0, 4  ;;  %v2004_v5 = vmax.f32 %v2002_v10, %v2003_v40  ;;  %6422 = vmatmul.mubr.msk.f32.gmra.mrb[76].mxu0 %vm1896_vm2, %v1873_v37  ;;  %v1875_v45 = vmax.f32 %v1729_v41, 0.0 }
 0x22a   : > { %v1874_v33 = vmax.f32 %v1724_v44, 0.0  ;;  %v6325_v49 = vpop.f32.mrb[72].mxu1 }
 0x22b   : > { %v1997_v17 = vmax.f32 %v1995_v0, %v1996_v22  ;;  %v1739_v50 = vadd.f32 %v6325_v49, %v7428_v54  ;;  %v1733_v52 = vpop.f32.mrb[73].mxu1  ;;  %v2007_v57 = vsel %vm1896_vm2, %v1875_v45, -inf }
 0x22c   : > { %v2005_v13 = vsel %vm1896_vm2, %v1874_v33, -inf  ;;  %v1734_v27 = vadd.f32 %v7428_v54, %v1733_v52  ;;  %6424 = vmatprep.mubr.msk.f32.mxu0 %vm1896_vm2, %v1874_v33 }
 0x22d   : > { %v1998_v56 = vrot.slane %v1997_v17, 2  ;;  %v2006_v39 = vmax.f32 %v2004_v5, %v2005_v13  ;;  %6425 = vmatmul.mubr.msk.f32.gmra.mrb[78].mxu0 %vm1896_vm2, %v1875_v45  ;;  %v1877_v60 = vmax.f32 %v1739_v50, 0.0 }
 0x22e   : > { %v1876_v61 = vmax.f32 %v1734_v27, 0.0  ;;  %v6328_v47 = vpop.f32.mrb[74].mxu1 }
 0x22f   : > { %v1999_v35 = vmax.f32 %v1997_v17, %v1998_v56  ;;  %v2008_v62 = vmax.f32 %v2006_v39, %v2007_v57  ;;  %v1749_v1 = vadd.f32 %v6328_v47, %v7428_v54  ;;  %v1743_v2 = vpop.f32.mrb[75].mxu1  ;;  %v2011_v51 = vsel %vm1896_vm2, %v1877_v60, -inf }
 0x230   : > { %v2009_v43 = vsel %vm1896_vm2, %v1876_v61, -inf  ;;  %v1744_v55 = vadd.f32 %v7428_v54, %v1743_v2  ;;  %6427 = vmatprep.mubr.msk.f32.mxu0 %vm1896_vm2, %v1876_v61 }
 0x231   : > { %v2000_v4 = vrot.slane %v1999_v35, 1  ;;  %v2010_v6 = vmax.f32 %v2008_v62, %v2009_v43  ;;  %6428 = vmatmul.mubr.msk.f32.gmra.mrb[80].mxu0 %vm1896_vm2, %v1877_v60  ;;  %v1879_v63 = vmax.f32 %v1749_v1, 0.0 }
 0x232   : > { %v1878_v8 = vmax.f32 %v1744_v55, 0.0  ;;  %v6331_v7 = vpop.f32.mrb[76].mxu1 }
 0x233   : > { %v2001_v59 = vmax.f32 %v1999_v35, %v2000_v4  ;;  %v2012_v9 = vmax.f32 %v2010_v6, %v2011_v51  ;;  %v1759_v12 = vadd.f32 %v6331_v7, %v7428_v54  ;;  %v1753_v16 = vpop.f32.mrb[77].mxu1  ;;  %v2015_v21 = vsel %vm1896_vm2, %v1879_v63, -inf }
 0x234   : > { %v2013_v14 = vsel %vm1896_vm2, %v1878_v8, -inf  ;;  %v1754_v3 = vadd.f32 %v7428_v54, %v1753_v16  ;;  %6430 = vmatprep.mubr.msk.f32.mxu0 %vm1896_vm2, %v1878_v8 }
 0x235   : > { %v2014_v15 = vmax.f32 %v2012_v9, %v2013_v14  ;;  %v1881_v18 = vmax.f32 %v1759_v12, 0.0  ;;  %6431 = vmatmul.mubr.msk.f32.gmra.mrb[82].mxu0 %vm1896_vm2, %v1879_v63  ;;  %v2672_v19 = vsel %vm2671_vm7, %v2001_v59, %v2670_v31 }
 0x236   : > { %v1880_v24 = vmax.f32 %v1754_v3, 0.0  ;;  %v6334_v11 = vpop.f32.mrb[78].mxu1 }
 0x237   : > { %v2016_v23 = vmax.f32 %v2014_v15, %v2015_v21  ;;  %v2024_v25 = vsel %vm1896_vm2, %v1881_v18, -inf  ;;  %v1769_v26 = vadd.f32 %v6334_v11, %v7428_v54  ;;  %v1763_v20 = vpop.f32.mrb[79].mxu1 }
 0x238   : > { %v2023_v32 = vsel %vm1896_vm2, %v1880_v24, -inf  ;;  %v1764_v29 = vadd.f32 %v7428_v54, %v1763_v20  ;;  %6433 = vmatprep.mubr.msk.f32.mxu0 %vm1896_vm2, %v1880_v24 }
 0x239   : > { %v2017_v30 = vrot.slane %v2016_v23, 4  ;;  %v2025_v28 = vmax.f32 %v2023_v32, %v2024_v25  ;;  %6434 = vmatmul.mubr.msk.f32.gmra.mrb[84].mxu0 %vm1896_vm2, %v1881_v18  ;;  %v1883_v42 = vmax.f32 %v1769_v26, 0.0 }
 0x23a   : > { %v1882_v31 = vmax.f32 %v1764_v29, 0.0  ;;  %v6337_v34 = vpop.f32.mrb[80].mxu1 }
 0x23b   : > { %v2018_v37 = vmax.f32 %v2016_v23, %v2017_v30  ;;  %v1779_v36 = vadd.f32 %v6337_v34, %v7428_v54  ;;  %v1773_v38 = vpop.f32.mrb[81].mxu1  ;;  %v2028_v58 = vsel %vm1896_vm2, %v1883_v42, -inf }
 0x23c   : > { %v2026_v48 = vsel %vm1896_vm2, %v1882_v31, -inf  ;;  %v1774_v0 = vadd.f32 %v7428_v54, %v1773_v38  ;;  %6436 = vmatprep.mubr.msk.f32.mxu0 %vm1896_vm2, %v1882_v31 }
 0x23d   : > { %v2019_v40 = vrot.slane %v2018_v37, 2  ;;  %v2027_v41 = vmax.f32 %v2025_v28, %v2026_v48  ;;  %6437 = vmatmul.mubr.msk.f32.gmra.mrb[86].mxu0 %vm1896_vm2, %v1883_v42  ;;  %v1885_v10 = vmax.f32 %v1779_v36, 0.0 }
 0x23e   : > { %v1884_v44 = vmax.f32 %v1774_v0, 0.0  ;;  %v6340_v22 = vpop.f32.mrb[82].mxu1 }
 0x23f   : > { %v2020_v5 = vmax.f32 %v2018_v37, %v2019_v40  ;;  %v2029_v45 = vmax.f32 %v2027_v41, %v2028_v58  ;;  %v1789_v33 = vadd.f32 %v6340_v22, %v7428_v54  ;;  %v1783_v49 = vpop.f32.mrb[83].mxu1  ;;  %v2032_v27 = vsel %vm1896_vm2, %v1885_v10, -inf }
 0x240   : > { %v2030_v17 = vsel %vm1896_vm2, %v1884_v44, -inf  ;;  %v1784_v50 = vadd.f32 %v7428_v54, %v1783_v49  ;;  %6439 = vmatprep.mubr.msk.f32.mxu0 %vm1896_vm2, %v1884_v44 }
 0x241   : > { %v2021_v52 = vrot.slane %v2020_v5, 1  ;;  %v2031_v13 = vmax.f32 %v2029_v45, %v2030_v17  ;;  %6440 = vmatmul.mubr.msk.f32.gmra.mrb[88].mxu0 %vm1896_vm2, %v1885_v10  ;;  %v1887_v56 = vmax.f32 %v1789_v33, 0.0 }
 0x242   : > { %v1886_v39 = vmax.f32 %v1784_v50, 0.0  ;;  %v6343_v57 = vpop.f32.mrb[84].mxu1 }
 0x243   : > { %v2022_v60 = vmax.f32 %v2020_v5, %v2021_v52  ;;  %v2033_v61 = vmax.f32 %v2031_v13, %v2032_v27  ;;  %v1799_v47 = vadd.f32 %v6343_v57, %v7428_v54  ;;  %v1793_v35 = vpop.f32.mrb[85].mxu1  ;;  %v2036_v4 = vsel %vm1896_vm2, %v1887_v56, -inf }
 0x244   : > { %v2034_v62 = vsel %vm1896_vm2, %v1886_v39, -inf  ;;  %v1794_v1 = vadd.f32 %v7428_v54, %v1793_v35  ;;  %6442 = vmatprep.mubr.msk.f32.mxu0 %vm1896_vm2, %v1886_v39  ;;  %v3719_v39 = vld [vmem:[%s9775_s9 + $0x8] sm:$0xff] }
 0x245   : > { %v2035_v2 = vmax.f32 %v2033_v61, %v2034_v62  ;;  %v1889_v43 = vmax.f32 %v1799_v47, 0.0  ;;  %6443 = vmatmul.mubr.msk.f32.gmra.mrb[90].mxu0 %vm1896_vm2, %v1887_v56  ;;  %v2674_v55 = vsel %vm2673_vm8, %v2022_v60, %v2672_v19  ;;  %v3718_v56 = vld [vmem:[%s9775_s9] sm:$0xff]  ;;  %v3720_v60 = vld [vmem:[%s9775_s9 + $0x10] sm:$0xff]  ;;  %v3721_v61 = vld [vmem:[%s9775_s9 + $0x18] sm:$0xff] }
 0x246   : > { %v1888_v6 = vmax.f32 %v1794_v1, 0.0  ;;  %v6346_v51 = vpop.f32.mrb[86].mxu1  ;;  %v6748_v57 = vpack.c.bf16 %v3719_v39, %v3718_v56  ;;  %v6751_v47 = vpack.c.bf16 %v3721_v61, %v3720_v60 }
 0x247   : > { %v2037_v63 = vmax.f32 %v2035_v2, %v2036_v4  ;;  %v2045_v8 = vsel %vm1896_vm2, %v1889_v43, -inf  ;;  %v1809_v7 = vadd.f32 %v6346_v51, %v7428_v54  ;;  %v1803_v59 = vpop.f32.mrb[87].mxu1 }
 0x248   : > { %v2044_v9 = vsel %vm1896_vm2, %v1888_v6, -inf  ;;  %v1804_v12 = vadd.f32 %v7428_v54, %v1803_v59  ;;  %6445 = vmatprep.mubr.msk.f32.mxu0 %vm1896_vm2, %v1888_v6  ;;  %6749 = vmatpush3.bf16.msra.mxu0 %v6748_v57 }
 0x249   : > { %v2038_v16 = vrot.slane %v2037_v63, 4  ;;  %v2046_v14 = vmax.f32 %v2044_v9, %v2045_v8  ;;  %6446 = vmatmul.mubr.msk.f32.gmra.mrb[92].mxu0 %vm1896_vm2, %v1889_v43  ;;  %v1891_v3 = vmax.f32 %v1809_v7, 0.0  ;;  %6750 = vmatprep.subr.bf16.mxu0 %v9788_v46  ;;  %v3137_v8 = vld [vmem:[%s9774_s8] sm:$0xff]  ;;  %v3138_v7 = vld [vmem:[%s9774_s8 + $0x8] sm:$0xff] }
 0x24a   : > { %v1890_v15 = vmax.f32 %v1804_v12, 0.0  ;;  %v6349_v18 = vpop.f32.mrb[88].mxu1  ;;  %v6739_v59 = vpack.c.bf16 %v3138_v7, %v3137_v8 }
 0x24b   : > { %v2039_v19 = vmax.f32 %v2037_v63, %v2038_v16  ;;  %v1819_v21 = vadd.f32 %v6349_v18, %v7428_v54  ;;  %v1813_v24 = vpop.f32.mrb[89].mxu1  ;;  %v2049_v20 = vsel %vm1896_vm2, %v1891_v3, -inf  ;;  %v3139_v16 = vld [vmem:[%s9774_s8 + $0x10] sm:$0xff] }
 0x24c   : > { %v2047_v11 = vsel %vm1896_vm2, %v1890_v15, -inf  ;;  %v1814_v23 = vadd.f32 %v7428_v54, %v1813_v24  ;;  %6448 = vmatprep.mubr.msk.f32.mxu0 %vm1896_vm2, %v1890_v15  ;;  %6752 = vmatpush3.bf16.msra.mxu0 %v6751_v47 }
 0x24d   : > { %v2040_v25 = vrot.slane %v2039_v19, 2  ;;  %v2048_v26 = vmax.f32 %v2046_v14, %v2047_v11  ;;  %6449 = vmatmul.mubr.msk.f32.gmra.mrb[94].mxu0 %vm1896_vm2, %v1891_v3  ;;  %v1893_v32 = vmax.f32 %v1819_v21, 0.0  ;;  %6740 = vmatprep.subr.bf16.mxu1 %v6739_v59  ;;  %v3140_v14 = vld [vmem:[%s9774_s8 + $0x18] sm:$0xff] }
 0x24e   : > { %v1892_v29 = vmax.f32 %v1814_v23, 0.0  ;;  %v6352_v30 = vpop.f32.mrb[90].mxu1  ;;  %v6743_v3 = vpack.c.bf16 %v3140_v14, %v3139_v16 }
 0x24f   : > { %v2041_v28 = vmax.f32 %v2039_v19, %v2040_v25  ;;  %v2050_v42 = vmax.f32 %v2048_v26, %v2049_v20  ;;  %v1829_v31 = vadd.f32 %v6352_v30, %v7428_v54  ;;  %v1823_v34 = vpop.f32.mrb[91].mxu1  ;;  %v2053_v0 = vsel %vm1896_vm2, %v1893_v32, -inf }
 0x250   : > { %v2051_v37 = vsel %vm1896_vm2, %v1892_v29, -inf  ;;  %v1824_v36 = vadd.f32 %v7428_v54, %v1823_v34  ;;  %6451 = vmatprep.mubr.msk.f32.mxu0 %vm1896_vm2, %v1892_v29 }
 0x251   : > { %v2042_v38 = vrot.slane %v2041_v28, 1  ;;  %v2052_v48 = vmax.f32 %v2050_v42, %v2051_v37  ;;  %6452 = vmatmul.mubr.msk.f32.gmra.mrb[96].mxu0 %vm1896_vm2, %v1893_v32  ;;  %v1895_v40 = vmax.f32 %v1829_v31, 0.0 }
 0x252   : > { %v1894_v41 = vmax.f32 %v1824_v36, 0.0 }
 0x253   : > { %v2043_v58 = vmax.f32 %v2041_v28, %v2042_v38  ;;  %v2054_v10 = vmax.f32 %v2052_v48, %v2053_v0  ;;  %v2057_v5 = vsel %vm1896_vm2, %v1895_v40, -inf }
 0x254   : > { %v2055_v44 = vsel %vm1896_vm2, %v1894_v41, -inf  ;;  %6454 = vmatprep.mubr.msk.f32.mxu0 %vm1896_vm2, %v1894_v41 }
 0x255   : > { %v2056_v22 = vmax.f32 %v2054_v10, %v2055_v44  ;;  %6455 = vmatmul.mubr.msk.f32.gmra.mrb[98].mxu0 %vm1896_vm2, %v1895_v40  ;;  %v2676_v54 = vsel %vm2675_vm9, %v2043_v58, %v2674_v55 }
 0x256   : > { %6580 = vmatprep.mubr.msk.f32.mxu0 %vm6883_vm3, %v9786_v53 }
 0x257   : > { %v2058_v45 = vmax.f32 %v2056_v22, %v2057_v5 }
 0x259   : > { %v2059_v33 = vrot.slane %v2058_v45, 4 }
 0x25b   : > { %v2060_v49 = vmax.f32 %v2058_v45, %v2059_v33 }
 0x25d   : > { %v2061_v17 = vrot.slane %v2060_v49, 2 }
 0x25f   : > { %v2062_v50 = vmax.f32 %v2060_v49, %v2061_v17 }
 0x261   : > { %v2063_v52 = vrot.slane %v2062_v50, 1 }
 0x263   : > { %v2064_v13 = vmax.f32 %v2062_v50, %v2063_v52 }
 0x265   : > { %v2678_v27 = vsel %vm2677_vm10, %v2064_v13, %v2676_v54 }
 0x266   : > { %6466 = vmatmul.mubr.msk.f32.vlgmr.msra.gmra.mrb[92].mxu1 %vm1896_vm2, %v2678_v27 }
 0x267   : > { %6742 = vmatpush3.bf16.msra.mxu1 %v6739_v59 }
 0x268   : > { %6744 = vmatprep.subr.bf16.mxu1 %v6743_v3 }
 0x26b   : > { %6746 = vmatpush3.bf16.msra.mxu1 %v6743_v3 }
 0x26c   : > { %6761 = vmatprep.subr.bf16.mxu1 %v9788_v46 }
 0x2ac   : > { %v7647_v35 = vpop.f32.mrb[36].mxu0 }
 0x2ad   : > { %v7649_v62 = vpop.f32.mrb[37].mxu0 }
 0x2b0   : > { %v7651_v1 = vpop.f32.mrb[38].mxu0 }
 0x2b1   : > { %v7653_v2 = vpop.f32.mrb[39].mxu0 }
 0x2b4   : > { %v7655_v43 = vpop.f32.mrb[40].mxu0 }
 0x2b5   : > { %v7657_v55 = vpop.f32.mrb[41].mxu0 }
 0x2b8   : > { %v7659_v4 = vpop.f32.mrb[42].mxu0 }
 0x2b9   : > { %v7661_v6 = vpop.f32.mrb[43].mxu0 }
 0x2bc   : > { %v7663_v51 = vpop.f32.mrb[44].mxu0 }
 0x2bd   : > { %v7665_v63 = vpop.f32.mrb[45].mxu0 }
 0x2c0   : > { %v7673_v9 = vpop.f32.mrb[46].mxu0 }
 0x2c1   : > { %v7675_v12 = vpop.f32.mrb[47].mxu0 }
 0x2c4   : > { %v7683_v15 = vpop.f32.mrb[48].mxu0 }
 0x2c5   : > { %v7685_v18 = vpop.f32.mrb[49].mxu0 }
 0x2c8   : > { %v7688_v19 = vpop.f32.mrb[50].mxu0 }
 0x2c9   : > { %v7690_v21 = vpop.f32.mrb[51].mxu0 }
 0x2cc   : > { %v7692_v24 = vpop.f32.mrb[52].mxu0 }
 0x2cd   : > { %v7694_v11 = vpop.f32.mrb[53].mxu0 }
 0x2d0   : > { %v7696_v23 = vpop.f32.mrb[54].mxu0 }
 0x2d1   : > { %v7698_v25 = vpop.f32.mrb[55].mxu0 }
 0x2d4   : > { %v7700_v26 = vpop.f32.mrb[56].mxu0 }
 0x2d5   : > { %v7702_v20 = vpop.f32.mrb[57].mxu0 }
 0x2d8   : > { %v7704_v32 = vpop.f32.mrb[58].mxu0 }
 0x2d9   : > { %v7706_v29 = vpop.f32.mrb[59].mxu0 }
 0x2dc   : > { %v7708_v30 = vpop.f32.mrb[60].mxu0 }
 0x2dd   : > { %v7710_v28 = vpop.f32.mrb[61].mxu0 }
 0x2e0   : > { %v7712_v42 = vpop.f32.mrb[62].mxu0 }
 0x2e1   : > { %v7714_v31 = vpop.f32.mrb[63].mxu0 }
 0x2e4   : > { %v7716_v34 = vpop.f32.mrb[64].mxu0 }
 0x2e5   : > { %v7718_v37 = vpop.f32.mrb[65].mxu0 }
 0x2e8   : > { %v7720_v36 = vpop.f32.mrb[66].mxu0 }
 0x2e9   : > { %v7722_v38 = vpop.f32.mrb[67].mxu0 }
 0x2ec   : > { %v7724_v48 = vpop.f32.mrb[68].mxu0 }
 0x2ed   : > { %v7726_v0 = vpop.f32.mrb[69].mxu0 }
 0x2f0   : > { %v7728_v40 = vpop.f32.mrb[70].mxu0 }
 0x2f1   : > { %v7730_v41 = vpop.f32.mrb[71].mxu0 }
 0x2f4   : > { %v7732_v58 = vpop.f32.mrb[72].mxu0 }
 0x2f5   : > { %v7734_v10 = vpop.f32.mrb[73].mxu0 }
 0x2f8   : > { %v7736_v44 = vpop.f32.mrb[74].mxu0 }
 0x2f9   : > { %v7738_v22 = vpop.f32.mrb[75].mxu0 }
 0x2fc   : > { %v7740_v54 = vpop.f32.mrb[76].mxu0 }
 0x2fd   : > { %v7742_v5 = vpop.f32.mrb[77].mxu0 }
 0x300   : > { %v7744_v45 = vpop.f32.mrb[78].mxu0 }
 0x301   : > { %v7746_v33 = vpop.f32.mrb[79].mxu0 }
 0x304   : > { %v7748_v49 = vpop.f32.mrb[80].mxu0 }
 0x305   : > { %v7750_v17 = vpop.f32.mrb[81].mxu0 }
 0x308   : > { %v7752_v50 = vpop.f32.mrb[82].mxu0 }
 0x309   : > { %9859 = vst [vmem:[#allocation8_spill] sm:$0xff] %v7752_v50  ;;  %v7754_v52 = vpop.f32.mrb[83].mxu0 }
 0x30a   : > { %9860 = vst [vmem:[#allocation9_spill] sm:$0xff] %v7754_v52 }
 0x30c   : > { %v7756_v13 = vpop.f32.mrb[84].mxu0 }
 0x30d   : > { %9861 = vst [vmem:[#allocation10_spill] sm:$0xff] %v7756_v13  ;;  %v7758_v27 = vpop.f32.mrb[85].mxu0 }
 0x30e   : > { %9862 = vst [vmem:[#allocation11_spill] sm:$0xff] %v7758_v27 }
 0x310   : > { %v7760_v56 = vpop.f32.mrb[86].mxu0 }
 0x311   : > { %9863 = vst [vmem:[#allocation12_spill] sm:$0xff] %v7760_v56  ;;  %v7762_v39 = vpop.f32.mrb[87].mxu0 }
 0x312   : > { %9864 = vst [vmem:[#allocation13_spill] sm:$0xff] %v7762_v39 }
 0x314   : > { %v7764_v57 = vpop.f32.mrb[88].mxu0 }
 0x315   : > { %9865 = vst [vmem:[#allocation14_spill] sm:$0xff] %v7764_v57  ;;  %v7766_v60 = vpop.f32.mrb[89].mxu0  ;;  %v6885_v57 = vmov 1966171168  }
 0x316   : > { %9866 = vst [vmem:[#allocation15_spill] sm:$0xff] %v7766_v60  ;;  %v2756_v60 = vlaneseq }
 0x318   : > { %v7768_v61 = vpop.f32.mrb[90].mxu0  ;;  %v2757_v56 = vshrl.u32 %v2756_v60, 7 }
 0x319   : > { %9867 = vst [vmem:[#allocation16_spill] sm:$0xff] %v7768_v61  ;;  %v7770_v47 = vpop.f32.mrb[91].mxu0  ;;  %v2754_v61 = vunpack.c.l.s4 %v6885_v57 }
 0x31a   : > { %9868 = vst [vmem:[#allocation17_spill] sm:$0xff] %v7770_v47 }
 0x31b   : > { %v2755_v47 = vunpack.c.0.s8 %v2754_v61 }
 0x31c   : > { %v7772_v8 = vpop.f32.mrb[92].mxu0 }
 0x31d   : > { %9869 = vst [vmem:[#allocation18_spill] sm:$0xff] %v7772_v8  ;;  %v7774_v7 = vpop.f32.mrb[93].mxu0  ;;  %v5641_v8 = vld [vmem:[%s9773_s7] ss:$0 sm:$0xff] }
 0x31e   : > { %9870 = vst [vmem:[#allocation19_spill] sm:$0xff] %v7774_v7 }
 0x320   : > { %v7776_v59 = vpop.f32.mrb[94].mxu0 }
 0x321   : > { %9871 = vst [vmem:[#allocation20_spill] sm:$0xff] %v7776_v59  ;;  %v7778_v16 = vpop.f32.mrb[95].mxu0  ;;  %v7791_v59 = vsub.s32 %v2755_v47, %v2757_v56 }
 0x322   : > { %9872 = vst [vmem:[#allocation21_spill] sm:$0xff] %v7778_v16 }
 0x323   : > { %9877 = vst [vmem:[#allocation26_spill] sm:$0xff] %v7791_v59 }
 0x324   : > { %v7780_v14 = vpop.f32.mrb[96].mxu0 }
 0x325   : > { %9873 = vst [vmem:[#allocation22_spill] sm:$0xff] %v7780_v14  ;;  %v7782_v3 = vpop.f32.mrb[97].mxu0 }
 0x326   : > { %9874 = vst [vmem:[#allocation23_spill] sm:$0xff] %v7782_v3 }
 0x328   : > { %v7784_v53 = vpop.f32.mrb[98].mxu0 }
 0x329   : > { %9875 = vst [vmem:[#allocation24_spill] sm:$0xff] %v7784_v53  ;;  %v7786_v46 = vpop.f32.mrb[99].mxu0  ;;  %v7794_v53 = vsub.s32 0, %v2757_v56 }
 0x32a   : > { %9876 = vst [vmem:[#allocation25_spill] sm:$0xff] %v7786_v46 }
 0x32b   : > { %9878 = vst [vmem:[#allocation27_spill] sm:$0xff] %v7794_v53 }
 0x339   : > { %v2747_v16 = vpop.f32.mrb[92].mxu1 }
 0x33a   : > { %v2748_v7 = vadd.f32 %v5641_v8, %v2747_v16  ;;  %v6467_v14 = vpop.f32.mrb[93].mxu1 }
 0x33c   : > { %v2752_v39 = vcombine.high %v2748_v7, %v2748_v7  ;;  %v2759_v3 = vrot.slane %v2748_v7, %v7791_v59 }
 0x33e   : > { %v2766_v46 = vrot.slane %v2752_v39, %v7791_v59  ;;  %v2767_v57 = vcombine.high %v2759_v3, %v2759_v3  ;;  %v2775_v61 = vrot.slane %v2759_v3, %v7791_v59 }
 0x340   : > { %v2768_v60 = vcombine.high %v2766_v46, %v2766_v46  ;;  %v2782_v13 = vrot.slane %v2766_v46, %v7791_v59  ;;  %v2789_v27 = vrot.slane %v2767_v57, %v7791_v59  ;;  %v2797_v47 = vcombine.high %v2775_v61, %v2775_v61 }
 0x341   : > { %v2804_v50 = vrot.slane %v2775_v61, %v7794_v53 }
 0x342   : > { %v2796_v8 = vrot.slane %v2768_v60, %v7791_v59  ;;  %v2798_v16 = vcombine.high %v2782_v13, %v2782_v13  ;;  %v2799_v14 = vcombine.high %v2789_v27, %v2789_v27  ;;  %v2808_v56 = vrot.slane %v2789_v27, %v7794_v53 }
 0x343   : > { %v7804_v7 = vrot.slane %v2797_v47, %v7794_v53  ;;  %v7807_v39 = vrot.slane %v2782_v13, %v7794_v53  ;;  %v2841_v3 = vadd.f32 %v2804_v50, %v7649_v62  ;;  %v2842_v46 = vadd.f32 %v7647_v35, %v2804_v50 }
 0x344   : > { %v2800_v57 = vcombine.high %v2796_v8, %v2796_v8  ;;  %v7812_v52 = vrot.slane %v2799_v14, %v7794_v53  ;;  %v7815_v61 = vrot.slane %v2796_v8, %v7794_v53  ;;  %v7818_v60 = vrot.slane %v2798_v16, %v7794_v53 }
 0x345   : > { %v7822_v27 = vadd.f32 %v7807_v39, %v7726_v0  ;;  %v7826_v13 = vadd.f32 %v7724_v48, %v7807_v39  ;;  %v2905_v62 = vmax.f32 %v2841_v3, 0.0  ;;  %v2906_v35 = vmax.f32 %v2842_v46, 0.0 }
 0x346   : > { %v7829_v47 = vrot.slane %v2800_v57, %v7794_v53  ;;  %v7833_v8 = vadd.f32 %v7812_v52, %v7710_v28  ;;  %v7837_v16 = vadd.f32 %v7708_v30, %v7812_v52  ;;  %v2843_v0 = vadd.f32 %v2804_v50, %v7653_v2 }
 0x347   : > { %9879 = vst [vmem:[#allocation28_spill] sm:$0xff] %v7822_v27  ;;  %9880 = vst [vmem:[#allocation29_spill] sm:$0xff] %v7826_v13  ;;  %v2969_v14 = vsel %vm1896_vm2, %v2905_v62, -inf  ;;  %v2970_v48 = vsel %vm1896_vm2, %v2906_v35, -inf  ;;  %6476 = vmatprep.mubr.msk.f32.mxu1 %vm1896_vm2, %v2905_v62  ;;  %v2844_v3 = vadd.f32 %v7651_v1, %v2804_v50  ;;  %v2845_v46 = vadd.f32 %v2804_v50, %v7657_v55 }
 0x348   : > { %v2971_v57 = vmax.f32 %v2969_v14, %v2970_v48  ;;  %6477 = vmatmul.mubr.msk.f32.vlgmr.msra.gmra.mrb[94].mxu1 %vm1896_vm2, %v2906_v35  ;;  %v2907_v28 = vmax.f32 %v2843_v0, 0.0  ;;  %v2846_v53 = vadd.f32 %v7655_v43, %v2804_v50  ;;  %v2847_v30 = vadd.f32 %v2804_v50, %v7661_v6 }
 0x349   : > { %v2908_v59 = vmax.f32 %v2844_v3, 0.0  ;;  %v2909_v2 = vmax.f32 %v2845_v46, 0.0  ;;  %v2848_v13 = vadd.f32 %v7659_v4, %v2804_v50  ;;  %v2849_v27 = vadd.f32 %v2808_v56, %v7665_v63 }
 0x34a   : > { %v2972_v62 = vsel %vm1896_vm2, %v2907_v28, -inf  ;;  %6479 = vmatprep.mubr.msk.f32.mxu1 %vm1896_vm2, %v2907_v28  ;;  %v2910_v1 = vmax.f32 %v2846_v53, 0.0  ;;  %v2911_v55 = vmax.f32 %v2847_v30, 0.0  ;;  %v2850_v14 = vadd.f32 %v7663_v51, %v2808_v56 }
 0x34b   : > { %v2973_v35 = vmax.f32 %v2971_v57, %v2972_v62  ;;  %v2974_v0 = vsel %vm1896_vm2, %v2908_v59, -inf  ;;  %v2976_v43 = vsel %vm1896_vm2, %v2909_v2, -inf  ;;  %v2912_v6 = vmax.f32 %v2848_v13, 0.0 }
 0x34c   : > { %6480 = vmatmul.mubr.msk.f32.gmra.mrb[96].mxu1 %vm1896_vm2, %v2908_v59  ;;  %v2978_v4 = vsel %vm1896_vm2, %v2910_v1, -inf  ;;  %v2980_v63 = vsel %vm1896_vm2, %v2911_v55, -inf  ;;  %v2913_v50 = vmax.f32 %v2849_v27, 0.0  ;;  %v2914_v48 = vmax.f32 %v2850_v14, 0.0 }
 0x34d   : > { %v2975_v3 = vmax.f32 %v2973_v35, %v2974_v0  ;;  %6482 = vmatprep.mubr.msk.f32.mxu1 %vm1896_vm2, %v2909_v2  ;;  %v2982_v53 = vsel %vm1896_vm2, %v2912_v6, -inf  ;;  %v2851_v51 = vadd.f32 %v2808_v56, %v7675_v12  ;;  %v7862_v46 = vadd.f32 %v7673_v9, %v2808_v56 }
 0x34e   : > { %v2990_v13 = vsel %vm1896_vm2, %v2913_v50, -inf  ;;  %v2991_v59 = vsel %vm1896_vm2, %v2914_v48, -inf  ;;  %v7867_v57 = vadd.f32 %v2808_v56, %v7685_v18  ;;  %v7870_v27 = vadd.f32 %v7683_v15, %v2808_v56 }
 0x34f   : > { %v2977_v28 = vmax.f32 %v2975_v3, %v2976_v43  ;;  %v2992_v30 = vmax.f32 %v2990_v13, %v2991_v59  ;;  %v2915_v2 = vmax.f32 %v2851_v51, 0.0  ;;  %v2916_v62 = vmax.f32 %v7862_v46, 0.0 }
 0x350   : > { %6483 = vmatmul.mubr.msk.f32.gmra.mrb[98].mxu1 %vm1896_vm2, %v2910_v1  ;;  %v2917_v9 = vmax.f32 %v7867_v57, 0.0  ;;  %v2918_v12 = vmax.f32 %v7870_v27, 0.0  ;;  %v7877_v14 = vadd.f32 %v2808_v56, %v7690_v21  ;;  %v7880_v18 = vadd.f32 %v7688_v19, %v2808_v56 }
 0x351   : > { %v2979_v35 = vmax.f32 %v2977_v28, %v2978_v4  ;;  %6485 = vmatprep.mubr.msk.f32.mxu1 %vm1896_vm2, %v2911_v55  ;;  %v2993_v15 = vsel %vm1896_vm2, %v2915_v2, -inf  ;;  %v2995_v0 = vsel %vm1896_vm2, %v2916_v62, -inf  ;;  %v7887_v1 = vadd.f32 %v7804_v7, %v7694_v11 }
 0x352   : > { %v2994_v43 = vmax.f32 %v2992_v30, %v2993_v15  ;;  %v2997_v3 = vsel %vm1896_vm2, %v2917_v9, -inf  ;;  %v2999_v21 = vsel %vm1896_vm2, %v2918_v12, -inf  ;;  %v2919_v19 = vmax.f32 %v7877_v14, 0.0 }
 0x353   : > { %v2981_v56 = vmax.f32 %v2979_v35, %v2980_v63  ;;  %v2920_v55 = vmax.f32 %v7880_v18, 0.0  ;;  %v2921_v4 = vmax.f32 %v7887_v1, 0.0  ;;  %v7898_v51 = vadd.f32 %v7692_v24, %v7804_v7  ;;  %v9886_v18 = vld [vmem:[#allocation12_spill] sm:$0xff] }
 0x354   : > { %6486 = vmatmul.mubr.msk.f32.gmra.mrb[100].mxu1 %vm1896_vm2, %v2912_v6  ;;  %v2996_v11 = vmax.f32 %v2994_v43, %v2995_v0  ;;  %v3001_v46 = vsel %vm1896_vm2, %v2919_v19, -inf  ;;  %v7906_v13 = vadd.f32 %v7804_v7, %v7698_v25  ;;  %v7910_v63 = vadd.f32 %v7696_v23, %v7804_v7  ;;  %v9890_v1 = vld [vmem:[#allocation16_spill] sm:$0xff] }
 0x355   : > { %v2983_v59 = vmax.f32 %v2981_v56, %v2982_v53  ;;  %6488 = vmatprep.mubr.msk.f32.mxu1 %vm1896_vm2, %v2913_v50  ;;  %v3003_v24 = vsel %vm1896_vm2, %v2920_v55, -inf  ;;  %v3011_v6 = vsel %vm1896_vm2, %v2921_v4, -inf  ;;  %v2922_v57 = vmax.f32 %v7898_v51, 0.0  ;;  %v9898_v51 = vld [vmem:[#allocation24_spill] sm:$0xff] }
 0x356   : > { %v2998_v28 = vmax.f32 %v2996_v11, %v2997_v3  ;;  %v7922_v25 = vadd.f32 %v7804_v7, %v7702_v20  ;;  %v7926_v23 = vadd.f32 %v7700_v26, %v7804_v7  ;;  %v7930_v50 = vadd.f32 %v7804_v7, %v7706_v29 }
 0x357   : > { %v2984_v53 = vrot.slane %v2983_v59, 4  ;;  %v3012_v30 = vsel %vm1896_vm2, %v2922_v57, -inf  ;;  %v7937_v35 = vadd.f32 %v7704_v32, %v7804_v7  ;;  %v2923_v20 = vmax.f32 %v7906_v13, 0.0 }
 0x358   : > { %6489 = vmatmul.mubr.msk.f32.gmra.mrb[102].mxu1 %vm1896_vm2, %v2914_v48  ;;  %v3000_v15 = vmax.f32 %v2998_v28, %v2999_v21  ;;  %v3013_v26 = vmax.f32 %v3011_v6, %v3012_v30  ;;  %v2924_v0 = vmax.f32 %v7910_v63, 0.0  ;;  %v2925_v29 = vmax.f32 %v7922_v25, 0.0 }
 0x359   : > { %v2985_v43 = vmax.f32 %v2983_v59, %v2984_v53  ;;  %6491 = vmatprep.mubr.msk.f32.mxu1 %vm1896_vm2, %v2915_v2  ;;  %v2926_v3 = vmax.f32 %v7926_v23, 0.0  ;;  %v2927_v56 = vmax.f32 %v7930_v50, 0.0  ;;  %v2928_v32 = vmax.f32 %v7937_v35, 0.0 }
 0x35a   : > { %v3002_v7 = vmax.f32 %v3000_v15, %v3001_v46  ;;  %v3014_v48 = vsel %vm1896_vm2, %v2923_v20, -inf  ;;  %v3016_v21 = vsel %vm1896_vm2, %v2924_v0, -inf  ;;  %v3018_v11 = vsel %vm1896_vm2, %v2925_v29, -inf }
 0x35b   : > { %v2986_v2 = vrot.slane %v2985_v43, 2  ;;  %v3015_v59 = vmax.f32 %v3013_v26, %v3014_v48  ;;  %v3020_v6 = vsel %vm1896_vm2, %v2926_v3, -inf  ;;  %v3022_v46 = vsel %vm1896_vm2, %v2927_v56, -inf }
 0x35c   : > { %6492 = vmatmul.mubr.msk.f32.gmra.mrb[104].mxu1 %vm1896_vm2, %v2916_v62  ;;  %v3004_v28 = vmax.f32 %v3002_v7, %v3003_v24  ;;  %v3024_v53 = vsel %vm1896_vm2, %v2928_v32, -inf  ;;  %v7968_v30 = vadd.f32 %v7812_v52, %v7714_v31  ;;  %v7972_v15 = vadd.f32 %v7712_v42, %v7812_v52 }
 0x35d   : > { %v2987_v26 = vmax.f32 %v2985_v43, %v2986_v2  ;;  %6494 = vmatprep.mubr.msk.f32.mxu1 %vm1896_vm2, %v2917_v9  ;;  %v3017_v48 = vmax.f32 %v3015_v59, %v3016_v21  ;;  %v7977_v62 = vadd.f32 %v7812_v52, %v7718_v37  ;;  %v7981_v24 = vadd.f32 %v7716_v34, %v7812_v52 }
 0x35e   : > { %v3005_v7 = vrot.slane %v3004_v28, 4  ;;  %v7985_v31 = vadd.f32 %v7812_v52, %v7722_v38  ;;  %v7989_v42 = vadd.f32 %v7720_v36, %v7812_v52  ;;  %v7993_v9 = vadd.f32 %v7807_v39, %v7730_v41 }
 0x35f   : > { %v2988_v43 = vrot.slane %v2987_v26, 1  ;;  %v3019_v37 = vmax.f32 %v3017_v48, %v3018_v11  ;;  %v7997_v21 = vadd.f32 %v7728_v40, %v7807_v39  ;;  %v8001_v34 = vadd.f32 %v7807_v39, %v7734_v10  ;;  %v9888_v48 = vld [vmem:[#allocation14_spill] sm:$0xff] }
 0x360   : > { %6495 = vmatmul.mubr.msk.f32.gmra.mrb[106].mxu1 %vm1896_vm2, %v2918_v12  ;;  %v3006_v36 = vmax.f32 %v3004_v28, %v3005_v7  ;;  %v8008_v38 = vadd.f32 %v7732_v58, %v7807_v39  ;;  %v8012_v41 = vadd.f32 %v7807_v39, %v7738_v22  ;;  %v8016_v40 = vadd.f32 %v7736_v44, %v7807_v39  ;;  %v9887_v28 = vld [vmem:[#allocation15_spill] sm:$0xff] }
 0x361   : > { %v2989_v52 = vmax.f32 %v2987_v26, %v2988_v43  ;;  %6497 = vmatprep.mubr.msk.f32.mxu1 %vm1896_vm2, %v2919_v19  ;;  %v3021_v10 = vmax.f32 %v3019_v37, %v3020_v6  ;;  %v8023_v27 = vadd.f32 %v7815_v61, %v7742_v5  ;;  %v8027_v58 = vadd.f32 %v7740_v54, %v7815_v61  ;;  %v9881_v54 = vld [vmem:[#allocation9_spill] sm:$0xff] }
 0x362   : > { %v3007_v22 = vrot.slane %v3006_v36, 2  ;;  %v8031_v12 = vadd.f32 %v7815_v61, %v7746_v33  ;;  %v8035_v44 = vadd.f32 %v7744_v45, %v7815_v61  ;;  %v8039_v39 = vadd.f32 %v7815_v61, %v7750_v17  ;;  %v9882_v33 = vld [vmem:[#allocation8_spill] sm:$0xff]  ;;  %v9883_v45 = vld [vmem:[#allocation11_spill] sm:$0xff]  ;;  %v9885_v6 = vld [vmem:[#allocation13_spill] sm:$0xff] }
 0x363   : > { %v3023_v14 = vmax.f32 %v3021_v10, %v3022_v46  ;;  %v8043_v5 = vadd.f32 %v7748_v49, %v7815_v61  ;;  %v8047_v19 = vadd.f32 %v7815_v61, %v9881_v54  ;;  %v8051_v11 = vadd.f32 %v9882_v33, %v7815_v61  ;;  %v9884_v49 = vld [vmem:[#allocation10_spill] sm:$0xff]  ;;  %v9889_v37 = vld [vmem:[#allocation17_spill] sm:$0xff] }
 0x364   : > { %v3008_v2 = vmax.f32 %v3006_v36, %v3007_v22  ;;  %6498 = vmatmul.mubr.msk.f32.gmra.mrb[108].mxu1 %vm1896_vm2, %v2920_v55  ;;  %v8058_v17 = vadd.f32 %v7818_v60, %v9883_v45  ;;  %v8062_v59 = vadd.f32 %v9884_v49, %v7818_v60  ;;  %v8066_v46 = vadd.f32 %v7818_v60, %v9885_v6  ;;  %v9893_v33 = vld [vmem:[#allocation21_spill] sm:$0xff]  ;;  %v9894_v49 = vld [vmem:[#allocation20_spill] sm:$0xff] }
 0x365   : > { %6500 = vmatprep.mubr.msk.f32.mxu1 %vm1896_vm2, %v2921_v4  ;;  %v3025_v61 = vmax.f32 %v3023_v14, %v3024_v53  ;;  %v8073_v55 = vadd.f32 %v9886_v18, %v7818_v60  ;;  %v8077_v26 = vadd.f32 %v7818_v60, %v9887_v28  ;;  %v8081_v7 = vadd.f32 %v9888_v48, %v7818_v60  ;;  %v9891_v53 = vld [vmem:[#allocation19_spill] sm:$0xff]  ;;  %v9892_v14 = vld [vmem:[#allocation18_spill] sm:$0xff] }
 0x366   : > { %v3009_v43 = vrot.slane %v3008_v2, 1  ;;  %v8085_v36 = vadd.f32 %v7818_v60, %v9889_v37  ;;  %v8089_v4 = vadd.f32 %v9890_v1, %v7818_v60  ;;  %v8093_v10 = vadd.f32 %v7829_v47, %v9891_v53  ;;  %v9895_v60 = vld [vmem:[#allocation23_spill] sm:$0xff]  ;;  %v9896_v48 = vld [vmem:[#allocation22_spill] sm:$0xff]  ;;  %v9897_v1 = vld [vmem:[#allocation25_spill] sm:$0xff] }
 0x367   : > { %v3026_v22 = vrot.slane %v3025_v61, 4  ;;  %v8097_v54 = vadd.f32 %v9892_v14, %v7829_v47  ;;  %v8101_v45 = vadd.f32 %v7829_v47, %v9893_v33  ;;  %v8105_v6 = vadd.f32 %v9894_v49, %v7829_v47 }
 0x368   : > { %v3010_v18 = vmax.f32 %v3008_v2, %v3009_v43  ;;  %6501 = vmatmul.mubr.msk.f32.gmra.mrb[110].mxu1 %vm1896_vm2, %v2922_v57  ;;  %v8112_v28 = vadd.f32 %v7829_v47, %v9895_v60  ;;  %v8116_v37 = vadd.f32 %v9896_v48, %v7829_v47  ;;  %v8120_v53 = vadd.f32 %v7829_v47, %v9897_v1 }
 0x369   : > { %v3027_v14 = vmax.f32 %v3025_v61, %v3026_v22  ;;  %6503 = vmatprep.mubr.msk.f32.mxu1 %vm1896_vm2, %v2923_v20  ;;  %v8127_v57 = vadd.f32 %v9898_v51, %v7829_v47  ;;  %v2929_v33 = vmax.f32 %v7833_v8, 0.0  ;;  %v2930_v49 = vmax.f32 %v7837_v16, 0.0  ;;  %v9899_v8 = vld [vmem:[#allocation28_spill] sm:$0xff] }
 0x36a   : > { %v8130_v2 = vsel %vm2665_vm4, %v3010_v18, %v2989_v52  ;;  %v2931_v60 = vmax.f32 %v7968_v30, 0.0  ;;  %v2932_v61 = vmax.f32 %v7972_v15, 0.0  ;;  %v2933_v13 = vmax.f32 %v7977_v62, 0.0  ;;  %v9900_v30 = vld [vmem:[#allocation29_spill] sm:$0xff] }
 0x36b   : > { %v3028_v43 = vrot.slane %v3027_v14, 2  ;;  %v2934_v47 = vmax.f32 %v7981_v24, 0.0  ;;  %v9799_v16 = vmax.f32 %v9899_v8, 0.0  ;;  %v9796_v22 = vmax.f32 %v9900_v30, 0.0 }
 0x36c   : > { %6504 = vmatmul.mubr.msk.f32.gmra.mrb[112].mxu1 %vm1896_vm2, %v2924_v0  ;;  %v9797_v63 = vmax.f32 %v7993_v9, 0.0  ;;  %v2940_v0 = vmax.f32 %v7997_v21, 0.0  ;;  %v9798_v25 = vmax.f32 %v8023_v27, 0.0  ;;  %v3033_v52 = vsel %vm1896_vm2, %v2930_v49, -inf }
 0x36d   : > { %6506 = vmatprep.mubr.msk.f32.mxu1 %vm1896_vm2, %v2925_v29  ;;  %v3029_v18 = vmax.f32 %v3027_v14, %v3028_v43  ;;  %v9800_v29 = vmax.f32 %v8027_v58, 0.0  ;;  %v2963_v43 = vmax.f32 %v8101_v45, 0.0  ;;  %v3035_v20 = vsel %vm1896_vm2, %v2931_v60, -inf }
 0x36e   : > { %v3053_v14 = vsel %vm1896_vm2, %v9799_v16, -inf  ;;  %v3039_v23 = vsel %vm1896_vm2, %v2933_v13, -inf  ;;  %v9904_v50 = vmax.f32 %v8008_v38, 0.0  ;;  %v9912_v62 = vmax.f32 %v8066_v46, 0.0 }
 0x36f   : > { %v3030_v48 = vrot.slane %v3029_v18, 1  ;;  %v9957_v45 = vmov 0.0  }
 0x370   : > { %6507 = vmatmul.mubr.msk.f32.gmra.mrb[114].mxu1 %vm1896_vm2, %v2926_v3  ;;  %v2961_v3 = vmax.f32 %v8093_v10, 0.0  ;;  %v9955_v10 = vmax.f32 %v8116_v37, 0.0 }
 0x371   : > { %6509 = vmatprep.mubr.msk.f32.mxu1 %vm1896_vm2, %v2927_v56  ;;  %v3032_v56 = vsel %vm1896_vm2, %v2929_v33, -inf }
 0x372   : > { %v3034_v1 = vmax.f32 %v3032_v56, %v3033_v52  ;;  %v3054_v52 = vsel %vm1896_vm2, %v9796_v22, -inf  ;;  %v3037_v56 = vsel %vm1896_vm2, %v2932_v61, -inf  ;;  %v9901_v22 = vmax.f32 %v7985_v31, 0.0 }
 0x373   : > { %v3055_v35 = vmax.f32 %v3053_v14, %v3054_v52 }
 0x374   : > { %6510 = vmatmul.mubr.msk.f32.gmra.mrb[116].mxu1 %vm1896_vm2, %v2928_v32  ;;  %v3036_v32 = vmax.f32 %v3034_v1, %v3035_v20  ;;  %v3041_v1 = vsel %vm1896_vm2, %v2934_v47, -inf  ;;  %v3043_v14 = vsel %vm1896_vm2, %v9901_v22, -inf }
 0x375   : > { %6512 = vmatprep.mubr.msk.f32.mxu1 %vm1896_vm2, %v2929_v33  ;;  %v8196_v33 = vmax.f32 %v3029_v18, %v3030_v48  ;;  %v3056_v18 = vsel %vm1896_vm2, %v9797_v63, -inf  ;;  %v3074_v48 = vsel %vm1896_vm2, %v9798_v25, -inf  ;;  %v3058_v25 = vsel %vm1896_vm2, %v2940_v0, -inf }
 0x376   : > { %v3038_v20 = vmax.f32 %v3036_v32, %v3037_v56  ;;  %v3057_v52 = vmax.f32 %v3055_v35, %v3056_v18  ;;  %v3075_v56 = vsel %vm1896_vm2, %v9800_v29, -inf  ;;  %v9905_v35 = vmax.f32 %v8031_v12, 0.0 }
 0x377   : > { %v3076_v16 = vmax.f32 %v3074_v48, %v3075_v56  ;;  %v9907_v48 = vmax.f32 %v8012_v41, 0.0 }
 0x378   : > { %6513 = vmatmul.mubr.msk.f32.gmra.mrb[118].mxu1 %vm1896_vm2, %v2930_v49  ;;  %v9902_v49 = vmax.f32 %v7989_v42, 0.0  ;;  %v3040_v63 = vmax.f32 %v3038_v20, %v3039_v23  ;;  %v3059_v22 = vmax.f32 %v3057_v52, %v3058_v25  ;;  %v3077_v18 = vsel %vm1896_vm2, %v9905_v35, -inf }
 0x379   : > { %6515 = vmatprep.mubr.msk.f32.mxu1 %vm1896_vm2, %v2931_v60  ;;  %v9903_v60 = vmax.f32 %v8001_v34, 0.0  ;;  %v9906_v23 = vmax.f32 %v8058_v17, 0.0  ;;  %v3064_v25 = vsel %vm1896_vm2, %v9907_v48, -inf  ;;  %v3078_v52 = vmax.f32 %v3076_v16, %v3077_v18 }
 0x37a   : > { %v3045_v32 = vsel %vm1896_vm2, %v9902_v49, -inf  ;;  %v3062_v49 = vsel %vm1896_vm2, %v9904_v50, -inf  ;;  %v3042_v29 = vmax.f32 %v3040_v63, %v3041_v1  ;;  %v9908_v50 = vmax.f32 %v8062_v59, 0.0 }
 0x37b   : > { %v3060_v51 = vsel %vm1896_vm2, %v9903_v60, -inf  ;;  %v3095_v20 = vsel %vm1896_vm2, %v9906_v23, -inf  ;;  %v9909_v35 = vmax.f32 %v8016_v40, 0.0  ;;  %v9911_v18 = vmax.f32 %v8039_v39, 0.0 }
 0x37c   : > { %6516 = vmatmul.mubr.msk.f32.gmra.mrb[120].mxu1 %vm1896_vm2, %v2932_v61  ;;  %v3096_v56 = vsel %vm1896_vm2, %v9908_v50, -inf  ;;  %v3061_v60 = vmax.f32 %v3059_v22, %v3060_v51  ;;  %v9910_v61 = vmax.f32 %v8035_v44, 0.0  ;;  %v3044_v23 = vmax.f32 %v3042_v29, %v3043_v14 }
 0x37d   : > { %6518 = vmatprep.mubr.msk.f32.mxu1 %vm1896_vm2, %v2933_v13  ;;  %v3066_v15 = vsel %vm1896_vm2, %v9909_v35, -inf  ;;  %v3097_v1 = vmax.f32 %v3095_v20, %v3096_v56  ;;  %v3081_v48 = vsel %vm1896_vm2, %v9911_v18, -inf  ;;  %v3098_v13 = vsel %vm1896_vm2, %v9912_v62, -inf }
 0x37e   : > { %v3079_v63 = vsel %vm1896_vm2, %v9910_v61, -inf  ;;  %v3063_v51 = vmax.f32 %v3061_v60, %v3062_v49  ;;  %v9913_v22 = vmax.f32 %v8043_v5, 0.0  ;;  %v3116_v20 = vsel %vm1896_vm2, %v2961_v3, -inf }
 0x37f   : > { %v3080_v16 = vmax.f32 %v3078_v52, %v3079_v63  ;;  %v3099_v35 = vmax.f32 %v3097_v1, %v3098_v13  ;;  %v3046_v29 = vmax.f32 %v3044_v23, %v3045_v32  ;;  %v9914_v52 = vmax.f32 %v8073_v55, 0.0 }
 0x380   : > { %v3083_v50 = vsel %vm1896_vm2, %v9913_v22, -inf  ;;  %6519 = vmatmul.mubr.msk.f32.gmra.mrb[122].mxu1 %vm1896_vm2, %v2934_v47  ;;  %v9915_v49 = vmax.f32 %v8097_v54, 0.0  ;;  %v9916_v61 = vmax.f32 %v7985_v31, 0.0  ;;  %v3065_v63 = vmax.f32 %v3063_v51, %v3064_v25 }
 0x381   : > { %v3082_v14 = vmax.f32 %v3080_v16, %v3081_v48  ;;  %v3100_v56 = vsel %vm1896_vm2, %v9914_v52, -inf  ;;  %v9917_v1 = vmax.f32 %v8047_v19, 0.0  ;;  %v3047_v23 = vrot.slane %v3046_v29, 4 }
 0x382   : > { %v3117_v60 = vsel %vm1896_vm2, %v9915_v49, -inf  ;;  %6521 = vmatprep.mubr.msk.f32.mxu1 %vm1896_vm2, %v9916_v61  ;;  %v3101_v47 = vmax.f32 %v3099_v35, %v3100_v56  ;;  %v9918_v18 = vmax.f32 %v8077_v26, 0.0  ;;  %v3119_v62 = vsel %vm1896_vm2, %v2963_v43, -inf }
 0x383   : > { %v3085_v24 = vsel %vm1896_vm2, %v9917_v1, -inf  ;;  %v3118_v32 = vmax.f32 %v3116_v20, %v3117_v60  ;;  %v3084_v16 = vmax.f32 %v3082_v14, %v3083_v50  ;;  %v3067_v31 = vmax.f32 %v3065_v63, %v3066_v15 }
 0x384   : > { %v3102_v48 = vsel %vm1896_vm2, %v9918_v18, -inf  ;;  %v9919_v25 = vmax.f32 %v8081_v7, 0.0  ;;  %v9920_v35 = vmax.f32 %v7989_v42, 0.0  ;;  %v3048_v50 = vmax.f32 %v3046_v29, %v3047_v23 }
 0x385   : > { %v3103_v13 = vmax.f32 %v3101_v47, %v3102_v48  ;;  %v3120_v22 = vmax.f32 %v3118_v32, %v3119_v62  ;;  %v3086_v20 = vmax.f32 %v3084_v16, %v3085_v24  ;;  %v9921_v14 = vmax.f32 %v8105_v6, 0.0 }
 0x386   : > { %v3104_v51 = vsel %vm1896_vm2, %v9919_v25, -inf  ;;  %6522 = vmatmul.mubr.msk.f32.gmra.mrb[124].mxu1 %vm1896_vm2, %v9920_v35  ;;  %v3738_v15 = vsel %vm2667_vm5, %v8196_v33, %v8130_v2  ;;  %v9922_v56 = vmax.f32 %v9899_v8, 0.0  ;;  %v3068_v49 = vrot.slane %v3067_v31, 4 }
 0x387   : > { %v3121_v52 = vsel %vm1896_vm2, %v9921_v14, -inf  ;;  %v9923_v60 = vmax.f32 %v8051_v11, 0.0  ;;  %v3105_v61 = vmax.f32 %v3103_v13, %v3104_v51  ;;  %v3049_v63 = vrot.slane %v3048_v50, 2 }
 0x388   : > { %6524 = vmatprep.mubr.msk.f32.mxu1 %vm1896_vm2, %v9922_v56  ;;  %v3122_v29 = vmax.f32 %v3120_v22, %v3121_v52  ;;  %v9924_v24 = vmax.f32 %v8085_v36, 0.0  ;;  %v9925_v32 = vmax.f32 %v8112_v28, 0.0  ;;  %v2968_v8 = vmax.f32 %v8127_v57, 0.0  ;;  %v4205_v57 = vld [vmem:[%s9777_s11 + $0x18] sm:$0xff] }
 0x389   : > { %v3087_v42 = vsel %vm1896_vm2, %v9923_v60, -inf  ;;  %v3069_v33 = vmax.f32 %v3067_v31, %v3068_v49  ;;  %v9926_v18 = vmax.f32 %v9900_v30, 0.0  ;;  %v3050_v48 = vmax.f32 %v3048_v50, %v3049_v63 }
 0x38a   : > { %v3088_v1 = vmax.f32 %v3086_v20, %v3087_v42  ;;  %v3106_v47 = vsel %vm1896_vm2, %v9924_v24, -inf  ;;  %v3123_v2 = vsel %vm1896_vm2, %v9925_v32, -inf  ;;  %v9927_v13 = vmax.f32 %v8089_v4, 0.0 }
 0x38b   : > { %v3107_v23 = vmax.f32 %v3105_v61, %v3106_v47  ;;  %v3124_v16 = vmax.f32 %v3122_v29, %v3123_v2  ;;  %6525 = vmatmul.mubr.msk.f32.gmra.mrb[126].mxu1 %vm1896_vm2, %v9926_v18  ;;  %v9928_v51 = vmax.f32 %v8116_v37, 0.0  ;;  %v9929_v35 = vmax.f32 %v7993_v9, 0.0 }
 0x38c   : > { %v3089_v62 = vrot.slane %v3088_v1, 4  ;;  %v3108_v25 = vsel %vm1896_vm2, %v9927_v13, -inf  ;;  %v3070_v31 = vrot.slane %v3069_v33, 2  ;;  %v3051_v30 = vrot.slane %v3050_v48, 1 }
 0x38d   : > { %v3125_v22 = vsel %vm1896_vm2, %v9928_v51, -inf  ;;  %6527 = vmatprep.mubr.msk.f32.mxu1 %vm1896_vm2, %v9929_v35  ;;  %v3109_v20 = vmax.f32 %v3107_v23, %v3108_v25  ;;  %v9930_v50 = vmax.f32 %v8120_v53, 0.0  ;;  %v3129_v29 = vsel %vm1896_vm2, %v2968_v8, -inf }
 0x38e   : > { %v3126_v14 = vmax.f32 %v3124_v16, %v3125_v22  ;;  %v3090_v52 = vmax.f32 %v3088_v1, %v3089_v62  ;;  %v3071_v49 = vmax.f32 %v3069_v33, %v3070_v31  ;;  %v3052_v61 = vmax.f32 %v3050_v48, %v3051_v30 }
 0x38f   : > { %v3127_v56 = vsel %vm1896_vm2, %v9930_v50, -inf  ;;  %v3110_v60 = vrot.slane %v3109_v20, 4  ;;  %6528 = vmatmul.mubr.msk.f32.gmra.mrb[128].mxu1 %vm1896_vm2, %v2940_v0  ;;  %v9931_v63 = vmax.f32 %v8001_v34, 0.0  ;;  %v9932_v0 = vmax.f32 %v8008_v38, 0.0 }
 0x390   : > { %v3128_v42 = vmax.f32 %v3126_v14, %v3127_v56  ;;  %v3091_v9 = vrot.slane %v3090_v52, 2  ;;  %v3072_v1 = vrot.slane %v3071_v49, 1  ;;  %v3739_v2 = vsel %vm2669_vm6, %v3052_v61, %v3738_v15 }
 0x391   : > { %6530 = vmatprep.mubr.msk.f32.mxu1 %vm1896_vm2, %v9931_v63  ;;  %v3111_v24 = vmax.f32 %v3109_v20, %v3110_v60  ;;  %v9933_v18 = vmax.f32 %v8012_v41, 0.0  ;;  %v9934_v15 = vmax.f32 %v8016_v40, 0.0  ;;  %v9935_v22 = vmax.f32 %v8023_v27, 0.0 }
 0x392   : > { %v3130_v47 = vmax.f32 %v3128_v42, %v3129_v29  ;;  %v3092_v32 = vmax.f32 %v3090_v52, %v3091_v9  ;;  %v3073_v33 = vmax.f32 %v3071_v49, %v3072_v1  ;;  %v9936_v14 = vmax.f32 %v8027_v58, 0.0 }
 0x393   : > { %v3112_v21 = vrot.slane %v3111_v24, 2  ;;  %6531 = vmatmul.mubr.msk.f32.gmra.mrb[130].mxu1 %vm1896_vm2, %v9932_v0  ;;  %v9937_v30 = vmax.f32 %v8031_v12, 0.0  ;;  %v9938_v27 = vmax.f32 %v8035_v44, 0.0  ;;  %v9939_v50 = vmax.f32 %v8039_v39, 0.0  ;;  %v4786_v0 = vld [vmem:[%s9778_s12 + $0x18] sm:$0xff] }
 0x394   : > { %v3131_v23 = vrot.slane %v3130_v47, 4  ;;  %v3093_v16 = vrot.slane %v3092_v32, 1  ;;  %6533 = vmatprep.mubr.msk.f32.mxu1 %vm1896_vm2, %v9933_v18  ;;  %v3740_v62 = vsel %vm2671_vm7, %v3073_v33, %v3739_v2  ;;  %v9940_v58 = vmax.f32 %v8043_v5, 0.0 }
 0x395   : > { %v3113_v34 = vmax.f32 %v3111_v24, %v3112_v21  ;;  %v9941_v12 = vmax.f32 %v8047_v19, 0.0  ;;  %v9942_v56 = vmax.f32 %v8051_v11, 0.0  ;;  %v9943_v44 = vmax.f32 %v8058_v17, 0.0  ;;  %v4783_v17 = vld [vmem:[%s9778_s12] sm:$0xff] }
 0x396   : > { %v3132_v48 = vmax.f32 %v3130_v47, %v3131_v23  ;;  %v3094_v13 = vmax.f32 %v3092_v32, %v3093_v16  ;;  %v9944_v39 = vmax.f32 %v8062_v59, 0.0  ;;  %v9945_v5 = vmax.f32 %v8066_v46, 0.0  ;;  %v4784_v59 = vld [vmem:[%s9778_s12 + $0x8] sm:$0xff]  ;;  %v4785_v23 = vld [vmem:[%s9778_s12 + $0x10] sm:$0xff] }
 0x397   : > { %v3114_v25 = vrot.slane %v3113_v34, 1  ;;  %6534 = vmatmul.mubr.msk.f32.gmra.mrb[132].mxu1 %vm1896_vm2, %v9934_v15  ;;  %v9946_v19 = vmax.f32 %v8073_v55, 0.0  ;;  %v9947_v11 = vmax.f32 %v8077_v26, 0.0  ;;  %v9948_v46 = vmax.f32 %v8081_v7, 0.0 }
 0x398   : > { %v3133_v51 = vrot.slane %v3132_v48, 2  ;;  %v3741_v38 = vsel %vm2673_vm8, %v3094_v13, %v3740_v62  ;;  %6536 = vmatprep.mubr.msk.f32.mxu1 %vm1896_vm2, %v9935_v22  ;;  %v6762_v49 = vpack.c.bf16 %v4784_v59, %v4783_v17  ;;  %v9949_v55 = vmax.f32 %v8085_v36, 0.0  ;;  %v5707_v17 = vld [vmem:[%s9776_s10] ss:$0 sm:$0xff] }
 0x399   : > { %v3115_v41 = vmax.f32 %v3113_v34, %v3114_v25  ;;  %v9950_v26 = vmov 0.0|0.0   ;;  %v9951_v60 = vmax.f32 %v8089_v4, 0.0  ;;  %v9952_v7 = vmax.f32 %v8097_v54, 0.0 }
 0x39a   : > { %v3134_v35 = vmax.f32 %v3132_v48, %v3133_v51  ;;  %6763 = vmatpush3.bf16.msra.mxu1 %v6762_v49  ;;  %v9953_v36 = vmax.f32 %v8105_v6, 0.0  ;;  %v9954_v4 = vmax.f32 %v8112_v28, 0.0  ;;  %v9956_v54 = vmax.f32 %v8120_v53, 0.0  ;;  %v4202_v6 = vld [vmem:[%s9777_s11] sm:$0xff]  ;;  %v4203_v28 = vld [vmem:[%s9777_s11 + $0x8] sm:$0xff]  ;;  %v4204_v53 = vld [vmem:[%s9777_s11 + $0x10] sm:$0xff] }
 0x39b   : > { %v3742_v20 = vsel %vm2675_vm9, %v3115_v41, %v3741_v38  ;;  %6537 = vmatmul.mubr.msk.f32.gmra.mrb[134].mxu1 %vm1896_vm2, %v9936_v14  ;;  %6764 = vmatprep.subr.bf16.mxu1 %v9950_v26  ;;  %v6753_v37 = vpack.c.bf16 %v4203_v28, %v4202_v6  ;;  %v6765_v18 = vpack.c.bf16 %v4786_v0, %v4785_v23 }
 0x39c   : > { %v3135_v31 = vrot.slane %v3134_v35, 1  ;;  %6539 = vmatprep.mubr.msk.f32.mxu1 %vm1896_vm2, %v9937_v30 }
 0x39d   : > { %6754 = vmatprep.subr.bf16.mxu0 %v6753_v37 }
 0x39e   : > { %v3136_v40 = vmax.f32 %v3134_v35, %v3135_v31  ;;  %6766 = vmatpush3.bf16.msra.mxu1 %v6765_v18  ;;  %v9962_v18 = vld [vmem:[#allocation27_spill] sm:$0xff] }
 0x39f   : > { %6540 = vmatmul.mubr.msk.f32.gmra.mrb[136].mxu1 %vm1896_vm2, %v9938_v27  ;;  %6767 = vmatprep.subr.bf16.mxu1 %v9950_v26 }
 0x3a0   : > { %v3743_v52 = vsel %vm2677_vm10, %v3136_v40, %v3742_v20  ;;  %6542 = vmatprep.mubr.msk.f32.mxu1 %vm1896_vm2, %v9939_v50 }
 0x3a1   : > { %6581 = vmatmul.mubr.msk.f32.vlgmr.msra.gmra.mrb[100].mxu0 %vm1896_vm2, %v3743_v52 }
 0x3a2   : > { %6756 = vmatpush3.bf16.msra.mxu0 %v6753_v37 }
 0x3a3   : > { %6543 = vmatmul.mubr.msk.f32.gmra.mrb[138].mxu1 %vm1896_vm2, %v9940_v58 }
 0x3a4   : > { %6545 = vmatprep.mubr.msk.f32.mxu1 %vm1896_vm2, %v9941_v12 }
 0x3a7   : > { %6546 = vmatmul.mubr.msk.f32.gmra.mrb[140].mxu1 %vm1896_vm2, %v9942_v56 }
 0x3a8   : > { %6548 = vmatprep.mubr.msk.f32.mxu1 %vm1896_vm2, %v9943_v44 }
 0x3ab   : > { %6549 = vmatmul.mubr.msk.f32.gmra.mrb[142].mxu1 %vm1896_vm2, %v9944_v39 }
 0x3ac   : > { %6551 = vmatprep.mubr.msk.f32.mxu1 %vm1896_vm2, %v9945_v5 }
 0x3af   : > { %6552 = vmatmul.mubr.msk.f32.gmra.mrb[144].mxu1 %vm1896_vm2, %v9946_v19 }
 0x3b0   : > { %6554 = vmatprep.mubr.msk.f32.mxu1 %vm1896_vm2, %v9947_v11 }
 0x3b3   : > { %6555 = vmatmul.mubr.msk.f32.gmra.mrb[146].mxu1 %vm1896_vm2, %v9948_v46 }
 0x3b4   : > { %6557 = vmatprep.mubr.msk.f32.mxu1 %vm1896_vm2, %v9949_v55 }
 0x3b7   : > { %6558 = vmatmul.mubr.msk.f32.gmra.mrb[148].mxu1 %vm1896_vm2, %v9951_v60 }
 0x3b8   : > { %6560 = vmatprep.mubr.msk.f32.mxu1 %vm1896_vm2, %v2961_v3 }
 0x3bb   : > { %6561 = vmatmul.mubr.msk.f32.gmra.mrb[150].mxu1 %vm1896_vm2, %v9952_v7 }
 0x3bc   : > { %6563 = vmatprep.mubr.msk.f32.mxu1 %vm1896_vm2, %v2963_v43  ;;  %v6757_v43 = vpack.c.bf16 %v4205_v57, %v4204_v53 }
 0x3be   : > { %6758 = vmatprep.subr.bf16.mxu0 %v6757_v43 }
 0x3bf   : > { %6564 = vmatmul.mubr.msk.f32.gmra.mrb[152].mxu1 %vm1896_vm2, %v9953_v36  ;;  %6760 = vmatpush3.bf16.msra.mxu0 %v6757_v43  ;;  %v9958_v36 = vld [vmem:[#allocation26_spill] sm:$0xff] }
 0x3c0   : > { %6566 = vmatprep.mubr.msk.f32.mxu1 %vm1896_vm2, %v9954_v4 }
 0x3c3   : > { %6567 = vmatmul.mubr.msk.f32.gmra.mrb[154].mxu1 %vm1896_vm2, %v9955_v10 }
 0x3c4   : > { %6569 = vmatprep.mubr.msk.f32.mxu1 %vm1896_vm2, %v9956_v54 }
 0x3c7   : > { %6570 = vmatmul.mubr.msk.f32.gmra.mrb[156].mxu1 %vm1896_vm2, %v2968_v8 }
 0x3c8   : > { %6695 = vmatprep.mubr.msk.f32.mxu1 %vm6883_vm3, %v9957_v45 }
 0x41b   : > { %v8447_v3 = vpop.f32.mrb[94].mxu1 }
 0x41c   : > { %v8449_v8 = vpop.f32.mrb[95].mxu1 }
 0x41f   : > { %v8451_v42 = vpop.f32.mrb[96].mxu1 }
 0x420   : > { %v8453_v61 = vpop.f32.mrb[97].mxu1 }
 0x423   : > { %v8455_v9 = vpop.f32.mrb[98].mxu1 }
 0x424   : > { %v8457_v29 = vpop.f32.mrb[99].mxu1 }
 0x427   : > { %v8459_v63 = vpop.f32.mrb[100].mxu1 }
 0x428   : > { %v8461_v1 = vpop.f32.mrb[101].mxu1 }
 0x42b   : > { %v8463_v24 = vpop.f32.mrb[102].mxu1 }
 0x42c   : > { %v8465_v47 = vpop.f32.mrb[103].mxu1 }
 0x42f   : > { %v8467_v32 = vpop.f32.mrb[104].mxu1 }
 0x430   : > { %v8469_v2 = vpop.f32.mrb[105].mxu1 }
 0x433   : > { %v8471_v33 = vpop.f32.mrb[106].mxu1 }
 0x434   : > { %v8473_v21 = vpop.f32.mrb[107].mxu1 }
 0x437   : > { %v8481_v16 = vpop.f32.mrb[108].mxu1 }
 0x438   : > { %v8483_v34 = vpop.f32.mrb[109].mxu1 }
 0x43b   : > { %v6502_v48 = vpop.f32.mrb[110].mxu1 }
 0x43c   : > { %v3479_v62 = vpop.f32.mrb[111].mxu1 }
 0x43f   : > { %v6505_v13 = vpop.f32.mrb[112].mxu1 }
 0x440   : > { %v3489_v25 = vpop.f32.mrb[113].mxu1 }
 0x443   : > { %v6508_v51 = vpop.f32.mrb[114].mxu1 }
 0x444   : > { %v3499_v15 = vpop.f32.mrb[115].mxu1 }
 0x447   : > { %v6511_v38 = vpop.f32.mrb[116].mxu1 }
 0x448   : > { %v8486_v22 = vpop.f32.mrb[117].mxu1 }
 0x44b   : > { %v8488_v41 = vpop.f32.mrb[118].mxu1 }
 0x44c   : > { %v8490_v35 = vpop.f32.mrb[119].mxu1 }
 0x44f   : > { %v8492_v31 = vpop.f32.mrb[120].mxu1 }
 0x450   : > { %v8494_v20 = vpop.f32.mrb[121].mxu1 }
 0x453   : > { %v8496_v14 = vpop.f32.mrb[122].mxu1 }
 0x454   : > { %v8498_v30 = vpop.f32.mrb[123].mxu1 }
 0x459   : > { %v8500_v40 = vpop.f32.mrb[124].mxu1 }
 0x45a   : > { %v8502_v52 = vpop.f32.mrb[125].mxu1 }
 0x45e   : > { %v8504_v27 = vpop.f32.mrb[126].mxu1 }
 0x45f   : > { %v8506_v50 = vpop.f32.mrb[127].mxu1 }
 0x462   : > { %v8508_v58 = vpop.f32.mrb[128].mxu1 }
 0x463   : > { %v8510_v12 = vpop.f32.mrb[129].mxu1 }
 0x466   : > { %v8512_v56 = vpop.f32.mrb[130].mxu1 }
 0x467   : > { %v8514_v44 = vpop.f32.mrb[131].mxu1 }
 0x46a   : > { %v8516_v39 = vpop.f32.mrb[132].mxu1 }
 0x46b   : > { %v8518_v5 = vpop.f32.mrb[133].mxu1 }
 0x46e   : > { %v8520_v19 = vpop.f32.mrb[134].mxu1 }
 0x46f   : > { %v8522_v11 = vpop.f32.mrb[135].mxu1 }
 0x472   : > { %v8527_v59 = vpop.f32.mrb[136].mxu1 }
 0x473   : > { %v8529_v49 = vpop.f32.mrb[137].mxu1 }
 0x474   : > { %v3812_v46 = vpop.f32.mrb[100].mxu0 }
 0x475   : > { %v3813_v55 = vadd.f32 %v5707_v17, %v3812_v46  ;;  %v6582_v60 = vpop.f32.mrb[101].mxu0 }
 0x476   : > { %v8532_v10 = vpop.f32.mrb[138].mxu1 }
 0x477   : > { %v3817_v7 = vcombine.high %v3813_v55, %v3813_v55  ;;  %v3824_v4 = vrot.slane %v3813_v55, %v9958_v36  ;;  %9959 = vst [vmem:[#allocation9_spill] sm:$0xff] %v8532_v10  ;;  %v8534_v54 = vpop.f32.mrb[139].mxu1 }
 0x478   : > { %9960 = vst [vmem:[#allocation8_spill] sm:$0xff] %v8534_v54 }
 0x479   : > { %v3831_v6 = vrot.slane %v3817_v7, %v9958_v36  ;;  %v3832_v28 = vcombine.high %v3824_v4, %v3824_v4  ;;  %v3840_v37 = vrot.slane %v3824_v4, %v9958_v36 }
 0x47a   : > { %v8542_v0 = vpop.f32.mrb[140].mxu1 }
 0x47b   : > { %v3833_v53 = vcombine.high %v3831_v6, %v3831_v6  ;;  %v8539_v57 = vrot.slane %v3831_v6, %v9958_v36  ;;  %v3854_v43 = vrot.slane %v3832_v28, %v9958_v36  ;;  %v3862_v23 = vcombine.high %v3840_v37, %v3840_v37  ;;  %9961 = vst [vmem:[#allocation11_spill] sm:$0xff] %v8542_v0  ;;  %v8547_v46 = vpop.f32.mrb[141].mxu1 }
 0x47c   : > { %v8545_v17 = vrot.slane %v3840_v37, %v9962_v18  ;;  %9963 = vst [vmem:[#allocation10_spill] sm:$0xff] %v8547_v46 }
 0x47d   : > { %v8550_v55 = vrot.slane %v3833_v53, %v9958_v36  ;;  %v3864_v60 = vcombine.high %v3854_v43, %v3854_v43  ;;  %v3877_v4 = vrot.slane %v3862_v23, %v9962_v18  ;;  %v8562_v26 = vrot.slane %v3854_v43, %v9962_v18 }
 0x47e   : > { %v3906_v6 = vadd.f32 %v8545_v17, %v8449_v8  ;;  %v3907_v28 = vadd.f32 %v8447_v3, %v8545_v17  ;;  %v8569_v7 = vrot.slane %v8539_v57, %v9962_v18  ;;  %v8571_v23 = vpop.f32.mrb[142].mxu1 }
 0x47f   : > { %v8565_v53 = vrot.slane %v3864_v60, %v9962_v18  ;;  %9964 = vst [vmem:[#allocation13_spill] sm:$0xff] %v8571_v23  ;;  %v8573_v36 = vadd.f32 %v6505_v13, %v3877_v4  ;;  %v8575_v8 = vadd.f32 %v3877_v4, %v3479_v62  ;;  %v8577_v3 = vadd.f32 %v6502_v48, %v3877_v4  ;;  %v8581_v37 = vpop.f32.mrb[143].mxu1 }
 0x480   : > { %v8579_v45 = vadd.f32 %v3877_v4, %v3489_v25  ;;  %9967 = vst [vmem:[#allocation14_spill] sm:$0xff] %v8581_v37  ;;  %v8585_v43 = vrot.slane %v8550_v55, %v9962_v18  ;;  %v8587_v60 = vadd.f32 %v6508_v51, %v3877_v4  ;;  %v8589_v46 = vadd.f32 %v3877_v4, %v3499_v15 }
 0x481   : > { %9965 = vst [vmem:[#allocation12_spill] sm:$0xff] %v8573_v36  ;;  %9966 = vst [vmem:[#allocation15_spill] sm:$0xff] %v8577_v3  ;;  %v8591_v0 = vadd.f32 %v6511_v38, %v3877_v4  ;;  %v9804_v13 = vmax.f32 %v8573_v36, 0.0  ;;  %v9805_v62 = vmax.f32 %v8575_v8, 0.0  ;;  %v8601_v51 = vadd.f32 %v3877_v4, %v8486_v22 }
 0x482   : > { %9968 = vst [vmem:[#allocation17_spill] sm:$0xff] %v8587_v60  ;;  %v8603_v15 = vpop.f32.mrb[144].mxu1  ;;  %v9972_v25 = vmax.f32 %v8577_v3, 0.0  ;;  %v9973_v23 = vmax.f32 %v8579_v45, 0.0 }
 0x483   : > { %9969 = vst [vmem:[#allocation16_spill] sm:$0xff] %v8591_v0  ;;  %9970 = vst [vmem:[#allocation19_spill] sm:$0xff] %v8601_v51  ;;  %v4081_v38 = vsel %vm1896_vm2, %v9804_v13, -inf  ;;  %v4076_v48 = vsel %vm1896_vm2, %v9805_v62, -inf  ;;  %v8617_v22 = vpop.f32.mrb[145].mxu1  ;;  %v9976_v13 = vmax.f32 %v8589_v46, 0.0 }
 0x484   : > { %9971 = vst [vmem:[#allocation18_spill] sm:$0xff] %v8603_v15  ;;  %v4077_v37 = vsel %vm1896_vm2, %v9972_v25, -inf  ;;  %v4079_v54 = vsel %vm1896_vm2, %v9973_v23, -inf  ;;  %9974 = vst [vmem:[#allocation21_spill] sm:$0xff] %v8617_v22  ;;  %v9975_v15 = vmax.f32 %v8587_v60, 0.0  ;;  %v9977_v62 = vmax.f32 %v8591_v0, 0.0 }
 0x485   : > { %v4078_v4 = vmax.f32 %v4076_v48, %v4077_v37  ;;  %v4083_v10 = vsel %vm1896_vm2, %v9976_v13, -inf  ;;  %v9809_v25 = vmax.f32 %v8601_v51, 0.0  ;;  %v8631_v23 = vadd.f32 %v8488_v41, %v8565_v53 }
 0x486   : > { %v4085_v36 = vsel %vm1896_vm2, %v9975_v15, -inf  ;;  %v4089_v3 = vsel %vm1896_vm2, %v9977_v62, -inf  ;;  %v3970_v22 = vmax.f32 %v3906_v6, 0.0  ;;  %v3971_v37 = vmax.f32 %v3907_v28, 0.0  ;;  %v8643_v62 = vpop.f32.mrb[146].mxu1 }
 0x487   : > { %9978 = vst [vmem:[#allocation20_spill] sm:$0xff] %v8631_v23  ;;  %v4080_v48 = vmax.f32 %v4078_v4, %v4079_v54  ;;  %v8635_v15 = vadd.f32 %v8565_v53, %v8490_v35  ;;  %v3908_v13 = vadd.f32 %v8545_v17, %v8453_v61  ;;  %v8641_v0 = vadd.f32 %v8492_v31, %v8565_v53  ;;  %v8652_v28 = vpop.f32.mrb[147].mxu1 }
 0x488   : > { %9979 = vst [vmem:[#allocation23_spill] sm:$0xff] %v8643_v62  ;;  %v4087_v41 = vsel %vm1896_vm2, %v9809_v25, -inf  ;;  %v9811_v6 = vmax.f32 %v8631_v23, 0.0  ;;  %v4034_v54 = vsel %vm1896_vm2, %v3970_v22, -inf  ;;  %v4035_v35 = vsel %vm1896_vm2, %v3971_v37, -inf  ;;  %6591 = vmatprep.mubr.msk.f32.mxu0 %vm1896_vm2, %v3970_v22 }
 0x489   : > { %v4082_v61 = vmax.f32 %v4080_v48, %v4081_v38  ;;  %v4036_v4 = vmax.f32 %v4034_v54, %v4035_v35  ;;  %v9812_v31 = vmax.f32 %v8635_v15, 0.0  ;;  %6592 = vmatmul.mubr.msk.f32.vlgmr.msra.gmra.mrb[102].mxu0 %vm1896_vm2, %v3971_v37  ;;  %v3972_v60 = vmax.f32 %v3908_v13, 0.0 }
 0x48a   : > { %v4098_v25 = vsel %vm1896_vm2, %v9811_v6, -inf  ;;  %v9814_v51 = vmax.f32 %v8641_v0, 0.0  ;;  %v8662_v62 = vadd.f32 %v8565_v53, %v8494_v20  ;;  %v3909_v22 = vadd.f32 %v8451_v42, %v8545_v17  ;;  %v8673_v54 = vpop.f32.mrb[148].mxu1 }
 0x48b   : > { %v4084_v38 = vmax.f32 %v4082_v61, %v4083_v10  ;;  %v4097_v48 = vsel %vm1896_vm2, %v9812_v31, -inf  ;;  %v4037_v37 = vsel %vm1896_vm2, %v3972_v60, -inf  ;;  %6594 = vmatprep.mubr.msk.f32.mxu0 %vm1896_vm2, %v3972_v60  ;;  %v3910_v13 = vadd.f32 %v8545_v17, %v8457_v29  ;;  %v8679_v61 = vpop.f32.mrb[149].mxu1 }
 0x48c   : > { %v4099_v35 = vmax.f32 %v4097_v48, %v4098_v25  ;;  %v4038_v20 = vmax.f32 %v4036_v4, %v4037_v37  ;;  %v4102_v42 = vsel %vm1896_vm2, %v9814_v51, -inf  ;;  %v9815_v10 = vmax.f32 %v8662_v62, 0.0 }
 0x48d   : > { %v4086_v6 = vmax.f32 %v4084_v38, %v4085_v36  ;;  %v3973_v31 = vmax.f32 %v3909_v22, 0.0  ;;  %v3974_v23 = vmax.f32 %v3910_v13, 0.0  ;;  %v8683_v60 = vadd.f32 %v8496_v14, %v8565_v53 }
 0x48e   : > { %v4100_v29 = vsel %vm1896_vm2, %v9815_v10, -inf  ;;  %v8690_v25 = vadd.f32 %v8565_v53, %v8498_v30  ;;  %v3911_v4 = vadd.f32 %v8455_v9, %v8545_v17  ;;  %v3912_v36 = vadd.f32 %v8545_v17, %v8461_v1  ;;  %v8699_v37 = vpop.f32.mrb[150].mxu1 }
 0x48f   : > { %v4088_v22 = vmax.f32 %v4086_v6, %v4087_v41  ;;  %v4101_v38 = vmax.f32 %v4099_v35, %v4100_v29  ;;  %v4039_v48 = vsel %vm1896_vm2, %v3973_v31, -inf  ;;  %6595 = vmatmul.mubr.msk.f32.gmra.mrb[104].mxu0 %vm1896_vm2, %v3973_v31  ;;  %v4041_v14 = vsel %vm1896_vm2, %v3974_v23, -inf  ;;  %v8704_v10 = vpop.f32.mrb[151].mxu1 }
 0x490   : > { %v4040_v13 = vmax.f32 %v4038_v20, %v4039_v48  ;;  %6597 = vmatprep.mubr.msk.f32.mxu0 %vm1896_vm2, %v3974_v23  ;;  %v9816_v30 = vmax.f32 %v8683_v60, 0.0  ;;  %v9821_v9 = vmax.f32 %v8690_v25, 0.0  ;;  %v3975_v51 = vmax.f32 %v3911_v4, 0.0 }
 0x491   : > { %v4090_v1 = vmax.f32 %v4088_v22, %v4089_v3  ;;  %v4103_v41 = vmax.f32 %v4101_v38, %v4102_v42  ;;  %v3976_v6 = vmax.f32 %v3912_v36, 0.0  ;;  %v8708_v31 = vadd.f32 %v8500_v40, %v8565_v53 }
 0x492   : > { %v9980_v35 = vcombine.high %v8539_v57, %v8539_v57  ;;  %v4042_v23 = vmax.f32 %v4040_v13, %v4041_v14  ;;  %v4106_v29 = vsel %vm1896_vm2, %v9816_v30, -inf  ;;  %v4104_v3 = vsel %vm1896_vm2, %v9821_v9, -inf  ;;  %v8725_v57 = vpop.f32.mrb[152].mxu1 }
 0x493   : > { %v4091_v42 = vrot.slane %v4090_v1, 4  ;;  %v4105_v4 = vmax.f32 %v4103_v41, %v4104_v3  ;;  %v4043_v40 = vsel %vm1896_vm2, %v3975_v51, -inf  ;;  %6598 = vmatmul.mubr.msk.f32.gmra.mrb[106].mxu0 %vm1896_vm2, %v3975_v51  ;;  %v9817_v36 = vmax.f32 %v8708_v31, 0.0  ;;  %v8736_v13 = vpop.f32.mrb[153].mxu1 }
 0x494   : > { %v8714_v20 = vrot.slane %v9980_v35, %v9962_v18  ;;  %v4044_v22 = vmax.f32 %v4042_v23, %v4043_v40  ;;  %6600 = vmatprep.mubr.msk.f32.mxu0 %vm1896_vm2, %v3976_v6  ;;  %v8730_v38 = vadd.f32 %v8565_v53, %v8502_v52  ;;  %v3913_v48 = vadd.f32 %v8459_v63, %v8545_v17 }
 0x495   : > { %v3914_v14 = vadd.f32 %v8562_v26, %v8465_v47  ;;  %v4092_v51 = vmax.f32 %v4090_v1, %v4091_v42  ;;  %v4045_v41 = vsel %vm1896_vm2, %v3976_v6, -inf  ;;  %v4107_v35 = vmax.f32 %v4105_v4, %v4106_v29 }
 0x496   : > { %v8741_v23 = vadd.f32 %v8504_v27, %v8569_v7  ;;  %v4046_v3 = vmax.f32 %v4044_v22, %v4045_v41  ;;  %v9818_v52 = vmax.f32 %v8730_v38, 0.0  ;;  %v3977_v53 = vmax.f32 %v3913_v48, 0.0  ;;  %v8751_v1 = vpop.f32.mrb[154].mxu1 }
 0x497   : > { %v3978_v40 = vmax.f32 %v3914_v14, 0.0  ;;  %v4093_v30 = vrot.slane %v4092_v51, 2  ;;  %v8747_v47 = vadd.f32 %v8569_v7, %v8506_v50  ;;  %v3915_v17 = vadd.f32 %v8463_v24, %v8562_v26  ;;  %v8763_v42 = vpop.f32.mrb[155].mxu1 }
 0x498   : > { %v9819_v63 = vmax.f32 %v8741_v23, 0.0  ;;  %v4110_v27 = vsel %vm1896_vm2, %v9817_v36, -inf  ;;  %v4108_v6 = vsel %vm1896_vm2, %v9818_v52, -inf  ;;  %v4047_v29 = vsel %vm1896_vm2, %v3977_v53, -inf  ;;  %6601 = vmatmul.mubr.msk.f32.gmra.mrb[108].mxu0 %vm1896_vm2, %v3977_v53 }
 0x499   : > { %v3916_v50 = vadd.f32 %v8562_v26, %v8469_v2  ;;  %v4094_v24 = vmax.f32 %v4092_v51, %v4093_v30  ;;  %v4109_v4 = vmax.f32 %v4107_v35, %v4108_v6  ;;  %v4048_v22 = vmax.f32 %v4046_v3, %v4047_v29  ;;  %6603 = vmatprep.mubr.msk.f32.mxu0 %vm1896_vm2, %v3978_v40 }
 0x49a   : > { %v4119_v48 = vsel %vm1896_vm2, %v9819_v63, -inf  ;;  %v9820_v14 = vmax.f32 %v8747_v47, 0.0  ;;  %v3979_v41 = vmax.f32 %v3915_v17, 0.0  ;;  %v8772_v53 = vadd.f32 %v8508_v58, %v8569_v7  ;;  %v8779_v35 = vpop.f32.mrb[156].mxu1 }
 0x49b   : > { %v3980_v36 = vmax.f32 %v3916_v50, 0.0  ;;  %v4111_v2 = vmax.f32 %v4109_v4, %v4110_v27  ;;  %v4049_v52 = vrot.slane %v4048_v22, 4  ;;  %v4055_v30 = vsel %vm1896_vm2, %v3978_v40, -inf  ;;  %v8792_v40 = vpop.f32.mrb[157].mxu1 }
 0x49c   : > { %v8777_v51 = vadd.f32 %v8569_v7, %v8510_v12  ;;  %v9981_v3 = vcombine.high %v8550_v55, %v8550_v55  ;;  %v4095_v6 = vrot.slane %v4094_v24, 1  ;;  %v4118_v58 = vsel %vm1896_vm2, %v9820_v14, -inf  ;;  %6604 = vmatmul.mubr.msk.f32.gmra.mrb[110].mxu0 %vm1896_vm2, %v3979_v41 }
 0x49d   : > { %v4056_v27 = vsel %vm1896_vm2, %v3979_v41, -inf  ;;  %v4112_v12 = vrot.slane %v4111_v2, 4  ;;  %v4050_v29 = vmax.f32 %v4048_v22, %v4049_v52  ;;  %v4120_v50 = vmax.f32 %v4118_v58, %v4119_v48  ;;  %6606 = vmatprep.mubr.msk.f32.mxu0 %vm1896_vm2, %v3980_v36 }
 0x49e   : > { %v8785_v17 = vrot.slane %v9981_v3, %v9962_v18  ;;  %v4058_v4 = vsel %vm1896_vm2, %v3980_v36, -inf  ;;  %v4057_v55 = vmax.f32 %v4055_v30, %v4056_v27  ;;  %v9833_v3 = vmax.f32 %v8772_v53, 0.0 }
 0x49f   : > { %v9837_v63 = vmax.f32 %v8777_v51, 0.0  ;;  %v3917_v14 = vadd.f32 %v8467_v32, %v8562_v26  ;;  %v4113_v9 = vmax.f32 %v4111_v2, %v4112_v12  ;;  %v4051_v18 = vrot.slane %v4050_v29, 2 }
 0x4a0   : > { %v3918_v41 = vadd.f32 %v8562_v26, %v8473_v21  ;;  %v8804_v52 = vadd.f32 %v8512_v56, %v8569_v7  ;;  %v4059_v22 = vmax.f32 %v4057_v55, %v4058_v4  ;;  %v8811_v30 = vadd.f32 %v8569_v7, %v8514_v44 }
 0x4a1   : > { %v4121_v36 = vsel %vm1896_vm2, %v9837_v63, -inf  ;;  %v3981_v48 = vmax.f32 %v3917_v14, 0.0  ;;  %v4114_v32 = vrot.slane %v4113_v9, 2  ;;  %v4052_v2 = vmax.f32 %v4050_v29, %v4051_v18 }
 0x4a2   : > { %v4122_v58 = vmax.f32 %v4120_v50, %v4121_v36  ;;  %v3982_v27 = vmax.f32 %v3918_v41, 0.0  ;;  %v9831_v56 = vmax.f32 %v8804_v52, 0.0  ;;  %v9832_v12 = vmax.f32 %v8811_v30, 0.0 }
 0x4a3   : > { %v4060_v21 = vsel %vm1896_vm2, %v3981_v48, -inf  ;;  %6607 = vmatmul.mubr.msk.f32.gmra.mrb[112].mxu0 %vm1896_vm2, %v3981_v48  ;;  %v3919_v4 = vadd.f32 %v8471_v33, %v8562_v26  ;;  %v8819_v14 = vmax.f32 %v4094_v24, %v4095_v6  ;;  %v8821_v55 = vmax.f32 %v4113_v9, %v4114_v32 }
 0x4a4   : > { %v4123_v44 = vsel %vm1896_vm2, %v9833_v3, -inf  ;;  %v4061_v18 = vmax.f32 %v4059_v22, %v4060_v21  ;;  %6609 = vmatprep.mubr.msk.f32.mxu0 %vm1896_vm2, %v3982_v27  ;;  %v4062_v29 = vsel %vm1896_vm2, %v3982_v27, -inf  ;;  %v4125_v41 = vsel %vm1896_vm2, %v9832_v12, -inf  ;;  %v9997_v3 = vld [vmem:[#allocation21_spill] sm:$0xff] }
 0x4a5   : > { %v4124_v50 = vmax.f32 %v4122_v58, %v4123_v44  ;;  %v3983_v36 = vmax.f32 %v3919_v4, 0.0  ;;  %v4053_v33 = vrot.slane %v4052_v2, 1  ;;  %v4127_v9 = vsel %vm1896_vm2, %v9831_v56, -inf }
 0x4a6   : > { %v4063_v24 = vmax.f32 %v4061_v18, %v4062_v29  ;;  %v3920_v6 = vadd.f32 %v8562_v26, %v8483_v34  ;;  %v8840_v32 = vadd.f32 %v8516_v39, %v8569_v7  ;;  %v8844_v58 = vadd.f32 %v8569_v7, %v8518_v5 }
 0x4a7   : > { %v4126_v22 = vmax.f32 %v4124_v50, %v4125_v41  ;;  %v4064_v48 = vsel %vm1896_vm2, %v3983_v36, -inf  ;;  %6610 = vmatmul.mubr.msk.f32.gmra.mrb[114].mxu0 %vm1896_vm2, %v3983_v36  ;;  %v4116_v27 = vrot.slane %v8821_v55, 1  ;;  %v3921_v34 = vadd.f32 %v8481_v16, %v8562_v26 }
 0x4a8   : > { %v4065_v21 = vmax.f32 %v4063_v24, %v4064_v48  ;;  %v3984_v4 = vmax.f32 %v3920_v6, 0.0  ;;  %v9824_v44 = vmax.f32 %v8840_v32, 0.0  ;;  %v9826_v18 = vmax.f32 %v8844_v58, 0.0 }
 0x4a9   : > { %v4128_v29 = vmax.f32 %v4126_v22, %v4127_v9  ;;  %v8853_v39 = vadd.f32 %v8520_v19, %v8585_v43  ;;  %v3985_v5 = vmax.f32 %v3921_v34, 0.0  ;;  %v8859_v7 = vadd.f32 %v8585_v43, %v8522_v11 }
 0x4aa   : > { %v4066_v50 = vsel %vm1896_vm2, %v3984_v4, -inf  ;;  %6612 = vmatprep.mubr.msk.f32.mxu0 %vm1896_vm2, %v3984_v4  ;;  %v8863_v26 = vadd.f32 %v8527_v59, %v8585_v43  ;;  %v4131_v41 = vsel %vm1896_vm2, %v9824_v44, -inf  ;;  %v4129_v19 = vsel %vm1896_vm2, %v9826_v18, -inf  ;;  %v9983_v4 = vld [vmem:[#allocation9_spill] sm:$0xff]  ;;  %v9985_v44 = vld [vmem:[#allocation15_spill] sm:$0xff] }
 0x4ab   : > { %v4067_v16 = vmax.f32 %v4065_v21, %v4066_v50  ;;  %v9823_v36 = vmax.f32 %v8853_v39, 0.0  ;;  %v4130_v24 = vmax.f32 %v4128_v29, %v4129_v19  ;;  %v4068_v9 = vsel %vm1896_vm2, %v3985_v5, -inf  ;;  %6613 = vmatmul.mubr.msk.f32.gmra.mrb[116].mxu0 %vm1896_vm2, %v3985_v5  ;;  %v9984_v5 = vld [vmem:[#allocation8_spill] sm:$0xff] }
 0x4ac   : > { %v9825_v11 = vmax.f32 %v8859_v7, 0.0  ;;  %v9827_v59 = vmax.f32 %v8863_v26, 0.0  ;;  %v9982_v22 = vmax.f32 %v8575_v8, 0.0  ;;  %v8884_v21 = vadd.f32 %v8585_v43, %v8529_v49 }
 0x4ad   : > { %v4069_v6 = vmax.f32 %v4067_v16, %v4068_v9  ;;  %v4140_v48 = vsel %vm1896_vm2, %v9823_v36, -inf  ;;  %v8888_v34 = vadd.f32 %v9983_v4, %v8585_v43  ;;  %v4054_v29 = vmax.f32 %v4052_v2, %v4053_v33  ;;  %v9987_v33 = vld [vmem:[#allocation11_spill] sm:$0xff] }
 0x4ae   : > { %6615 = vmatprep.mubr.msk.f32.mxu0 %vm1896_vm2, %v9982_v22  ;;  %v4132_v50 = vmax.f32 %v4130_v24, %v4131_v41  ;;  %v4139_v8 = vsel %vm1896_vm2, %v9825_v11, -inf  ;;  %v8895_v16 = vadd.f32 %v8585_v43, %v9984_v5  ;;  %v9828_v22 = vmax.f32 %v8884_v21, 0.0  ;;  %v9988_v24 = vld [vmem:[#allocation10_spill] sm:$0xff] }
 0x4af   : > { %v4070_v19 = vrot.slane %v4069_v6, 4  ;;  %v4141_v9 = vmax.f32 %v4139_v8, %v4140_v48  ;;  %v9829_v49 = vmax.f32 %v8888_v34, 0.0  ;;  %v9986_v4 = vmax.f32 %v9985_v44, 0.0 }
 0x4b0   : > { %v4133_v36 = vrot.slane %v4132_v50, 4  ;;  %v9830_v2 = vmax.f32 %v8895_v16, 0.0  ;;  %v8905_v41 = vadd.f32 %v9987_v33, %v8585_v43  ;;  %v8909_v5 = vadd.f32 %v8585_v43, %v9988_v24  ;;  %v9990_v33 = vld [vmem:[#allocation13_spill] sm:$0xff] }
 0x4b1   : > { %6616 = vmatmul.mubr.msk.f32.gmra.mrb[118].mxu0 %vm1896_vm2, %v9986_v4  ;;  %v4071_v48 = vmax.f32 %v4069_v6, %v4070_v19  ;;  %v9989_v8 = vmax.f32 %v8579_v45, 0.0  ;;  %v4144_v44 = vsel %vm1896_vm2, %v9827_v59, -inf  ;;  %v4142_v4 = vsel %vm1896_vm2, %v9828_v22, -inf  ;;  %v9992_v59 = vld [vmem:[#allocation14_spill] sm:$0xff] }
 0x4b2   : > { %v8922_v11 = vadd.f32 %v9990_v33, %v8714_v20  ;;  %v4134_v18 = vmax.f32 %v4132_v50, %v4133_v36  ;;  %v4143_v43 = vmax.f32 %v4141_v9, %v4142_v4  ;;  %v4148_v45 = vsel %vm1896_vm2, %v9829_v49, -inf  ;;  %v9993_v36 = vld [vmem:[#allocation12_spill] sm:$0xff]  ;;  %v9995_v49 = vld [vmem:[#allocation18_spill] sm:$0xff] }
 0x4b3   : > { %6618 = vmatprep.mubr.msk.f32.mxu0 %vm1896_vm2, %v9989_v8  ;;  %v4146_v6 = vsel %vm1896_vm2, %v9830_v2, -inf  ;;  %v4072_v19 = vrot.slane %v4071_v48, 2  ;;  %v9834_v24 = vmax.f32 %v8909_v5, 0.0  ;;  %v8934_v22 = vadd.f32 %v8714_v20, %v9992_v59 }
 0x4b4   : > { %9991 = vst [vmem:[#allocation22_spill] sm:$0xff] %v8922_v11  ;;  %v9835_v8 = vmax.f32 %v8922_v11, 0.0  ;;  %v4135_v33 = vrot.slane %v4134_v18, 2  ;;  %v9994_v50 = vmax.f32 %v9993_v36, 0.0  ;;  %v4145_v9 = vmax.f32 %v4143_v43, %v4144_v44 }
 0x4b5   : > { %v4017_v4 = vmax.f32 %v8905_v41, 0.0  ;;  %v8942_v2 = vadd.f32 %v9995_v49, %v8714_v20  ;;  %v4073_v56 = vmax.f32 %v4071_v48, %v4072_v19  ;;  %v9996_v12 = vmax.f32 %v8589_v46, 0.0  ;;  %v9998_v19 = vld [vmem:[#allocation23_spill] sm:$0xff] }
 0x4b6   : > { %6619 = vmatmul.mubr.msk.f32.gmra.mrb[120].mxu0 %vm1896_vm2, %v9994_v50  ;;  %v4150_v59 = vsel %vm1896_vm2, %v9834_v24, -inf  ;;  %v4161_v36 = vsel %vm1896_vm2, %v9835_v8, -inf  ;;  %v9836_v44 = vmax.f32 %v8934_v22, 0.0  ;;  %v4136_v43 = vmax.f32 %v4134_v18, %v4135_v33  ;;  %v10001_v49 = vld [vmem:[#allocation19_spill] sm:$0xff] }
 0x4b7   : > { %6621 = vmatprep.mubr.msk.f32.mxu0 %vm1896_vm2, %v9996_v12  ;;  %v4147_v50 = vmax.f32 %v4145_v9, %v4146_v6  ;;  %v8957_v48 = vadd.f32 %v8714_v20, %v9997_v3  ;;  %v4074_v46 = vrot.slane %v4073_v56, 1  ;;  %v8964_v24 = vadd.f32 %v9998_v19, %v8714_v20  ;;  %v9999_v6 = vld [vmem:[#allocation17_spill] sm:$0xff] }
 0x4b8   : > { %v4160_v12 = vsel %vm1896_vm2, %v9836_v44, -inf  ;;  %v8968_v8 = vadd.f32 %v8714_v20, %v8652_v28  ;;  %v8973_v18 = vmax.f32 %v8821_v55, %v4116_v27  ;;  %v4137_v3 = vrot.slane %v4136_v43, 1 }
 0x4b9   : > { %v10000_v33 = vmax.f32 %v9999_v6, 0.0  ;;  %v4149_v9 = vmax.f32 %v4147_v50, %v4148_v45  ;;  %v4162_v44 = vmax.f32 %v4160_v12, %v4161_v36  ;;  %v4075_v63 = vmax.f32 %v4073_v56, %v4074_v46 }
 0x4ba   : > { %v10002_v19 = vmax.f32 %v10001_v49, 0.0  ;;  %v4152_v28 = vsel %vm1896_vm2, %v4017_v4, -inf  ;;  %v4020_v11 = vmax.f32 %v8957_v48, 0.0  ;;  %v4022_v55 = vmax.f32 %v8968_v8, 0.0 }
 0x4bb   : > { %6622 = vmatmul.mubr.msk.f32.gmra.mrb[122].mxu0 %vm1896_vm2, %v10000_v33  ;;  %v4151_v27 = vmax.f32 %v4149_v9, %v4150_v59  ;;  %v4023_v6 = vmax.f32 %v8964_v24, 0.0  ;;  %v8989_v45 = vadd.f32 %v8673_v54, %v8714_v20  ;;  %v8993_v56 = vadd.f32 %v8714_v20, %v8679_v61  ;;  %v10004_v33 = vld [vmem:[#allocation16_spill] sm:$0xff] }
 0x4bc   : > { %6624 = vmatprep.mubr.msk.f32.mxu0 %vm1896_vm2, %v10002_v19  ;;  %v4138_v36 = vmax.f32 %v4136_v43, %v4137_v3  ;;  %v4802_v50 = vsel %vm2665_vm4, %v4075_v63, %v4054_v29  ;;  %v10003_v49 = vmax.f32 %v8942_v2, 0.0  ;;  %v4163_v59 = vsel %vm1896_vm2, %v4020_v11, -inf }
 0x4bd   : > { %v4153_v12 = vmax.f32 %v4151_v27, %v4152_v28  ;;  %v10005_v9 = vmax.f32 %v10004_v33, 0.0  ;;  %v4164_v54 = vmax.f32 %v4162_v44, %v4163_v59  ;;  %v4167_v61 = vsel %vm1896_vm2, %v4022_v55, -inf  ;;  %v10007_v33 = vld [vmem:[#allocation20_spill] sm:$0xff] }
 0x4be   : > { %v4165_v46 = vsel %vm1896_vm2, %v10003_v49, -inf  ;;  %v9842_v20 = vmax.f32 %v8993_v56, 0.0  ;;  %v10006_v63 = vmax.f32 %v8635_v15, 0.0  ;;  %v9014_v29 = vadd.f32 %v8699_v37, %v8785_v17 }
 0x4bf   : > { %6625 = vmatmul.mubr.msk.f32.gmra.mrb[124].mxu0 %vm1896_vm2, %v10005_v9  ;;  %v9018_v43 = vadd.f32 %v8785_v17, %v8704_v10  ;;  %v9022_v44 = vadd.f32 %v8725_v57, %v8785_v17  ;;  %v9026_v3 = vadd.f32 %v8785_v17, %v8736_v13  ;;  %v4154_v19 = vrot.slane %v4153_v12, 4 }
 0x4c0   : > { %6627 = vmatprep.mubr.msk.f32.mxu0 %vm1896_vm2, %v10006_v63  ;;  %v4169_v15 = vsel %vm1896_vm2, %v4023_v6, -inf  ;;  %v4166_v28 = vmax.f32 %v4164_v54, %v4165_v46  ;;  %v4025_v37 = vmax.f32 %v8989_v45, 0.0  ;;  %v9839_v27 = vmax.f32 %v9014_v29, 0.0 }
 0x4c1   : > { %v9841_v10 = vmax.f32 %v9018_v43, 0.0  ;;  %v4029_v49 = vmax.f32 %v9022_v44, 0.0  ;;  %v9840_v57 = vmax.f32 %v9026_v3, 0.0  ;;  %v4155_v59 = vmax.f32 %v4153_v12, %v4154_v19  ;;  %v5268_v44 = vld [vmem:[%s9780_s14 + $0x8] sm:$0xff] }
 0x4c2   : > { %v10008_v13 = vmax.f32 %v10007_v33, 0.0  ;;  %v4168_v9 = vmax.f32 %v4166_v28, %v4167_v61  ;;  %v9041_v63 = vadd.f32 %v8751_v1, %v8785_v17  ;;  %v9045_v46 = vadd.f32 %v8785_v17, %v8763_v42 }
 0x4c3   : > { %v10009_v54 = vmax.f32 %v8662_v62, 0.0  ;;  %v4171_v12 = vsel %vm1896_vm2, %v9842_v20, -inf  ;;  %v4182_v61 = vsel %vm1896_vm2, %v9839_v27, -inf  ;;  %v4181_v1 = vsel %vm1896_vm2, %v9841_v10, -inf }
 0x4c4   : > { %6628 = vmatmul.mubr.msk.f32.gmra.mrb[126].mxu0 %vm1896_vm2, %v10008_v13  ;;  %v4184_v42 = vsel %vm1896_vm2, %v9840_v57, -inf  ;;  %v4156_v19 = vrot.slane %v4155_v59, 2  ;;  %v4173_v62 = vsel %vm1896_vm2, %v4025_v37, -inf  ;;  %v4170_v28 = vmax.f32 %v4168_v9, %v4169_v15 }
 0x4c5   : > { %6630 = vmatprep.mubr.msk.f32.mxu0 %vm1896_vm2, %v10009_v54  ;;  %v4183_v33 = vmax.f32 %v4181_v1, %v4182_v61  ;;  %v4030_v13 = vmax.f32 %v9045_v46, 0.0  ;;  %v9068_v54 = vadd.f32 %v8779_v35, %v8785_v17  ;;  %v9072_v27 = vadd.f32 %v8785_v17, %v8792_v40 }
 0x4c6   : > { %v4803_v57 = vsel %vm2667_vm5, %v8819_v14, %v4802_v50  ;;  %v4157_v10 = vmax.f32 %v4155_v59, %v4156_v19  ;;  %v10010_v20 = vmax.f32 %v8641_v0, 0.0  ;;  %v4172_v15 = vmax.f32 %v4170_v28, %v4171_v12 }
 0x4c7   : > { %v4186_v9 = vsel %vm1896_vm2, %v4029_v49, -inf  ;;  %v4185_v61 = vmax.f32 %v4183_v33, %v4184_v42  ;;  %v10011_v35 = vmax.f32 %v8690_v25, 0.0  ;;  %v4031_v17 = vmax.f32 %v9041_v63, 0.0 }
 0x4c8   : > { %6631 = vmatmul.mubr.msk.f32.gmra.mrb[128].mxu0 %vm1896_vm2, %v10010_v20  ;;  %v4188_v40 = vsel %vm1896_vm2, %v4030_v13, -inf  ;;  %v4032_v0 = vmax.f32 %v9072_v27, 0.0  ;;  %v4804_v14 = vsel %vm2669_vm6, %v8973_v18, %v4803_v57  ;;  %v4158_v50 = vrot.slane %v4157_v10, 1  ;;  %v5270_v27 = vld [vmem:[%s9780_s14 + $0x18] sm:$0xff] }
 0x4c9   : > { %6633 = vmatprep.mubr.msk.f32.mxu0 %vm1896_vm2, %v10011_v35  ;;  %v4174_v20 = vmax.f32 %v4172_v15, %v4173_v62  ;;  %v4187_v59 = vmax.f32 %v4185_v61, %v4186_v9  ;;  %v4805_v12 = vsel %vm2671_vm7, %v4138_v36, %v4804_v14  ;;  %v10012_v25 = vmax.f32 %v8683_v60, 0.0 }
 0x4ca   : > { %v4159_v1 = vmax.f32 %v4157_v10, %v4158_v50  ;;  %v10013_v28 = vmax.f32 %v8730_v38, 0.0  ;;  %v4190_v18 = vsel %vm1896_vm2, %v4031_v17, -inf  ;;  %v4033_v57 = vmax.f32 %v9068_v54, 0.0 }
 0x4cb   : > { %v4175_v42 = vrot.slane %v4174_v20, 4  ;;  %v4189_v19 = vmax.f32 %v4187_v59, %v4188_v40  ;;  %v4192_v36 = vsel %vm1896_vm2, %v4032_v0, -inf  ;;  %v10014_v15 = vmax.f32 %v8708_v31, 0.0 }
 0x4cc   : > { %6634 = vmatmul.mubr.msk.f32.gmra.mrb[130].mxu0 %vm1896_vm2, %v10012_v25  ;;  %v4806_v62 = vsel %vm2673_vm8, %v4159_v1, %v4805_v12  ;;  %v10015_v9 = vmax.f32 %v8747_v47, 0.0  ;;  %v4194_v54 = vsel %vm1896_vm2, %v4033_v57, -inf  ;;  %v10016_v14 = vmax.f32 %v8741_v23, 0.0 }
 0x4cd   : > { %6636 = vmatprep.mubr.msk.f32.mxu0 %vm1896_vm2, %v10013_v28  ;;  %v4176_v10 = vmax.f32 %v4174_v20, %v4175_v42  ;;  %v4191_v60 = vmax.f32 %v4189_v19, %v4190_v18  ;;  %v10017_v20 = vmax.f32 %v8777_v51, 0.0  ;;  %v10018_v47 = vmax.f32 %v8772_v53, 0.0 }
 0x4ce   : > { %v10019_v25 = vmax.f32 %v8811_v30, 0.0  ;;  %v10020_v42 = vmax.f32 %v8804_v52, 0.0  ;;  %v10021_v19 = vmax.f32 %v8844_v58, 0.0  ;;  %v10022_v28 = vmax.f32 %v8840_v32, 0.0 }
 0x4cf   : > { %v4177_v33 = vrot.slane %v4176_v10, 2  ;;  %v4193_v38 = vmax.f32 %v4191_v60, %v4192_v36  ;;  %v10023_v30 = vmax.f32 %v8859_v7, 0.0  ;;  %v10024_v52 = vmov 0.0  }
 0x4d0   : > { %6637 = vmatmul.mubr.msk.f32.gmra.mrb[132].mxu0 %vm1896_vm2, %v10014_v15  ;;  %v10025_v58 = vmax.f32 %v8853_v39, 0.0  ;;  %v10026_v36 = vmax.f32 %v8884_v21, 0.0  ;;  %v10027_v32 = vmax.f32 %v8863_v26, 0.0  ;;  %v10028_v7 = vmax.f32 %v8895_v16, 0.0  ;;  %v10032_v21 = vld [vmem:[#allocation22_spill] sm:$0xff] }
 0x4d1   : > { %6639 = vmatprep.mubr.msk.f32.mxu0 %vm1896_vm2, %v10015_v9  ;;  %v4178_v61 = vmax.f32 %v4176_v10, %v4177_v33  ;;  %v4195_v35 = vmax.f32 %v4193_v38, %v4194_v54  ;;  %v10029_v10 = vmax.f32 %v8888_v34, 0.0  ;;  %v10030_v39 = vmax.f32 %v8909_v5, 0.0 }
 0x4d2   : > { %v10031_v26 = vmax.f32 %v8934_v22, 0.0  ;;  %v10033_v16 = vmax.f32 %v10032_v21, 0.0  ;;  %v10034_v34 = vmax.f32 %v8942_v2, 0.0  ;;  %v10035_v22 = vmax.f32 %v8993_v56, 0.0 }
 0x4d3   : > { %v4179_v40 = vrot.slane %v4178_v61, 1  ;;  %v4196_v50 = vrot.slane %v4195_v35, 4  ;;  %v10037_v2 = vmax.f32 %v9014_v29, 0.0  ;;  %v10038_v41 = vmax.f32 %v9026_v3, 0.0  ;;  %v5269_v3 = vld [vmem:[%s9780_s14 + $0x10] sm:$0xff] }
 0x4d4   : > { %6640 = vmatmul.mubr.msk.f32.gmra.mrb[134].mxu0 %vm1896_vm2, %v10016_v14  ;;  %v10039_v46 = vmov 0.0|0.0  }
 0x4d5   : > { %6642 = vmatprep.mubr.msk.f32.mxu0 %vm1896_vm2, %v10017_v20  ;;  %v4180_v31 = vmax.f32 %v4178_v61, %v4179_v40  ;;  %v4197_v59 = vmax.f32 %v4195_v35, %v4196_v50 }
 0x4d7   : > { %v4198_v12 = vrot.slane %v4197_v59, 2  ;;  %v4807_v1 = vsel %vm2675_vm9, %v4180_v31, %v4806_v62 }
 0x4d8   : > { %6643 = vmatmul.mubr.msk.f32.gmra.mrb[136].mxu0 %vm1896_vm2, %v10018_v47 }
 0x4d9   : > { %6645 = vmatprep.mubr.msk.f32.mxu0 %vm1896_vm2, %v10019_v25  ;;  %v4199_v23 = vmax.f32 %v4197_v59, %v4198_v12 }
 0x4db   : > { %v4200_v51 = vrot.slane %v4199_v23, 1 }
 0x4dc   : > { %6646 = vmatmul.mubr.msk.f32.gmra.mrb[138].mxu0 %vm1896_vm2, %v10020_v42 }
 0x4dd   : > { %6648 = vmatprep.mubr.msk.f32.mxu0 %vm1896_vm2, %v10021_v19  ;;  %v4201_v53 = vmax.f32 %v4199_v23, %v4200_v51 }
 0x4df   : > { %v4808_v18 = vsel %vm2677_vm10, %v4201_v53, %v4807_v1  ;;  %v5773_v53 = vld [vmem:[%s9779_s13] ss:$0 sm:$0xff] }
 0x4e0   : > { %6649 = vmatmul.mubr.msk.f32.gmra.mrb[140].mxu0 %vm1896_vm2, %v10022_v28  ;;  %6696 = vmatmul.mubr.msk.f32.vlgmr.msra.gmra.mrb[158].mxu1 %vm1896_vm2, %v4808_v18 }
 0x4e1   : > { %6651 = vmatprep.mubr.msk.f32.mxu0 %vm1896_vm2, %v10023_v30  ;;  %6706 = vmatprep.mubr.msk.f32.mxu1 %vm6883_vm3, %v10024_v52 }
 0x4e4   : > { %6652 = vmatmul.mubr.msk.f32.gmra.mrb[142].mxu0 %vm1896_vm2, %v10025_v58 }
 0x4e5   : > { %6654 = vmatprep.mubr.msk.f32.mxu0 %vm1896_vm2, %v10026_v36 }
 0x4e8   : > { %6655 = vmatmul.mubr.msk.f32.gmra.mrb[144].mxu0 %vm1896_vm2, %v10027_v32 }
 0x4e9   : > { %6657 = vmatprep.mubr.msk.f32.mxu0 %vm1896_vm2, %v10028_v7  ;;  %v10040_v7 = vld [vmem:[#allocation26_spill] sm:$0xff] }
 0x4ec   : > { %6658 = vmatmul.mubr.msk.f32.gmra.mrb[146].mxu0 %vm1896_vm2, %v10029_v10 }
 0x4ed   : > { %6660 = vmatprep.mubr.msk.f32.mxu0 %vm1896_vm2, %v10030_v39 }
 0x4f0   : > { %6661 = vmatmul.mubr.msk.f32.gmra.mrb[148].mxu0 %vm1896_vm2, %v4017_v4 }
 0x4f1   : > { %6663 = vmatprep.mubr.msk.f32.mxu0 %vm1896_vm2, %v10031_v26 }
 0x4f4   : > { %6664 = vmatmul.mubr.msk.f32.gmra.mrb[150].mxu0 %vm1896_vm2, %v10033_v16 }
 0x4f5   : > { %6666 = vmatprep.mubr.msk.f32.mxu0 %vm1896_vm2, %v4020_v11  ;;  %v10036_v11 = vmax.f32 %v9018_v43, 0.0  ;;  %v5267_v43 = vld [vmem:[%s9780_s14] sm:$0xff] }
 0x4f8   : > { %6667 = vmatmul.mubr.msk.f32.gmra.mrb[152].mxu0 %vm1896_vm2, %v10034_v34 }
 0x4f9   : > { %6669 = vmatprep.mubr.msk.f32.mxu0 %vm1896_vm2, %v4022_v55 }
 0x4fc   : > { %6670 = vmatmul.mubr.msk.f32.gmra.mrb[154].mxu0 %vm1896_vm2, %v4023_v6 }
 0x4fd   : > { %6672 = vmatprep.mubr.msk.f32.mxu0 %vm1896_vm2, %v10035_v22 }
 0x500   : > { %6673 = vmatmul.mubr.msk.f32.gmra.mrb[156].mxu0 %vm1896_vm2, %v4025_v37  ;;  %v6768_v37 = vpack.c.bf16 %v5268_v44, %v5267_v43  ;;  %v10041_v43 = vld [vmem:[#allocation27_spill] sm:$0xff] }
 0x501   : > { %6675 = vmatprep.mubr.msk.f32.mxu0 %vm1896_vm2, %v10036_v11 }
 0x502   : > { %6769 = vmatpush3.bf16.msra.mxu1 %v6768_v37 }
 0x503   : > { %6770 = vmatprep.subr.bf16.mxu1 %v10039_v46 }
 0x504   : > { %6676 = vmatmul.mubr.msk.f32.gmra.mrb[158].mxu0 %vm1896_vm2, %v10037_v2 }
 0x505   : > { %6678 = vmatprep.mubr.msk.f32.mxu0 %vm1896_vm2, %v10038_v41 }
 0x508   : > { %6679 = vmatmul.mubr.msk.f32.gmra.mrb[160].mxu0 %vm1896_vm2, %v4029_v49  ;;  %v6771_v49 = vpack.c.bf16 %v5270_v27, %v5269_v3 }
 0x509   : > { %6681 = vmatprep.mubr.msk.f32.mxu0 %vm1896_vm2, %v4030_v13 }
 0x50a   : > { %6772 = vmatpush3.bf16.msra.mxu1 %v6771_v49 }
 0x50c   : > { %6682 = vmatmul.mubr.msk.f32.gmra.mrb[162].mxu0 %vm1896_vm2, %v4031_v17 }
 0x50d   : > { %6684 = vmatprep.mubr.msk.f32.mxu0 %vm1896_vm2, %v4032_v0 }
 0x510   : > { %6685 = vmatmul.mubr.msk.f32.gmra.mrb[164].mxu0 %vm1896_vm2, %v4033_v57 }
 0x55c   : > { %v9210_v5 = vpop.f32.mrb[102].mxu0 }
 0x55d   : > { %v9212_v24 = vpop.f32.mrb[103].mxu0 }
 0x562   : > { %v9214_v8 = vpop.f32.mrb[104].mxu0 }
 0x563   : > { %v9216_v4 = vpop.f32.mrb[105].mxu0 }
 0x566   : > { %v9218_v48 = vpop.f32.mrb[106].mxu0 }
 0x567   : > { %v9220_v55 = vpop.f32.mrb[107].mxu0 }
 0x56b   : > { %v9222_v6 = vpop.f32.mrb[108].mxu0 }
 0x56c   : > { %v9224_v45 = vpop.f32.mrb[109].mxu0 }
 0x56f   : > { %v9226_v56 = vpop.f32.mrb[110].mxu0 }
 0x570   : > { %v9228_v29 = vpop.f32.mrb[111].mxu0 }
 0x576   : > { %v9242_v63 = vpop.f32.mrb[112].mxu0 }
 0x577   : > { %v4514_v13 = vpop.f32.mrb[113].mxu0 }
 0x57a   : > { %v9245_v17 = vpop.f32.mrb[114].mxu0 }
 0x57b   : > { %v9247_v0 = vpop.f32.mrb[115].mxu0 }
 0x57e   : > { %v9249_v57 = vpop.f32.mrb[116].mxu0 }
 0x57f   : > { %v9251_v60 = vpop.f32.mrb[117].mxu0 }
 0x584   : > { %v6617_v62 = vpop.f32.mrb[118].mxu0 }
 0x585   : > { %v4544_v33 = vpop.f32.mrb[119].mxu0 }
 0x589   : > { %v9253_v15 = vpop.f32.mrb[120].mxu0 }
 0x58a   : > { %v4554_v38 = vpop.f32.mrb[121].mxu0 }
 0x58e   : > { %v9255_v9 = vpop.f32.mrb[122].mxu0 }
 0x58f   : > { %v9257_v54 = vpop.f32.mrb[123].mxu0 }
 0x592   : > { %v9259_v61 = vpop.f32.mrb[124].mxu0 }
 0x593   : > { %v9261_v35 = vpop.f32.mrb[125].mxu0 }
 0x597   : > { %v9263_v40 = vpop.f32.mrb[126].mxu0 }
 0x598   : > { %v9265_v14 = vpop.f32.mrb[127].mxu0 }
 0x59b   : > { %v9267_v50 = vpop.f32.mrb[128].mxu0 }
 0x59c   : > { %v9269_v20 = vpop.f32.mrb[129].mxu0 }
 0x59f   : > { %v9271_v31 = vpop.f32.mrb[130].mxu0 }
 0x5a0   : > { %v9273_v59 = vpop.f32.mrb[131].mxu0 }
 0x5a3   : > { %v9275_v47 = vpop.f32.mrb[132].mxu0 }
 0x5a4   : > { %v9277_v12 = vpop.f32.mrb[133].mxu0 }
 0x5a7   : > { %v9279_v1 = vpop.f32.mrb[134].mxu0 }
 0x5a8   : > { %v9281_v25 = vpop.f32.mrb[135].mxu0 }
 0x5ab   : > { %v9283_v23 = vpop.f32.mrb[136].mxu0 }
 0x5ac   : > { %v9285_v42 = vpop.f32.mrb[137].mxu0 }
 0x5af   : > { %v9287_v51 = vpop.f32.mrb[138].mxu0 }
 0x5b0   : > { %v9289_v19 = vpop.f32.mrb[139].mxu0 }
 0x5b3   : > { %v9294_v28 = vpop.f32.mrb[140].mxu0  ;;  %v4877_v30 = vpop.f32.mrb[158].mxu1 }
 0x5b4   : > { %v9296_v18 = vpop.f32.mrb[141].mxu0  ;;  %v4878_v52 = vadd.f32 %v5773_v53, %v4877_v30  ;;  %v6697_v58 = vpop.f32.mrb[159].mxu1 }
 0x5b6   : > { %v4882_v32 = vcombine.high %v4878_v52, %v4878_v52  ;;  %v4889_v10 = vrot.slane %v4878_v52, %v10040_v7 }
 0x5b7   : > { %v9298_v36 = vpop.f32.mrb[142].mxu0 }
 0x5b8   : > { %v9301_v39 = vpop.f32.mrb[143].mxu0  ;;  %v4896_v26 = vrot.slane %v4882_v32, %v10040_v7  ;;  %v4897_v21 = vcombine.high %v4889_v10, %v4889_v10  ;;  %v4905_v16 = vrot.slane %v4889_v10, %v10040_v7 }
 0x5ba   : > { %v4912_v22 = vrot.slane %v4896_v26, %v10040_v7  ;;  %v4919_v11 = vrot.slane %v4897_v21, %v10040_v7  ;;  %v4927_v2 = vcombine.high %v4905_v16, %v4905_v16  ;;  %v4934_v44 = vrot.slane %v4905_v16, %v10041_v43 }
 0x5bb   : > { %v9305_v34 = vpop.f32.mrb[144].mxu0  ;;  %v4898_v3 = vcombine.high %v4896_v26, %v4896_v26 }
 0x5bc   : > { %v9309_v41 = vpop.f32.mrb[145].mxu0  ;;  %v4938_v37 = vrot.slane %v4919_v11, %v10041_v43  ;;  %v4942_v27 = vrot.slane %v4927_v2, %v10041_v43  ;;  %v9315_v49 = vadd.f32 %v4934_v44, %v9212_v24  ;;  %v9318_v46 = vadd.f32 %v9210_v5, %v4934_v44 }
 0x5bd   : > { %v4928_v30 = vcombine.high %v4912_v22, %v4912_v22  ;;  %v4929_v52 = vcombine.high %v4919_v11, %v4919_v11  ;;  %v9325_v32 = vadd.f32 %v4934_v44, %v9216_v4  ;;  %v9328_v10 = vadd.f32 %v9214_v8, %v4934_v44 }
 0x5be   : > { %v9331_v26 = vadd.f32 %v4934_v44, %v9220_v55  ;;  %v9334_v24 = vadd.f32 %v4938_v37, %v9228_v29  ;;  %v9337_v5 = vrot.slane %v4898_v3, %v10040_v7  ;;  %v9340_v21 = vadd.f32 %v9226_v56, %v4938_v37 }
 0x5bf   : > { %v9320_v53 = vpop.f32.mrb[146].mxu0  ;;  %v9342_v16 = vadd.f32 %v4938_v37, %v4514_v13  ;;  %v9345_v4 = vadd.f32 %v9242_v63, %v4938_v37  ;;  %v9347_v11 = vadd.f32 %v4942_v27, %v4544_v33  ;;  %v9349_v8 = vadd.f32 %v6617_v62, %v4942_v27 }
 0x5c0   : > { %v9322_v58 = vpop.f32.mrb[147].mxu0  ;;  %v9351_v55 = vadd.f32 %v4942_v27, %v4554_v38  ;;  %v4946_v7 = vrot.slane %v4929_v52, %v10041_v43  ;;  %v9357_v3 = vrot.slane %v4928_v30, %v10041_v43  ;;  %v4950_v56 = vrot.slane %v4912_v22, %v10041_v43 }
 0x5c1   : > { %v4954_v63 = vrot.slane %v9337_v5, %v10041_v43  ;;  %v9363_v13 = vadd.f32 %v9218_v48, %v4934_v44  ;;  %v9366_v62 = vadd.f32 %v4934_v44, %v9224_v45  ;;  %v9369_v33 = vadd.f32 %v9222_v6, %v4934_v44 }
 0x5c2   : > { %10042 = vst [vmem:[#allocation25_spill] sm:$0xff] %v9351_v55  ;;  %v9372_v38 = vadd.f32 %v4938_v37, %v9247_v0  ;;  %v9375_v30 = vadd.f32 %v9245_v17, %v4938_v37  ;;  %v9378_v22 = vadd.f32 %v4938_v37, %v9251_v60  ;;  %v9381_v55 = vadd.f32 %v9249_v57, %v4938_v37 }
 0x5c3   : > { %v9353_v2 = vpop.f32.mrb[148].mxu0  ;;  %v9384_v48 = vadd.f32 %v9253_v15, %v4942_v27  ;;  %v9387_v45 = vadd.f32 %v4942_v27, %v9257_v54  ;;  %v9390_v6 = vadd.f32 %v9255_v9, %v4942_v27  ;;  %v9394_v44 = vadd.f32 %v4942_v27, %v9261_v35 }
 0x5c4   : > { %v4694_v29 = vpop.f32.mrb[149].mxu0  ;;  %v9397_v60 = vadd.f32 %v9259_v61, %v4942_v27  ;;  %v9400_v57 = vadd.f32 %v4946_v7, %v9265_v14  ;;  %v9404_v54 = vadd.f32 %v9263_v40, %v4946_v7  ;;  %v9407_v9 = vadd.f32 %v4946_v7, %v9269_v20 }
 0x5c5   : > { %v9410_v37 = vadd.f32 %v9267_v50, %v4946_v7  ;;  %v9413_v35 = vadd.f32 %v4946_v7, %v9273_v59  ;;  %v9416_v61 = vadd.f32 %v9271_v31, %v4946_v7  ;;  %v9419_v14 = vadd.f32 %v4946_v7, %v9277_v12 }
 0x5c6   : > { %v9422_v40 = vadd.f32 %v9275_v47, %v4946_v7  ;;  %v9425_v20 = vadd.f32 %v4950_v56, %v9281_v25  ;;  %v9428_v50 = vadd.f32 %v9279_v1, %v4950_v56  ;;  %v9436_v12 = vadd.f32 %v9283_v23, %v4950_v56 }
 0x5c7   : > { %v6665_v52 = vpop.f32.mrb[150].mxu0  ;;  %10043 = vst [vmem:[#allocation24_spill] sm:$0xff] %v9416_v61  ;;  %v9433_v61 = vadd.f32 %v4950_v56, %v9285_v42  ;;  %v9441_v25 = vadd.f32 %v4950_v56, %v9289_v19  ;;  %v9444_v1 = vadd.f32 %v9287_v51, %v4950_v56  ;;  %v9450_v42 = vadd.f32 %v9294_v28, %v4950_v56 }
 0x5c8   : > { %v4704_v0 = vpop.f32.mrb[151].mxu0  ;;  %v5020_v17 = vadd.f32 %v6665_v52, %v9357_v3  ;;  %10044 = vst [vmem:[#allocation28_spill] sm:$0xff] %v9436_v12  ;;  %v9459_v19 = vadd.f32 %v4954_v63, %v9309_v41  ;;  %v4930_v51 = vcombine.high %v9337_v5, %v9337_v5  ;;  %v9465_v28 = vadd.f32 %v9305_v34, %v4954_v63 }
 0x5c9   : > { %v5019_v15 = vadd.f32 %v9357_v3, %v4704_v0  ;;  %v9475_v41 = vadd.f32 %v4954_v63, %v4694_v29  ;;  %v9478_v5 = vadd.f32 %v9353_v2, %v4954_v63  ;;  %v5036_v29 = vmax.f32 %v9318_v46, 0.0 }
 0x5ca   : > { %v5084_v52 = vmax.f32 %v5020_v17, 0.0  ;;  %10045 = vst [vmem:[#allocation29_spill] sm:$0xff] %v9465_v28 }
 0x5cb   : > { %v6668_v27 = vpop.f32.mrb[152].mxu0  ;;  %v5083_v0 = vmax.f32 %v5019_v15, 0.0  ;;  %10047 = vst [vmem:[#allocation8_spill] sm:$0xff] %v9478_v5 }
 0x5cc   : > { %v5022_v59 = vadd.f32 %v6668_v27, %v9357_v3  ;;  %v4714_v17 = vpop.f32.mrb[153].mxu0  ;;  %v5226_v31 = vsel %vm1896_vm2, %v5084_v52, -inf  ;;  %v9447_v52 = vadd.f32 %v4950_v56, %v9296_v18  ;;  %v9468_v56 = vadd.f32 %v4954_v63, %v9322_v58 }
 0x5cd   : > { %v5021_v47 = vadd.f32 %v9357_v3, %v4714_v17  ;;  %v5225_v7 = vsel %vm1896_vm2, %v5083_v0, -inf  ;;  %v9453_v17 = vadd.f32 %v4954_v63, %v9301_v39  ;;  %v9456_v0 = vadd.f32 %v9298_v36, %v4954_v63 }
 0x5ce   : > { %v5086_v15 = vmax.f32 %v5022_v59, 0.0  ;;  %v5227_v27 = vmax.f32 %v5225_v7, %v5226_v31  ;;  %v9473_v31 = vadd.f32 %v9320_v53, %v4954_v63  ;;  %v9482_v58 = vrot.slane %v4930_v51, %v10041_v43 }
 0x5cf   : > { %v5085_v23 = vmax.f32 %v5021_v47, 0.0  ;;  %v6671_v12 = vpop.f32.mrb[154].mxu0 }
 0x5d0   : > { %v5024_v18 = vadd.f32 %v6671_v12, %v9357_v3  ;;  %v4724_v59 = vpop.f32.mrb[155].mxu0  ;;  %10046 = vst [vmem:[#allocation9_spill] sm:$0xff] %v9473_v31  ;;  %v5230_v12 = vsel %vm1896_vm2, %v5086_v15, -inf }
 0x5d1   : > { %v5228_v39 = vsel %vm1896_vm2, %v5085_v23, -inf  ;;  %v5023_v36 = vadd.f32 %v9357_v3, %v4724_v59  ;;  %v5035_v23 = vmax.f32 %v9315_v49, 0.0 }
 0x5d2   : > { %v5229_v47 = vmax.f32 %v5227_v27, %v5228_v39  ;;  %v5088_v34 = vmax.f32 %v5024_v18, 0.0  ;;  %v10049_v27 = vld [vmem:[#allocation24_spill] sm:$0xff] }
 0x5d3   : > { %v5087_v7 = vmax.f32 %v5023_v36, 0.0  ;;  %v6674_v28 = vpop.f32.mrb[156].mxu0  ;;  %v9499_v18 = vsel %vm1896_vm2, %v5035_v23, -inf }
 0x5d4   : > { %v5231_v59 = vmax.f32 %v5229_v47, %v5230_v12  ;;  %v5026_v53 = vadd.f32 %v6674_v28, %v9357_v3  ;;  %v4734_v31 = vpop.f32.mrb[157].mxu0  ;;  %v5234_v28 = vsel %vm1896_vm2, %v5088_v34, -inf }
 0x5d5   : > { %v5232_v2 = vsel %vm1896_vm2, %v5087_v7, -inf  ;;  %v5025_v63 = vadd.f32 %v9357_v3, %v4734_v31 }
 0x5d6   : > { %v5233_v51 = vmax.f32 %v5231_v59, %v5232_v2  ;;  %v5090_v39 = vmax.f32 %v5026_v53, 0.0  ;;  %v9502_v59 = vsel %vm1896_vm2, %v5036_v29, -inf }
 0x5d7   : > { %v5089_v36 = vmax.f32 %v5025_v63, 0.0  ;;  %v6677_v46 = vpop.f32.mrb[158].mxu0 }
 0x5d8   : > { %v5235_v7 = vmax.f32 %v5233_v51, %v5234_v28  ;;  %v5028_v3 = vadd.f32 %v6677_v46, %v9482_v58  ;;  %v4744_v31 = vpop.f32.mrb[159].mxu0  ;;  %v5238_v51 = vsel %vm1896_vm2, %v5090_v39, -inf }
 0x5d9   : > { %v5236_v2 = vsel %vm1896_vm2, %v5089_v36, -inf  ;;  %v5027_v34 = vadd.f32 %v9482_v58, %v4744_v31 }
 0x5da   : > { %v5237_v53 = vmax.f32 %v5235_v7, %v5236_v2  ;;  %v5092_v63 = vmax.f32 %v5028_v3, 0.0 }
 0x5db   : > { %v5091_v28 = vmax.f32 %v5027_v34, 0.0  ;;  %v6680_v46 = vpop.f32.mrb[160].mxu0 }
 0x5dc   : > { %v9511_v29 = vmax.f32 %v5237_v53, %v5238_v51  ;;  %v5247_v36 = vsel %vm1896_vm2, %v5092_v63, -inf  ;;  %v5030_v31 = vadd.f32 %v6680_v46, %v9482_v58  ;;  %v4754_v7 = vpop.f32.mrb[161].mxu0  ;;  %v10048_v51 = vld [vmem:[#allocation25_spill] sm:$0xff] }
 0x5dd   : > { %v5246_v2 = vsel %vm1896_vm2, %v5091_v28, -inf  ;;  %v5029_v12 = vadd.f32 %v9482_v58, %v4754_v7 }
 0x5de   : > { %v5248_v23 = vmax.f32 %v5246_v2, %v5247_v36  ;;  %v5094_v47 = vmax.f32 %v5030_v31, 0.0 }
 0x5df   : > { %v5093_v46 = vmax.f32 %v5029_v12, 0.0  ;;  %v6683_v43 = vpop.f32.mrb[162].mxu0 }
 0x5e0   : > { %v5032_v7 = vadd.f32 %v6683_v43, %v9482_v58  ;;  %v4764_v15 = vpop.f32.mrb[163].mxu0  ;;  %v5251_v39 = vsel %vm1896_vm2, %v5094_v47, -inf  ;;  %v5067_v47 = vmax.f32 %v9425_v20, 0.0 }
 0x5e1   : > { %v5249_v53 = vsel %vm1896_vm2, %v5093_v46, -inf  ;;  %v5031_v49 = vadd.f32 %v9482_v58, %v4764_v15 }
 0x5e2   : > { %v5250_v34 = vmax.f32 %v5248_v23, %v5249_v53  ;;  %v5096_v36 = vmax.f32 %v5032_v7, 0.0  ;;  %v5068_v7 = vmax.f32 %v9428_v50, 0.0  ;;  %v5101_v53 = vmax.f32 %v9499_v18, %v9502_v59 }
 0x5e3   : > { %v5095_v63 = vmax.f32 %v5031_v49, 0.0  ;;  %v6686_v2 = vpop.f32.mrb[164].mxu0  ;;  %v5076_v18 = vmax.f32 %v9456_v0, 0.0  ;;  %v10052_v59 = vmax.f32 %v9328_v10, 0.0 }
 0x5e4   : > { %v5252_v5 = vmax.f32 %v5250_v34, %v5251_v39  ;;  %v5034_v15 = vadd.f32 %v6686_v2, %v9482_v58  ;;  %v4774_v12 = vpop.f32.mrb[165].mxu0  ;;  %v10050_v34 = vld [vmem:[#allocation28_spill] sm:$0xff]  ;;  %v5255_v46 = vsel %vm1896_vm2, %v5096_v36, -inf  ;;  %v5075_v39 = vmax.f32 %v9453_v17, 0.0  ;;  %v10056_v36 = vld [vmem:[#allocation29_spill] sm:$0xff] }
 0x5e5   : > { %v5253_v43 = vsel %vm1896_vm2, %v5095_v63, -inf  ;;  %v5033_v3 = vadd.f32 %v9482_v58, %v4774_v12  ;;  %v5071_v63 = vmax.f32 %v9441_v25, 0.0  ;;  %v5072_v58 = vmax.f32 %v9444_v1, 0.0 }
 0x5e6   : > { %v5254_v49 = vmax.f32 %v5252_v5, %v5253_v43  ;;  %v5098_v31 = vmax.f32 %v5034_v15, 0.0  ;;  %v10051_v5 = vmax.f32 %v9325_v32, 0.0  ;;  %v10054_v2 = vmax.f32 %v9340_v21, 0.0 }
 0x5e7   : > { %v5097_v28 = vmax.f32 %v5033_v3, 0.0  ;;  %v5190_v17 = vsel %vm1896_vm2, %v5071_v63, -inf }
 0x5e8   : > { %v5256_v23 = vmax.f32 %v5254_v49, %v5255_v46  ;;  %v5102_v12 = vsel %vm1896_vm2, %v10051_v5, -inf  ;;  %v5104_v46 = vsel %vm1896_vm2, %v10052_v59, -inf  ;;  %v5259_v32 = vsel %vm1896_vm2, %v5098_v31, -inf }
 0x5e9   : > { %v5257_v43 = vsel %vm1896_vm2, %v5097_v28, -inf  ;;  %v5103_v15 = vmax.f32 %v5101_v53, %v5102_v12  ;;  %v10053_v5 = vmax.f32 %v9334_v24, 0.0  ;;  %v5121_v53 = vsel %vm1896_vm2, %v10054_v2, -inf }
 0x5ea   : > { %v5258_v3 = vmax.f32 %v5256_v23, %v5257_v43  ;;  %v5077_v12 = vmax.f32 %v9459_v19, 0.0  ;;  %v10055_v43 = vmax.f32 %v9331_v26, 0.0  ;;  %v5078_v31 = vmax.f32 %v10056_v36, 0.0 }
 0x5eb   : > { %v5105_v49 = vmax.f32 %v5103_v15, %v5104_v46  ;;  %v5120_v28 = vsel %vm1896_vm2, %v10053_v5, -inf  ;;  %v10057_v46 = vmax.f32 %v9342_v16, 0.0  ;;  %v10058_v2 = vmax.f32 %v9363_v13, 0.0 }
 0x5ec   : > { %v9571_v23 = vmax.f32 %v5258_v3, %v5259_v32  ;;  %v5106_v10 = vsel %vm1896_vm2, %v10055_v43, -inf  ;;  %v5122_v59 = vmax.f32 %v5120_v28, %v5121_v53  ;;  %v10059_v5 = vmax.f32 %v9347_v11, 0.0  ;;  %v10061_v43 = vld [vmem:[#allocation9_spill] sm:$0xff] }
 0x5ed   : > { %v5107_v24 = vmax.f32 %v5105_v49, %v5106_v10  ;;  %v5123_v21 = vsel %vm1896_vm2, %v10057_v46, -inf  ;;  %v5108_v3 = vsel %vm1896_vm2, %v10058_v2, -inf  ;;  %v10060_v28 = vmax.f32 %v9349_v8, 0.0 }
 0x5ee   : > { %v5124_v32 = vmax.f32 %v5122_v59, %v5123_v21  ;;  %v5141_v26 = vsel %vm1896_vm2, %v10059_v5, -inf  ;;  %v5080_v15 = vmax.f32 %v10061_v43, 0.0  ;;  %v10062_v16 = vmax.f32 %v9345_v4, 0.0 }
 0x5ef   : > { %v5142_v53 = vsel %vm1896_vm2, %v10060_v28, -inf  ;;  %v5109_v49 = vmax.f32 %v5107_v24, %v5108_v3  ;;  %v5081_v13 = vmax.f32 %v9475_v41, 0.0  ;;  %v10063_v59 = vmax.f32 %v9366_v62, 0.0 }
 0x5f0   : > { %v5125_v10 = vsel %vm1896_vm2, %v10062_v16, -inf  ;;  %v5143_v46 = vmax.f32 %v5141_v26, %v5142_v53  ;;  %v10064_v2 = vmax.f32 %v10048_v51, 0.0  ;;  %v10065_v28 = vmax.f32 %v9369_v33, 0.0 }
 0x5f1   : > { %v5110_v11 = vsel %vm1896_vm2, %v10063_v59, -inf  ;;  %v5126_v21 = vmax.f32 %v5124_v32, %v5125_v10  ;;  %v10066_v4 = vmax.f32 %v9372_v38, 0.0  ;;  %v10067_v62 = vmax.f32 %v9384_v48, 0.0 }
 0x5f2   : > { %v5144_v8 = vsel %vm1896_vm2, %v10064_v2, -inf  ;;  %v5111_v5 = vmax.f32 %v5109_v49, %v5110_v11  ;;  %v5112_v24 = vsel %vm1896_vm2, %v10065_v28, -inf  ;;  %v10068_v32 = vmax.f32 %v9400_v57, 0.0 }
 0x5f3   : > { %v5127_v3 = vsel %vm1896_vm2, %v10066_v4, -inf  ;;  %v5145_v26 = vmax.f32 %v5143_v46, %v5144_v8  ;;  %v5146_v16 = vsel %vm1896_vm2, %v10067_v62, -inf  ;;  %v10069_v49 = vmax.f32 %v9404_v54, 0.0 }
 0x5f4   : > { %v5128_v53 = vmax.f32 %v5126_v21, %v5127_v3  ;;  %v5162_v51 = vsel %vm1896_vm2, %v10068_v32, -inf  ;;  %v5113_v10 = vmax.f32 %v5111_v5, %v5112_v24  ;;  %v10070_v59 = vmax.f32 %v9375_v30, 0.0 }
 0x5f5   : > { %v5163_v33 = vsel %vm1896_vm2, %v10069_v49, -inf  ;;  %v5147_v11 = vmax.f32 %v5145_v26, %v5146_v16  ;;  %v10071_v48 = vmax.f32 %v9378_v22, 0.0  ;;  %v10072_v57 = vmax.f32 %v9387_v45, 0.0 }
 0x5f6   : > { %v5129_v38 = vsel %vm1896_vm2, %v10070_v59, -inf  ;;  %v5164_v46 = vmax.f32 %v5162_v51, %v5163_v33  ;;  %v10073_v54 = vmax.f32 %v9407_v9, 0.0  ;;  %v5114_v5 = vrot.slane %v5113_v10, 4 }
 0x5f7   : > { %v5130_v21 = vmax.f32 %v5128_v53, %v5129_v38  ;;  %v5131_v2 = vsel %vm1896_vm2, %v10071_v48, -inf  ;;  %v5148_v8 = vsel %vm1896_vm2, %v10072_v57, -inf  ;;  %v10074_v30 = vmax.f32 %v9381_v55, 0.0 }
 0x5f8   : > { %v5165_v28 = vsel %vm1896_vm2, %v10073_v54, -inf  ;;  %v5149_v4 = vmax.f32 %v5147_v11, %v5148_v8  ;;  %v10075_v22 = vmax.f32 %v9390_v6, 0.0  ;;  %v10076_v45 = vmax.f32 %v9394_v44, 0.0 }
 0x5f9   : > { %v5133_v24 = vsel %vm1896_vm2, %v10074_v30, -inf  ;;  %v5166_v3 = vmax.f32 %v5164_v46, %v5165_v28  ;;  %v5132_v26 = vmax.f32 %v5130_v21, %v5131_v2  ;;  %v10077_v9 = vmax.f32 %v9410_v37, 0.0 }
 0x5fa   : > { %v5150_v53 = vsel %vm1896_vm2, %v10075_v22, -inf  ;;  %v5152_v62 = vsel %vm1896_vm2, %v10076_v45, -inf  ;;  %v5115_v32 = vmax.f32 %v5113_v10, %v5114_v5  ;;  %v5183_v49 = vsel %vm1896_vm2, %v5067_v47, -inf }
 0x5fb   : > { %v5167_v16 = vsel %vm1896_vm2, %v10077_v9, -inf  ;;  %v5151_v51 = vmax.f32 %v5149_v4, %v5150_v53  ;;  %v5134_v33 = vmax.f32 %v5132_v26, %v5133_v24  ;;  %v10078_v6 = vmax.f32 %v9397_v60, 0.0 }
 0x5fc   : > { %v5168_v55 = vmax.f32 %v5166_v3, %v5167_v16  ;;  %v10079_v44 = vmax.f32 %v9413_v35, 0.0  ;;  %v5184_v37 = vsel %vm1896_vm2, %v5068_v7, -inf  ;;  %v5116_v10 = vrot.slane %v5115_v32, 2 }
 0x5fd   : > { %v5154_v59 = vsel %vm1896_vm2, %v10078_v6, -inf  ;;  %v5153_v11 = vmax.f32 %v5151_v51, %v5152_v62  ;;  %v5185_v21 = vmax.f32 %v5183_v49, %v5184_v37  ;;  %v5135_v20 = vrot.slane %v5134_v33, 4 }
 0x5fe   : > { %v5169_v38 = vsel %vm1896_vm2, %v10079_v44, -inf  ;;  %v10080_v47 = vmax.f32 %v10049_v27, 0.0  ;;  %v10081_v60 = vmax.f32 %v9419_v14, 0.0  ;;  %v10082_v35 = vmax.f32 %v9433_v61, 0.0  ;;  %v10084_v61 = vld [vmem:[#allocation8_spill] sm:$0xff] }
 0x5ff   : > { %v5170_v46 = vmax.f32 %v5168_v55, %v5169_v38  ;;  %v5155_v50 = vmax.f32 %v5153_v11, %v5154_v59  ;;  %v10083_v54 = vmax.f32 %v10050_v34, 0.0  ;;  %v5117_v5 = vmax.f32 %v5115_v32, %v5116_v10 }
 0x600   : > { %v5171_v48 = vsel %vm1896_vm2, %v10080_v47, -inf  ;;  %v5173_v2 = vsel %vm1896_vm2, %v10081_v60, -inf  ;;  %v5186_v57 = vsel %vm1896_vm2, %v10082_v35, -inf  ;;  %v5136_v30 = vmax.f32 %v5134_v33, %v5135_v20 }
 0x601   : > { %v5172_v8 = vmax.f32 %v5170_v46, %v5171_v48  ;;  %v5187_v7 = vmax.f32 %v5185_v21, %v5186_v57  ;;  %v5188_v28 = vsel %vm1896_vm2, %v10083_v54, -inf  ;;  %v5204_v27 = vsel %vm1896_vm2, %v5075_v39, -inf }
 0x602   : > { %v5205_v14 = vsel %vm1896_vm2, %v5076_v18, -inf  ;;  %v5082_v24 = vmax.f32 %v10084_v61, 0.0  ;;  %v5156_v4 = vrot.slane %v5155_v50, 4  ;;  %v5137_v22 = vrot.slane %v5136_v30, 2 }
 0x603   : > { %v5174_v3 = vmax.f32 %v5172_v8, %v5173_v2  ;;  %v5189_v26 = vmax.f32 %v5187_v7, %v5188_v28  ;;  %v10085_v34 = vmax.f32 %v9422_v40, 0.0  ;;  %v5206_v45 = vmax.f32 %v5204_v27, %v5205_v14 }
 0x604   : > { %v5157_v39 = vmax.f32 %v5155_v50, %v5156_v4  ;;  %v5207_v18 = vsel %vm1896_vm2, %v5077_v12, -inf  ;;  %v5118_v9 = vrot.slane %v5117_v5, 1  ;;  %v5138_v16 = vmax.f32 %v5136_v30, %v5137_v22 }
 0x605   : > { %v5175_v53 = vsel %vm1896_vm2, %v10085_v34, -inf  ;;  %v5191_v0 = vmax.f32 %v5189_v26, %v5190_v17  ;;  %v5192_v40 = vsel %vm1896_vm2, %v5072_v58, -inf  ;;  %v5208_v32 = vmax.f32 %v5206_v45, %v5207_v18 }
 0x606   : > { %v5176_v62 = vmax.f32 %v5174_v3, %v5175_v53  ;;  %v5158_v51 = vrot.slane %v5157_v39, 2  ;;  %v5209_v63 = vsel %vm1896_vm2, %v5078_v31, -inf  ;;  %v5261_v49 = vrot.slane %v9571_v23, 4 }
 0x607   : > { %v5193_v25 = vmax.f32 %v5191_v0, %v5192_v40  ;;  %v5139_v33 = vrot.slane %v5138_v16, 1  ;;  %v10086_v19 = vmax.f32 %v9447_v52, 0.0  ;;  %v5210_v6 = vmax.f32 %v5208_v32, %v5209_v63  ;;  %v5775_v40 = vld [vmem:[%s9781_s15] ss:$0 sm:$0xff] }
 0x608   : > { %v5177_v55 = vrot.slane %v5176_v62, 4  ;;  %v5159_v59 = vmax.f32 %v5157_v39, %v5158_v51  ;;  %v10087_v58 = vmax.f32 %v9468_v56, 0.0  ;;  %v5119_v37 = vmax.f32 %v5117_v5, %v5118_v9 }
 0x609   : > { %v5194_v12 = vsel %vm1896_vm2, %v10086_v19, -inf  ;;  %v5140_v10 = vmax.f32 %v5138_v16, %v5139_v33  ;;  %v10088_v36 = vmax.f32 %v9450_v42, 0.0  ;;  %v5213_v20 = vsel %vm1896_vm2, %v5080_v15, -inf }
 0x60a   : > { %v5178_v1 = vmax.f32 %v5176_v62, %v5177_v55  ;;  %v5195_v44 = vmax.f32 %v5193_v25, %v5194_v12  ;;  %v5211_v38 = vsel %vm1896_vm2, %v10087_v58, -inf  ;;  %v5160_v46 = vrot.slane %v5159_v59, 1 }
 0x60b   : > { %v5196_v31 = vsel %vm1896_vm2, %v10088_v36, -inf  ;;  %v5212_v11 = vmax.f32 %v5210_v6, %v5211_v38  ;;  %v10089_v47 = vrot.slane %v9511_v29, 4  ;;  %v5262_v48 = vmax.f32 %v9571_v23, %v5261_v49 }
 0x60c   : > { %v5179_v21 = vrot.slane %v5178_v1, 2  ;;  %v5197_v52 = vmax.f32 %v5195_v44, %v5196_v31  ;;  %v5286_v2 = vsel %vm2665_vm4, %v5140_v10, %v5119_v37  ;;  %v5161_v42 = vmax.f32 %v5159_v59, %v5160_v46 }
 0x60d   : > { %v5241_v56 = vmax.f32 %v9511_v29, %v10089_v47  ;;  %v5214_v60 = vmax.f32 %v5212_v11, %v5213_v20  ;;  %v5215_v50 = vsel %vm1896_vm2, %v5081_v13, -inf  ;;  %v5217_v15 = vsel %vm1896_vm2, %v5082_v24, -inf }
 0x60e   : > { %v5180_v35 = vmax.f32 %v5178_v1, %v5179_v21  ;;  %v5198_v57 = vrot.slane %v5197_v52, 4  ;;  %v5287_v54 = vsel %vm2667_vm5, %v5161_v42, %v5286_v2  ;;  %v5263_v29 = vrot.slane %v5262_v48, 2 }
 0x60f   : > { %v5216_v8 = vmax.f32 %v5214_v60, %v5215_v50  ;;  %v5242_v23 = vrot.slane %v5241_v56, 2 }
 0x610   : > { %v5181_v43 = vrot.slane %v5180_v35, 1  ;;  %v5199_v7 = vmax.f32 %v5197_v52, %v5198_v57  ;;  %v5264_v4 = vmax.f32 %v5262_v48, %v5263_v29 }
 0x611   : > { %v5218_v28 = vmax.f32 %v5216_v8, %v5217_v15  ;;  %v5243_v3 = vmax.f32 %v5241_v56, %v5242_v23 }
 0x612   : > { %v5182_v5 = vmax.f32 %v5180_v35, %v5181_v43  ;;  %v5200_v30 = vrot.slane %v5199_v7, 2  ;;  %v5265_v24 = vrot.slane %v5264_v4, 1 }
 0x613   : > { %v5219_v27 = vrot.slane %v5218_v28, 4  ;;  %v5244_v53 = vrot.slane %v5243_v3, 1 }
 0x614   : > { %v5201_v14 = vmax.f32 %v5199_v7, %v5200_v30  ;;  %v5288_v61 = vsel %vm2669_vm6, %v5182_v5, %v5287_v54  ;;  %v5266_v62 = vmax.f32 %v5264_v4, %v5265_v24 }
 0x615   : > { %v5220_v41 = vmax.f32 %v5218_v28, %v5219_v27  ;;  %v5245_v0 = vmax.f32 %v5243_v3, %v5244_v53 }
 0x616   : > { %v5202_v13 = vrot.slane %v5201_v14, 1 }
 0x617   : > { %v5221_v26 = vrot.slane %v5220_v41, 2 }
 0x618   : > { %v5203_v22 = vmax.f32 %v5201_v14, %v5202_v13 }
 0x619   : > { %v5222_v34 = vmax.f32 %v5220_v41, %v5221_v26 }
 0x61a   : > { %v5289_v17 = vsel %vm2671_vm7, %v5203_v22, %v5288_v61 }
 0x61b   : > { %v5223_v45 = vrot.slane %v5222_v34, 1 }
 0x61d   : > { %v5224_v39 = vmax.f32 %v5222_v34, %v5223_v45 }
 0x61f   : > { %v5290_v18 = vsel %vm2673_vm8, %v5224_v39, %v5289_v17 }
 0x620   : > { %v5291_v9 = vsel %vm2675_vm9, %v5245_v0, %v5290_v18 }
 0x621   : > { %v5292_v16 = vsel %vm2677_vm10, %v5266_v62, %v5291_v9 }
 0x622   : > { %6707 = vmatmul.mubr.msk.f32.vlgmr.msra.gmra.mrb[160].mxu1 %vm1896_vm2, %v5292_v16 }
 0x6f5   : > { %v5361_v32 = vpop.f32.mrb[160].mxu1 }
 0x6f6   : > { %v5362_v51 = vadd.f32 %v5775_v40, %v5361_v32  ;;  %v6708_v55 = vpop.f32.mrb[161].mxu1 }
 0x6f8   : > { %5365 = vst [vmem:[%s517_s26] sm:$0xff] %v5362_v51 }
 0x6f9   : > { %6831 = shalt.err (!%p6828_p3)
}
 0x6fa   : > { %s6832_s19 = scalar_lea.hbm %s9724_s27, 128  ;;  %s6836_s29 = scalar_lea.hbm %s9782_s16, 256 }
 0x6fb   : > { %p6833_p4 = scmp.ne.s32.totalorder %s9724_s27, %s6832_s19  ;;  %p6837_p9 = scmp.lt.u32.totalorder %s9724_s27, %s9782_s16 }
 0x6fc   : > { %p6838_p10 = scmp.lt.u32.totalorder %s6836_s29, %s6832_s19  ;;  %p6840_p12 = scmp.lt.u32.totalorder %s6832_s19, %s9724_s27 }
 0x6fd   : > { %p6834_p7 = pnand %p6833_p4, %p7010_p5 }
 0x6fe   : > { %p6839_p11 = por %p6838_p10, %p6837_p9 }
 0x6ff   : > { %p6835_p8 = pneg %p6834_p7 }
 0x700   : > { %p6841_p13 = por %p6840_p12, %p6839_p11 }
 0x702   : > { %p6842_p0 = pnand %p6841_p13, %p6835_p8 }
 0x704   : > { %6845 = shalt.err (!%p6842_p0)
}
 0x705   : > { %6775 = dma.vmem_to_hbm [thread:$0]  (%p7010_p5), %s9726_s28, 128, %s9724_s27, %s5367_s2  }
 0x706 PF: > { %p6781_p1 = scmp.ge.s32.totalorder %s6880_s24, 2  ;;  %s5392_s23 = sand.u32 1, %s6868_s21  }
 0x707   : > { %s5393_s1 = scalar_lea.sflag [#allocation3], %s5392_s23 }
 0x708   : > { %p6778_p2 = pnand %p6781_p1, %p7014_p6 }
 0x70a   : > { %6863 = dma.done.wait (!%p6778_p2), %s5393_s1, 128  }
 0x70b   : > { %6865 = vsyncadd (!%p6778_p2), %s5393_s1, 4294967168  ;;  %s10090_s24 = sld [smem:[#allocation6_spill]]  ;;  %s10091_s30 = sld [smem:[#allocation5_spill]] }
 0x70c   : > { %s10092_s23 = sld [smem:[#allocation7_spill]]  ;;  %s10093_s21 = smov %s6872_s22 }
 0x711   : > { %p26_p3 = scmp.ge.s32.totalorder %s10090_s24, 4   ;;  %s10094_s22 = smov %s10091_s30 }
 0x713   :  { %28 = sbr.rel (!%p26_p3) target bundleno = 7 (0x7), region = 119 }
 0x71a   :  { %5398 = vsyncpa [#allocation3], 1 }
 0x71b   :  { %5400 = vsyncpa [#allocation3 + $0x1], 1 }

</bundles_post_ra>
